<compile_context>
chip_gen: v7x
topology: tpu7x:2x2x1
jax: 0.10.0
libtpu: 0.0.40
codegen_flags: <defaults>
</compile_context>

<pallas_src>
import functools

import jax
import jax.numpy as jnp
from jax import lax
from jax.experimental import pallas as pl
from jax.experimental.pallas import tpu as pltpu

C_IN = 672     # input channels
C_SE = 168     # squeeze channels
C_PROJ = 160   # projection channels
C_EXP = 960    # expansion channels
BN_EPS = 1e-3


def _se_block_kernel(
    se_ref,      # [1, 672]    f32   pooled features (x143 flattened)
    w48_ref,     # [672, 168]  bf16  conv2d48 weight (in, out)
    b48_ref,     # [1, 168]    f32
    w49_ref,     # [168, 672]  bf16  conv2d49 weight (in, out)
    b49_ref,     # [1, 672]    f32
    x_ref,       # [672, HW]   f32   main feature map, channels-major
    w50_ref,     # [160, 672]  bf16  conv2d50 weight (out, in) -- native layout
    gamma_ref,   # [160, 1]    f32   BN weight
    beta_ref,    # [160, 1]    f32   BN bias
    w51_ref,     # [TN, 160]   bf16  tile of conv2d51 weight (out, in)
    out_ref,     # [TN, HW]    f32   tile of the transposed output
    y_scratch,   # [160, HW]   bf16  VMEM scratch: normalized projection
    *,
    hw: int,
):
    # ---- pre-work: SE gate + projection + BatchNorm (once per outer index) ----
    @pl.when(pl.program_id(1) == 0)
    def _prework():
        # SE gating path (tiny M=1 matmuls on the MXU).
        se = se_ref[...].astype(jnp.bfloat16)                          # [1, 672]
        h = jnp.dot(se, w48_ref[...], preferred_element_type=jnp.float32)
        h = jnp.maximum(h + b48_ref[...], 0.0)                         # ReLU
        s = jnp.dot(h.astype(jnp.bfloat16), w49_ref[...],
                    preferred_element_type=jnp.float32)
        s = s + b49_ref[...]
        # Hardsigmoid: relu6(x + 3) / 6
        s = jnp.clip(s + 3.0, 0.0, 6.0) * (1.0 / 6.0)                  # [1, 672]

        # Fold the per-channel gate into the projection weights:
        #   conv50(s * x) == (w50 * s) @ x     (exact in real arithmetic)
        w50s = (w50_ref[...].astype(jnp.float32) * s).astype(jnp.bfloat16)

        # conv2d50 (1x1, no bias): [160,672] @ [672,HW] -> [160,HW] (f32 acc)
        y = jnp.dot(w50s, x_ref[...].astype(jnp.bfloat16),
                    preferred_element_type=jnp.float32)

        # BatchNorm2d, training mode: batch stats over N*H*W (= lane axis),
        # two-pass (centered) variance for robustness.
        inv_hw = 1.0 / float(hw)
        mean = jnp.sum(y, axis=1, keepdims=True) * inv_hw              # [160,1]
        yc = y - mean
        var = jnp.sum(yc * yc, axis=1, keepdims=True) * inv_hw         # biased
        inv_std = lax.rsqrt(var + BN_EPS)
        y_norm = yc * (inv_std * gamma_ref[...]) + beta_ref[...]
        y_scratch[...] = y_norm.astype(jnp.bfloat16)

    # ---- conv2d51 expansion tile: [TN,160] @ [160,HW] -> [TN,HW] ----
    out_ref[...] = jnp.dot(w51_ref[...], y_scratch[...],
                           preferred_element_type=jnp.float32)


def se_project_expand(x143, x142, params):
    """Runs the whole block in one Pallas kernel.

    x143: [N, 672, 1, 1] float32 (NCHW)
    x142: [N, 672, H, W] float32 (NCHW)
    returns: [N, 960, H, W] float32 (NCHW)
    """
    N, C, H, W = x142.shape
    assert N == 1, "kernel assumes batch size 1 (as in the reference module)"
    assert C == C_IN
    HW = H * W

    # Free reshapes (no transpose, no pad): NCHW with N=1 is already [C, H*W].
    x_t = x142.reshape(C_IN, HW)
    se = x143.reshape(1, C_IN)

    (w48, b48, w49, b49, w50, gamma, beta, w51) = params
    bf = jnp.bfloat16
    w48b, w49b, w50b, w51b = (w.astype(bf) for w in (w48, w49, w50, w51))

    # Grid: outer axis splits C_EXP in halves (parallel -> 2 TCs on v7x),
    # inner axis tiles each half (arbitrary -> DMA/compute overlap).
    n_par, n_tiles = 2, 2
    assert C_EXP % (n_par * n_tiles) == 0
    tn = C_EXP // (n_par * n_tiles)          # 240 output-channel rows per tile

    def const_spec(shape):
        return pl.BlockSpec(shape, lambda i, j: (0, 0))

    grid_spec = pltpu.PrefetchScalarGridSpec(
        num_scalar_prefetch=0,
        grid=(n_par, n_tiles),
        in_specs=[
            const_spec((1, C_IN)),                                     # se
            const_spec((C_IN, C_SE)),                                  # w48
            const_spec((1, C_SE)),                                     # b48
            const_spec((C_SE, C_IN)),                                  # w49
            const_spec((1, C_IN)),                                     # b49
            const_spec((C_IN, HW)),                                    # x
            const_spec((C_PROJ, C_IN)),                                # w50
            const_spec((C_PROJ, 1)),                                   # gamma
            const_spec((C_PROJ, 1)),                                   # beta
            pl.BlockSpec((tn, C_PROJ), lambda i, j: (i * n_tiles + j, 0)),  # w51
        ],
        out_specs=pl.BlockSpec((tn, HW), lambda i, j: (i * n_tiles + j, 0)),
        scratch_shapes=[pltpu.VMEM((C_PROJ, HW), jnp.bfloat16)],
    )

    out_t = pl.pallas_call(
        functools.partial(_se_block_kernel, hw=HW),
        out_shape=jax.ShapeDtypeStruct((C_EXP, HW), jnp.float32),
        grid_spec=grid_spec,
        compiler_params=pltpu.CompilerParams(
            dimension_semantics=("parallel", "arbitrary"),
            vmem_limit_bytes=32 * 1024 * 1024,
        ),
        cost_estimate=pl.CostEstimate(
            flops=125_000_000, transcendentals=0, bytes_accessed=2_300_000),
    )(se, w48b, b48, w49b, b49, x_t, w50b, gamma, beta, w51b)

    # [960, H*W] -> [1, 960, H, W] is a free reshape (already NCHW row-major).
    return out_t.reshape(N, C_EXP, H, W)


def _reference_matched(x143, x142, params):
    """Pure-JAX reference using the same bf16 dot operands / gate fusion."""
    (w48, b48, w49, b49, w50, gamma, beta, w51) = params
    bf, f32 = jnp.bfloat16, jnp.float32
    N, C, H, W = x142.shape
    hw = H * W
    se = x143.reshape(1, C)
    h = jnp.dot(se.astype(bf), w48.astype(bf), preferred_element_type=f32)
    h = jnp.maximum(h + b48, 0.0)
    s = jnp.dot(h.astype(bf), w49.astype(bf), preferred_element_type=f32) + b49
    s = jnp.clip(s + 3.0, 0.0, 6.0) * (1.0 / 6.0)
    w50s = (w50.astype(bf).astype(f32) * s).astype(bf)
    x_t = x142.reshape(C, hw)
    y = jnp.dot(w50s, x_t.astype(bf), preferred_element_type=f32)
    mean = jnp.mean(y, axis=1, keepdims=True)
    yc = y - mean
    var = jnp.mean(yc * yc, axis=1, keepdims=True)
    y_norm = yc * lax.rsqrt(var + BN_EPS) * gamma + beta
    out_t = jnp.dot(w51.astype(bf), y_norm.astype(bf), preferred_element_type=f32)
    return out_t.reshape(N, C_EXP, H, W)


def _reference_f32(x143, x142, params):
    """Full-f32 reference following the original graph (gate applied to x)."""
    (w48, b48, w49, b49, w50, gamma, beta, w51) = params
    N, C, H, W = x142.shape
    se = x143.reshape(1, C)
    h = jnp.maximum(se @ w48 + b48, 0.0)
    s = jnp.clip(h @ w49 + b49 + 3.0, 0.0, 6.0) / 6.0          # [1, 672]
    x = x142.reshape(C, H * W) * s.reshape(C, 1)               # x147 * x142
    y = w50 @ x                                                # conv2d50
    mean = jnp.mean(y, axis=1, keepdims=True)
    var = jnp.mean((y - mean) ** 2, axis=1, keepdims=True)
    y = (y - mean) / jnp.sqrt(var + BN_EPS) * gamma + beta     # BN (batch stats)
    out = w51 @ y                                              # conv2d51
    return out.reshape(N, C_EXP, H, W)


def _init_params(key):
    ks = jax.random.split(key, 8)

    def w(k, fan_in, shape):
        bound = 1.0 / jnp.sqrt(fan_in)
        return jax.random.uniform(k, shape, jnp.float32, -bound, bound)

    # Layouts used by the kernel:
    #   w48: [in, out] = conv2d48.weight.reshape(168,672).T
    #   w49: [in, out] = conv2d49.weight.reshape(672,168).T
    #   w50: [out, in] = conv2d50.weight.reshape(160,672)   (native)
    #   w51: [out, in] = conv2d51.weight.reshape(960,160)   (native)
    w48 = w(ks[0], C_IN, (C_IN, C_SE))
    b48 = w(ks[1], C_IN, (1, C_SE))
    w49 = w(ks[2], C_SE, (C_SE, C_IN))
    b49 = w(ks[3], C_SE, (1, C_IN))
    w50 = w(ks[4], C_IN, (C_PROJ, C_IN))
    gamma = 1.0 + 0.1 * jax.random.normal(ks[5], (C_PROJ, 1), jnp.float32)
    beta = 0.1 * jax.random.normal(ks[6], (C_PROJ, 1), jnp.float32)
    w51 = w(ks[7], C_PROJ, (C_EXP, C_PROJ))
    return (w48, b48, w49, b49, w50, gamma, beta, w51)


if __name__ == "__main__":
    key = jax.random.PRNGKey(0)
    k_x142, k_x143, k_params = jax.random.split(key, 3)

    # shapes implied by the module's forward
    x142 = jax.random.normal(k_x142, (1, 672, 14, 14), jnp.float32)
    x143 = jax.random.normal(k_x143, (1, 672, 1, 1), jnp.float32)
    params = _init_params(k_params)

    out = jax.block_until_ready(se_project_expand(x143, x142, params))
    assert out.shape == (1, 960, 14, 14), out.shape

    # Tight check against a precision-matched (bf16 dot operands) reference,
    # plus a loose sanity check against the full-f32 original graph.
    ref_m = _reference_matched(x143, x142, params)
    ref_f = _reference_f32(x143, x142, params)
    err_m = float(jnp.max(jnp.abs(out - ref_m)))
    err_f = float(jnp.max(jnp.abs(out - ref_f)))
    assert err_m < 5e-3, f"max abs err vs matched-precision ref: {err_m}"
    assert err_f < 2.5e-1, f"max abs err vs f32 ref: {err_f}"

    print("KERNEL_OK")
</pallas_src>

<mosaic_0001>
module attributes {stable_mosaic.version = 11 : i64} {
  func.func @_se_block_kernel(%arg0: i32, %arg1: i32, %arg2: memref<1x672xf32, #tpu.memory_space<vmem>>, %arg3: memref<672x168xbf16, #tpu.memory_space<vmem>>, %arg4: memref<1x168xf32, #tpu.memory_space<vmem>>, %arg5: memref<168x672xbf16, #tpu.memory_space<vmem>>, %arg6: memref<1x672xf32, #tpu.memory_space<vmem>>, %arg7: memref<672x196xf32, #tpu.memory_space<vmem>>, %arg8: memref<160x672xbf16, #tpu.memory_space<vmem>>, %arg9: memref<160x1xf32, #tpu.memory_space<vmem>>, %arg10: memref<160x1xf32, #tpu.memory_space<vmem>>, %arg11: memref<240x160xbf16, #tpu.memory_space<vmem>>, %arg12: memref<240x196xf32, #tpu.memory_space<vmem>>, %arg13: memref<160x196xbf16, #tpu.memory_space<vmem>>) attributes {dimension_semantics = [#tpu.dimension_semantics<parallel>, #tpu.dimension_semantics<arbitrary>], iteration_bounds = array<i64: 2, 2>, scalar_prefetch = 0 : i64, scratch_operands = 1 : i64, tpu.core_type = #tpu.core_type<tc>, window_params = [{pipeline_mode = #tpu.pipeline_mode<synchronous>, transform_indices = @transform_0, window_bounds = array<i64: 1, 672>}, {pipeline_mode = #tpu.pipeline_mode<synchronous>, transform_indices = @transform_1, window_bounds = array<i64: 672, 168>}, {pipeline_mode = #tpu.pipeline_mode<synchronous>, transform_indices = @transform_2, window_bounds = array<i64: 1, 168>}, {pipeline_mode = #tpu.pipeline_mode<synchronous>, transform_indices = @transform_3, window_bounds = array<i64: 168, 672>}, {pipeline_mode = #tpu.pipeline_mode<synchronous>, transform_indices = @transform_4, window_bounds = array<i64: 1, 672>}, {pipeline_mode = #tpu.pipeline_mode<synchronous>, transform_indices = @transform_5, window_bounds = array<i64: 672, 196>}, {pipeline_mode = #tpu.pipeline_mode<synchronous>, transform_indices = @transform_6, window_bounds = array<i64: 160, 672>}, {pipeline_mode = #tpu.pipeline_mode<synchronous>, transform_indices = @transform_7, window_bounds = array<i64: 160, 1>}, {pipeline_mode = #tpu.pipeline_mode<synchronous>, transform_indices = @transform_8, window_bounds = array<i64: 160, 1>}, {transform_indices = @transform_9, window_bounds = array<i64: 240, 160>}, {transform_indices = @transform_10, window_bounds = array<i64: 240, 196>}]} {
    %c0_i32 = arith.constant 0 : i32
    %0 = arith.cmpi eq, %arg1, %c0_i32 : i32
    %1 = arith.extui %0 : i1 to i32
    %c0_i32_0 = arith.constant 0 : i32
    %2 = arith.cmpi ne, %1, %c0_i32_0 : i32
    scf.if %2 {
      %c0_6 = arith.constant 0 : index
      %c0_7 = arith.constant 0 : index
      %7 = vector.load %arg2[%c0_6, %c0_7] : memref<1x672xf32, #tpu.memory_space<vmem>>, vector<1x672xf32>
      %8 = arith.truncf %7 : vector<1x672xf32> to vector<1x672xbf16>
      %c0_8 = arith.constant 0 : index
      %c0_9 = arith.constant 0 : index
      %9 = vector.load %arg3[%c0_8, %c0_9] : memref<672x168xbf16, #tpu.memory_space<vmem>>, vector<672x168xbf16>
      %cst_10 = arith.constant dense<0.000000e+00> : vector<1x168xf32>
      %10 = tpu.matmul %8, %9, %cst_10 {dimension_numbers = #tpu.dot_dimension_numbers<[1], [0], [0], [1], [0, 0, 1, 1], [], []>} : vector<1x672xbf16>, vector<672x168xbf16>, vector<1x168xf32> -> vector<1x168xf32>
      %c0_11 = arith.constant 0 : index
      %c0_12 = arith.constant 0 : index
      %11 = vector.load %arg4[%c0_11, %c0_12] : memref<1x168xf32, #tpu.memory_space<vmem>>, vector<1x168xf32>
      %12 = arith.addf %10, %11 : vector<1x168xf32>
      %cst_13 = arith.constant 0.000000e+00 : f32
      %13 = vector.broadcast %cst_13 : f32 to vector<1x168xf32>
      %14 = arith.maximumf %12, %13 : vector<1x168xf32>
      %15 = arith.truncf %14 : vector<1x168xf32> to vector<1x168xbf16>
      %c0_14 = arith.constant 0 : index
      %c0_15 = arith.constant 0 : index
      %16 = vector.load %arg5[%c0_14, %c0_15] : memref<168x672xbf16, #tpu.memory_space<vmem>>, vector<168x672xbf16>
      %cst_16 = arith.constant dense<0.000000e+00> : vector<1x672xf32>
      %17 = tpu.matmul %15, %16, %cst_16 {dimension_numbers = #tpu.dot_dimension_numbers<[1], [0], [0], [1], [0, 0, 1, 1], [], []>} : vector<1x168xbf16>, vector<168x672xbf16>, vector<1x672xf32> -> vector<1x672xf32>
      %c0_17 = arith.constant 0 : index
      %c0_18 = arith.constant 0 : index
      %18 = vector.load %arg6[%c0_17, %c0_18] : memref<1x672xf32, #tpu.memory_space<vmem>>, vector<1x672xf32>
      %19 = arith.addf %17, %18 : vector<1x672xf32>
      %cst_19 = arith.constant 3.000000e+00 : f32
      %20 = vector.broadcast %cst_19 : f32 to vector<1x672xf32>
      %21 = arith.addf %19, %20 : vector<1x672xf32>
      %cst_20 = arith.constant 0.000000e+00 : f32
      %cst_21 = arith.constant 6.000000e+00 : f32
      %22 = vector.broadcast %cst_20 : f32 to vector<1x672xf32>
      %23 = arith.maximumf %22, %21 : vector<1x672xf32>
      %24 = vector.broadcast %cst_21 : f32 to vector<1x672xf32>
      %25 = arith.minimumf %24, %23 : vector<1x672xf32>
      %cst_22 = arith.constant 0.166666672 : f32
      %26 = vector.broadcast %cst_22 : f32 to vector<1x672xf32>
      %27 = arith.mulf %25, %26 : vector<1x672xf32>
      %c0_23 = arith.constant 0 : index
      %c0_24 = arith.constant 0 : index
      %28 = vector.load %arg8[%c0_23, %c0_24] : memref<160x672xbf16, #tpu.memory_space<vmem>>, vector<160x672xbf16>
      %29 = arith.extf %28 : vector<160x672xbf16> to vector<160x672xf32>
      %30 = vector.broadcast %27 : vector<1x672xf32> to vector<160x672xf32>
      %31 = arith.mulf %29, %30 : vector<160x672xf32>
      %32 = arith.truncf %31 : vector<160x672xf32> to vector<160x672xbf16>
      %c0_25 = arith.constant 0 : index
      %c0_26 = arith.constant 0 : index
      %33 = vector.load %arg7[%c0_25, %c0_26] : memref<672x196xf32, #tpu.memory_space<vmem>>, vector<672x196xf32>
      %34 = arith.truncf %33 : vector<672x196xf32> to vector<672x196xbf16>
      %cst_27 = arith.constant dense<0.000000e+00> : vector<160x196xf32>
      %35 = tpu.matmul %32, %34, %cst_27 {dimension_numbers = #tpu.dot_dimension_numbers<[1], [0], [0], [1], [0, 0, 1, 1], [], []>} : vector<160x672xbf16>, vector<672x196xbf16>, vector<160x196xf32> -> vector<160x196xf32>
      %cst_28 = arith.constant dense<0.000000e+00> : vector<160xf32>
      %36 = vector.multi_reduction <add>, %35, %cst_28 [1] : vector<160x196xf32> to vector<160xf32>
      %37 = vector.shape_cast %36 : vector<160xf32> to vector<160x1xf32>
      %cst_29 = arith.constant 0.00510204071 : f32
      %38 = vector.broadcast %cst_29 : f32 to vector<160x1xf32>
      %39 = arith.mulf %37, %38 : vector<160x1xf32>
      %40 = vector.broadcast %39 : vector<160x1xf32> to vector<160x196xf32>
      %41 = arith.subf %35, %40 : vector<160x196xf32>
      %42 = arith.mulf %41, %41 : vector<160x196xf32>
      %cst_30 = arith.constant dense<0.000000e+00> : vector<160xf32>
      %43 = vector.multi_reduction <add>, %42, %cst_30 [1] : vector<160x196xf32> to vector<160xf32>
      %44 = vector.shape_cast %43 : vector<160xf32> to vector<160x1xf32>
      %cst_31 = arith.constant 0.00510204071 : f32
      %45 = vector.broadcast %cst_31 : f32 to vector<160x1xf32>
      %46 = arith.mulf %44, %45 : vector<160x1xf32>
      %cst_32 = arith.constant 1.000000e-03 : f32
      %47 = vector.broadcast %cst_32 : f32 to vector<160x1xf32>
      %48 = arith.addf %46, %47 : vector<160x1xf32>
      %49 = math.rsqrt %48 : vector<160x1xf32>
      %c0_33 = arith.constant 0 : index
      %c0_34 = arith.constant 0 : index
      %50 = vector.load %arg9[%c0_33, %c0_34] : memref<160x1xf32, #tpu.memory_space<vmem>>, vector<160x1xf32>
      %51 = arith.mulf %49, %50 : vector<160x1xf32>
      %52 = vector.broadcast %51 : vector<160x1xf32> to vector<160x196xf32>
      %53 = arith.mulf %41, %52 : vector<160x196xf32>
      %c0_35 = arith.constant 0 : index
      %c0_36 = arith.constant 0 : index
      %54 = vector.load %arg10[%c0_35, %c0_36] : memref<160x1xf32, #tpu.memory_space<vmem>>, vector<160x1xf32>
      %55 = vector.broadcast %54 : vector<160x1xf32> to vector<160x196xf32>
      %56 = arith.addf %53, %55 : vector<160x196xf32>
      %57 = arith.truncf %56 : vector<160x196xf32> to vector<160x196xbf16>
      %c0_37 = arith.constant 0 : index
      %c0_38 = arith.constant 0 : index
      %58 = vector.load %arg13[%c0_37, %c0_38] : memref<160x196xbf16, #tpu.memory_space<vmem>>, vector<160x196xbf16>
      tpu.vector_store %arg13[%c0_37, %c0_38], %57 {strides = array<i32>} : memref<160x196xbf16, #tpu.memory_space<vmem>>, vector<160x196xbf16>,
    } else {
    }
    %c0 = arith.constant 0 : index
    %c0_1 = arith.constant 0 : index
    %3 = vector.load %arg11[%c0, %c0_1] : memref<240x160xbf16, #tpu.memory_space<vmem>>, vector<240x160xbf16>
    %c0_2 = arith.constant 0 : index
    %c0_3 = arith.constant 0 : index
    %4 = vector.load %arg13[%c0_2, %c0_3] : memref<160x196xbf16, #tpu.memory_space<vmem>>, vector<160x196xbf16>
    %cst = arith.constant dense<0.000000e+00> : vector<240x196xf32>
    %5 = tpu.matmul %3, %4, %cst {dimension_numbers = #tpu.dot_dimension_numbers<[1], [0], [0], [1], [0, 0, 1, 1], [], []>} : vector<240x160xbf16>, vector<160x196xbf16>, vector<240x196xf32> -> vector<240x196xf32>
    %c0_4 = arith.constant 0 : index
    %c0_5 = arith.constant 0 : index
    %6 = vector.load %arg12[%c0_4, %c0_5] : memref<240x196xf32, #tpu.memory_space<vmem>>, vector<240x196xf32>
    tpu.vector_store %arg12[%c0_4, %c0_5], %5 {strides = array<i32>} : memref<240x196xf32, #tpu.memory_space<vmem>>, vector<240x196xf32>,
    return
  }
  func.func @transform_0(%arg0: i32, %arg1: i32) -> (i32, i32) {
    %c0_i32 = arith.constant 0 : i32
    %c0_i32_0 = arith.constant 0 : i32
    %c0_i32_1 = arith.constant 0 : i32
    return %c0_i32, %c0_i32_0 : i32, i32
  }
  func.func @transform_1(%arg0: i32, %arg1: i32) -> (i32, i32) {
    %c0_i32 = arith.constant 0 : i32
    %c0_i32_0 = arith.constant 0 : i32
    %c0_i32_1 = arith.constant 0 : i32
    return %c0_i32, %c0_i32_0 : i32, i32
  }
  func.func @transform_2(%arg0: i32, %arg1: i32) -> (i32, i32) {
    %c0_i32 = arith.constant 0 : i32
    %c0_i32_0 = arith.constant 0 : i32
    %c0_i32_1 = arith.constant 0 : i32
    return %c0_i32, %c0_i32_0 : i32, i32
  }
  func.func @transform_3(%arg0: i32, %arg1: i32) -> (i32, i32) {
    %c0_i32 = arith.constant 0 : i32
    %c0_i32_0 = arith.constant 0 : i32
    %c0_i32_1 = arith.constant 0 : i32
    return %c0_i32, %c0_i32_0 : i32, i32
  }
  func.func @transform_4(%arg0: i32, %arg1: i32) -> (i32, i32) {
    %c0_i32 = arith.constant 0 : i32
    %c0_i32_0 = arith.constant 0 : i32
    %c0_i32_1 = arith.constant 0 : i32
    return %c0_i32, %c0_i32_0 : i32, i32
  }
  func.func @transform_5(%arg0: i32, %arg1: i32) -> (i32, i32) {
    %c0_i32 = arith.constant 0 : i32
    %c0_i32_0 = arith.constant 0 : i32
    %c0_i32_1 = arith.constant 0 : i32
    return %c0_i32, %c0_i32_0 : i32, i32
  }
  func.func @transform_6(%arg0: i32, %arg1: i32) -> (i32, i32) {
    %c0_i32 = arith.constant 0 : i32
    %c0_i32_0 = arith.constant 0 : i32
    %c0_i32_1 = arith.constant 0 : i32
    return %c0_i32, %c0_i32_0 : i32, i32
  }
  func.func @transform_7(%arg0: i32, %arg1: i32) -> (i32, i32) {
    %c0_i32 = arith.constant 0 : i32
    %c0_i32_0 = arith.constant 0 : i32
    %c0_i32_1 = arith.constant 0 : i32
    return %c0_i32, %c0_i32_0 : i32, i32
  }
  func.func @transform_8(%arg0: i32, %arg1: i32) -> (i32, i32) {
    %c0_i32 = arith.constant 0 : i32
    %c0_i32_0 = arith.constant 0 : i32
    %c0_i32_1 = arith.constant 0 : i32
    return %c0_i32, %c0_i32_0 : i32, i32
  }
  func.func @transform_9(%arg0: i32, %arg1: i32) -> (i32, i32) {
    %c2_i32 = arith.constant 2 : i32
    %0 = arith.muli %arg0, %c2_i32 : i32
    %1 = arith.addi %0, %arg1 : i32
    %c0_i32 = arith.constant 0 : i32
    %c0_i32_0 = arith.constant 0 : i32
    return %1, %c0_i32 : i32, i32
  }
  func.func @transform_10(%arg0: i32, %arg1: i32) -> (i32, i32) {
    %c2_i32 = arith.constant 2 : i32
    %0 = arith.muli %arg0, %c2_i32 : i32
    %1 = arith.addi %0, %arg1 : i32
    %c0_i32 = arith.constant 0 : i32
    %c0_i32_0 = arith.constant 0 : i32
    return %1, %c0_i32 : i32, i32
  }
}

</mosaic_0001>

<bundles_post_ra>
// kernel: tpu_custom_call.1
= control target key start
LH: loop header
LB: loop body
LE: loop exit
PB: predicated region body
PF: predicated region fallthrough
CT: control target
= control target key end

     0   :  { %s4811_s13 = smov 0   ;;  %s4813_s14 = smov 0   ;;  %s7263_s0 = inlined_call_operand.vmem [shape: f32[1,672], index: 0, kind: input, shape index: {}]   ;;  %s7264_s1 = inlined_call_operand.vmem [shape: bf16[672,168], index: 1, kind: input, shape index: {}]   ;;  %s7265_s2 = inlined_call_operand.vmem [shape: f32[1,168], index: 2, kind: input, shape index: {}]   ;;  %s7266_s3 = inlined_call_operand.vmem [shape: bf16[168,672], index: 3, kind: input, shape index: {}]   ;;  %s7267_s4 = inlined_call_operand.vmem [shape: f32[1,672], index: 4, kind: input, shape index: {}]   ;;  %s7268_s5 = inlined_call_operand.vmem [shape: f32[672,196], index: 5, kind: input, shape index: {}]   ;;  %s7269_s6 = inlined_call_operand.vmem [shape: bf16[160,672], index: 6, kind: input, shape index: {}]   ;;  %s7270_s7 = inlined_call_operand.vmem [shape: f32[160,1], index: 7, kind: input, shape index: {}]   ;;  %s7271_s8 = inlined_call_operand.vmem [shape: f32[160,1], index: 8, kind: input, shape index: {}]   ;;  %s7272_s9 = inlined_call_operand.vmem [shape: bf16[960,160], index: 9, kind: input, shape index: {}]   ;;  %s7273_s10 = inlined_call_operand.vmem [shape: f32[960,196], index: 10, kind: output, shape index: {}]  }
   0x1   :  { %s4815_s15 = smov 0   ;;  %s4817_s16 = smov 0  }
   0x2   :  { %s4819_s17 = smov 0  }
   0x3 LB: > { %s29_s18 = sadd.s32 1, %s4745_s15  ;;  %s32_s19 = sadd.s32 1, %s4749_s16  ;;  %s4753_s17 = sphi %s4819_s17, %s20_s17   ;;  %s4749_s16 = sphi %s4817_s16, %s7298_s16   ;;  %s4745_s15 = sphi %s4815_s15, %s7297_s15   ;;  %s4741_s14 = sphi %s4813_s14, %s7296_s14   ;;  %s4737_s13 = sphi %s4811_s13, %s7295_s13  }
   0x4   : > { %p30_p0 = scmp.ge.s32.totalorder %s29_s18, 2  ;;  %p3999_p1 = scmp.ge.s32.totalorder %s4753_s17, 1 }
   0x5   : > { %p338_p2 = scmp.lt.s32.totalorder %s4753_s17, 5 }
   0x6   : > { %s7300_s18 = smov (%p30_p0, %s29_s18), 0  ;;  %s7302_s19 = smov (!%p30_p0, %s32_s19), %s4749_s16 }
   0x7   : > { %p339_p3 = pnand %p3999_p1, %p338_p2  ;;  %p34_p4 = scmp.ge.s32.totalorder %s7302_s19, 2 }
   0x8   : > { %s4000_s20 = sshll.u32 (!%p339_p3), %s4741_s14, 1  ;;  %p4006_p6 = scmp.ne.s32.totalorder (!%p339_p3), %s4737_s13, 0 }
   0x9   : > { %s7304_s19 = smov (%p34_p4, %s7302_s19), 0  ;;  %342 = sbr.rel (%p339_p3) target bundleno = 1867 (0x74b), region = 60 }
   0xa   : > { %s383_s21 = sadd.s32 (!%p339_p3), %s4737_s13, %s4000_s20 }
   0xb   : > { %s384_s22 = smul.u32 (!%p339_p3), 30, %s383_s21 }
   0xd   : > { %p385_p5 = scmp.lt.s32.totalorder (!%p339_p3), %s384_s22, 119 }
  0x10   : > { %s7306_s22 = smov (!%p385_p5, %s384_s22), 119  ;;  %408 = sbr.rel (%p4006_p6) target bundleno = 1554 (0x612), region = 64 }
  0x11   : > { %s4221_s23 = sshll.u32 %s7306_s22, 3  ;;  %s4222_s24 = sshll.u32 %s7306_s22, 4 }
  0x12   : > { %s4844_s27 = scalar_lea.vmem %s7272_s9, %s4221_s23  ;;  %s4849_s30 = scalar_lea.vmem %s7273_s10, %s4222_s24 }
  0x17   : > { %v4408_v0 = vld [vmem:[%s7264_s1 + $0x4] ss:$8 sps:$4 sm:$0xff]   ;;  %v4410_v1 = vld [vmem:[%s7264_s1] ss:$8 sps:$4 sm:$0xff]   ;;  %v4411_v2 = vld [vmem:[%s7264_s1 + $0x14] ss:$8 sps:$4 sm:$0xff]   ;;  %v411_v7 = vlaneseq }
  0x18   : > { %967 = vmatprep.subr.bf16.mxu0 %v4408_v0  ;;  %v4413_v3 = vld [vmem:[%s7264_s1 + $0x10] ss:$8 sps:$4 sm:$0xff]   ;;  %v4414_v4 = vld [vmem:[%s7264_s1 + $0x24] ss:$8 sps:$4 sm:$0xff]   ;;  %v4416_v5 = vld [vmem:[%s7264_s1 + $0x20] ss:$8 sps:$4 sm:$0xff]  }
  0x19   : > { %968 = vmatpush1.bf16.msra.mxu0 %v4410_v1  ;;  %v4417_v6 = vld [vmem:[%s7264_s1 + $0x34] ss:$8 sps:$4 sm:$0xff]   ;;  %v4419_v8 = vld [vmem:[%s7264_s1 + $0x30] ss:$8 sps:$4 sm:$0xff]   ;;  %v4420_v9 = vld [vmem:[%s7264_s1 + $0x44] ss:$8 sps:$4 sm:$0xff]  }
  0x1a   : > { %969 = vmatprep.subr.bf16.mxu0 %v4411_v2  ;;  %v4878_v10 = vshrl.u32 %v411_v7, 7  ;;  %v4422_v11 = vld [vmem:[%s7264_s1 + $0x40] ss:$8 sps:$4 sm:$0xff]   ;;  %v4423_v12 = vld [vmem:[%s7264_s1 + $0x54] ss:$8 sps:$4 sm:$0xff]   ;;  %vm963_vm0 = vcmask 261120  }
  0x1b   : > { %v4425_v14 = vld [vmem:[%s7264_s1 + $0x50] ss:$8 sps:$4 sm:$0xff]   ;;  %v4426_v15 = vld [vmem:[%s7264_s1 + $0x64] ss:$8 sps:$4 sm:$0xff]   ;;  %v4428_v18 = vld [vmem:[%s7264_s1 + $0x60] ss:$8 sps:$4 sm:$0xff]  }
  0x1c   : > { %v4887_v13 = vsub.s32 1, %v4878_v10  ;;  %v4898_v16 = vld [vmem:[%s7263_s0] sm:$0x3f]  ;;  %v4429_v19 = vld [vmem:[%s7264_s1 + $0x74] ss:$8 sps:$4 sm:$0xff]   ;;  %v4951_v35 = vsub.s32 0, %v4878_v10 }
  0x1d   : > { %970 = vmatpush1.bf16.msra.mxu0 %v4413_v3  ;;  %v4431_v21 = vld [vmem:[%s7264_s1 + $0x70] ss:$8 sps:$4 sm:$0xff]   ;;  %v4432_v22 = vld [vmem:[%s7264_s1 + $0x84] ss:$8 sps:$4 sm:$0xff]   ;;  %v4434_v23 = vld [vmem:[%s7264_s1 + $0x80] ss:$8 sps:$4 sm:$0xff]  }
  0x1e   : > { %971 = vmatprep.subr.bf16.mxu0 %v4414_v4  ;;  %v418_v17 = vrot.slane %v4898_v16, %v4887_v13  ;;  %v4435_v24 = vld [vmem:[%s7264_s1 + $0x94] ss:$8 sps:$4 sm:$0xff]   ;;  %v4437_v25 = vld [vmem:[%s7264_s1 + $0x90] ss:$8 sps:$4 sm:$0xff]   ;;  %v4438_v26 = vld [vmem:[%s7264_s1 + $0xa4] ss:$8 sps:$4 sm:$0xff]   ;;  %v414_v42 = vrot.slane %v4898_v16, %v4951_v35 }
  0x1f   : > { %v4440_v27 = vld [vmem:[%s7264_s1 + $0xa0] ss:$8 sps:$4 sm:$0xff]   ;;  %v4441_v28 = vld [vmem:[%s7264_s1 + $0xb4] ss:$8 sps:$4 sm:$0xff]   ;;  %v4443_v29 = vld [vmem:[%s7264_s1 + $0xb0] ss:$8 sps:$4 sm:$0xff]  }
  0x20   : > { %v442_v20 = vpack.c.bf16 %v418_v17, %v418_v17  ;;  %v4444_v30 = vld [vmem:[%s7264_s1 + $0xc4] ss:$8 sps:$4 sm:$0xff]   ;;  %v4446_v31 = vld [vmem:[%s7264_s1 + $0xc0] ss:$8 sps:$4 sm:$0xff]   ;;  %v4447_v32 = vld [vmem:[%s7264_s1 + $0xd4] ss:$8 sps:$4 sm:$0xff]   ;;  %v441_v49 = vpack.c.bf16 %v414_v42, %v414_v42 }
  0x21   : > { %972 = vmatpush1.bf16.msra.mxu0 %v4416_v5  ;;  %v4449_v33 = vld [vmem:[%s7264_s1 + $0xd0] ss:$8 sps:$4 sm:$0xff]   ;;  %v4450_v34 = vld [vmem:[%s7264_s1 + $0xe4] ss:$8 sps:$4 sm:$0xff]   ;;  %v4452_v36 = vld [vmem:[%s7264_s1 + $0xe0] ss:$8 sps:$4 sm:$0xff]  }
  0x22   : > { %973 = vmatprep.subr.bf16.mxu0 %v4417_v6  ;;  %999 = vmatprep.mubr.bf16.mxu0 %v442_v20  ;;  %v425_v37 = vsub.s32 3, %v4878_v10  ;;  %v4453_v38 = vld [vmem:[%s7264_s1 + $0xf4] ss:$8 sps:$4 sm:$0xff]   ;;  %v4536_v40 = vld [vmem:[%s7266_s3] ss:$24 sps:$4 sm:$0xff]   ;;  %vm1508_vm1 = vcmask 1043456  }
  0x23   : > { %v4534_v39 = vld [vmem:[%s7266_s3 + $0x4] ss:$24 sps:$4 sm:$0xff]   ;;  %v4455_v41 = vld [vmem:[%s7264_s1 + $0xf0] ss:$8 sps:$4 sm:$0xff]   ;;  %v4537_v43 = vld [vmem:[%s7266_s3 + $0x34] ss:$24 sps:$4 sm:$0xff]  }
  0x24   : > { %v4458_v44 = vld [vmem:[%s7264_s1 + $0x104] ss:$8 sps:$4 sm:$0xff]   ;;  %v426_v45 = vrot.slane %v4898_v16, %v425_v37  ;;  %1527 = vmatprep.subr.bf16.mxu1 %v4534_v39  ;;  %v4539_v46 = vld [vmem:[%s7266_s3 + $0x30] ss:$24 sps:$4 sm:$0xff]   ;;  %v4461_v50 = vld [vmem:[%s7264_s1 + $0x114] ss:$8 sps:$4 sm:$0xff]  }
  0x25   : > { %974 = vmatpush1.bf16.msra.mxu0 %v4419_v8  ;;  %1528 = vmatpush1.bf16.msra.mxu1 %v4536_v40  ;;  %v4540_v47 = vld [vmem:[%s7266_s3 + $0x64] ss:$24 sps:$4 sm:$0xff]   ;;  %v4456_v48 = vld [vmem:[%s7264_s1 + $0x100] ss:$8 sps:$4 sm:$0xff]   ;;  %v4543_v53 = vld [vmem:[%s7266_s3 + $0x94] ss:$24 sps:$4 sm:$0xff]  }
  0x26   : > { %975 = vmatprep.subr.bf16.mxu0 %v4420_v9  ;;  %1529 = vmatprep.subr.bf16.mxu1 %v4537_v43  ;;  %v444_v51 = vpack.c.bf16 %v426_v45, %v426_v45  ;;  %v4542_v52 = vld [vmem:[%s7266_s3 + $0x60] ss:$24 sps:$4 sm:$0xff]   ;;  %v4464_v55 = vld [vmem:[%s7264_s1 + $0x124] ss:$8 sps:$4 sm:$0xff]   ;;  %v4545_v56 = vld [vmem:[%s7266_s3 + $0x90] ss:$24 sps:$4 sm:$0xff]  }
  0x27   : > { %v4459_v54 = vld [vmem:[%s7264_s1 + $0x110] ss:$8 sps:$4 sm:$0xff]   ;;  %v4546_v57 = vld [vmem:[%s7266_s3 + $0xc4] ss:$24 sps:$4 sm:$0xff]   ;;  %v4462_v58 = vld [vmem:[%s7264_s1 + $0x120] ss:$8 sps:$4 sm:$0xff]  }
  0x28   : > { %v4467_v59 = vld [vmem:[%s7264_s1 + $0x134] ss:$8 sps:$4 sm:$0xff]   ;;  %v4548_v60 = vld [vmem:[%s7266_s3 + $0xc0] ss:$24 sps:$4 sm:$0xff]   ;;  %v4470_v63 = vld [vmem:[%s7264_s1 + $0x144] ss:$8 sps:$4 sm:$0xff]  }
  0x29   : > { %976 = vmatpush1.bf16.msra.mxu0 %v4422_v11  ;;  %1530 = vmatpush1.bf16.msra.mxu1 %v4539_v46  ;;  %v4549_v61 = vld [vmem:[%s7266_s3 + $0xf4] ss:$24 sps:$4 sm:$0xff]   ;;  %v4465_v62 = vld [vmem:[%s7264_s1 + $0x130] ss:$8 sps:$4 sm:$0xff]   ;;  %v4552_v1 = vld [vmem:[%s7266_s3 + $0x124] ss:$24 sps:$4 sm:$0xff]  }
  0x2a   : > { %977 = vmatprep.subr.bf16.mxu0 %v4423_v12  ;;  %1531 = vmatprep.subr.bf16.mxu1 %v4540_v47  ;;  %v4551_v0 = vld [vmem:[%s7266_s3 + $0xf0] ss:$24 sps:$4 sm:$0xff]   ;;  %v4473_v3 = vld [vmem:[%s7264_s1 + $0x154] ss:$8 sps:$4 sm:$0xff]   ;;  %v4554_v4 = vld [vmem:[%s7266_s3 + $0x120] ss:$24 sps:$4 sm:$0xff]  }
  0x2b   : > { %v4468_v2 = vld [vmem:[%s7264_s1 + $0x140] ss:$8 sps:$4 sm:$0xff]   ;;  %v4555_v5 = vld [vmem:[%s7266_s3 + $0x154] ss:$24 sps:$4 sm:$0xff]   ;;  %v4471_v6 = vld [vmem:[%s7264_s1 + $0x150] ss:$8 sps:$4 sm:$0xff]  }
  0x2c   : > { %v4476_v7 = vld [vmem:[%s7264_s1 + $0x164] ss:$8 sps:$4 sm:$0xff]   ;;  %v4557_v8 = vld [vmem:[%s7266_s3 + $0x150] ss:$24 sps:$4 sm:$0xff]   ;;  %v4479_v12 = vld [vmem:[%s7264_s1 + $0x174] ss:$8 sps:$4 sm:$0xff]  }
  0x2d   : > { %978 = vmatpush1.bf16.msra.mxu0 %v4425_v14  ;;  %1532 = vmatpush1.bf16.msra.mxu1 %v4542_v52  ;;  %v4558_v9 = vld [vmem:[%s7266_s3 + $0x184] ss:$24 sps:$4 sm:$0xff]   ;;  %v4474_v11 = vld [vmem:[%s7264_s1 + $0x160] ss:$8 sps:$4 sm:$0xff]   ;;  %v4483_v20 = vld [vmem:[%s7264_s1 + $0x190] ss:$8 sps:$4 sm:$0xff]  }
  0x2e   : > { %979 = vmatprep.subr.bf16.mxu0 %v4426_v15  ;;  %1533 = vmatprep.subr.bf16.mxu1 %v4543_v53  ;;  %v4560_v14 = vld [vmem:[%s7266_s3 + $0x180] ss:$24 sps:$4 sm:$0xff]   ;;  %v4482_v17 = vld [vmem:[%s7264_s1 + $0x184] ss:$8 sps:$4 sm:$0xff]   ;;  %v4509_v43 = vld [vmem:[%s7264_s1 + $0x214] ss:$8 sps:$4 sm:$0xff]  }
  0x2f   : > { %v4477_v15 = vld [vmem:[%s7264_s1 + $0x170] ss:$8 sps:$4 sm:$0xff]   ;;  %v4506_v39 = vld [vmem:[%s7264_s1 + $0x204] ss:$8 sps:$4 sm:$0xff]   ;;  %v4510_v46 = vld [vmem:[%s7264_s1 + $0x220] ss:$8 sps:$4 sm:$0xff]  }
  0x30   : > { %v4512_v45 = vld [vmem:[%s7264_s1 + $0x224] ss:$8 sps:$4 sm:$0xff]   ;;  %v4515_v47 = vld [vmem:[%s7264_s1 + $0x234] ss:$8 sps:$4 sm:$0xff]   ;;  %v4519_v52 = vld [vmem:[%s7264_s1 + $0x250] ss:$8 sps:$4 sm:$0xff]  }
  0x31   : > { %980 = vmatpush1.bf16.msra.mxu0 %v4428_v18  ;;  %1534 = vmatpush1.bf16.msra.mxu1 %v4545_v56  ;;  %v4480_v18 = vld [vmem:[%s7264_s1 + $0x180] ss:$8 sps:$4 sm:$0xff]   ;;  %v4524_v53 = vld [vmem:[%s7264_s1 + $0x264] ss:$8 sps:$4 sm:$0xff]   ;;  %v4525_v56 = vld [vmem:[%s7264_s1 + $0x270] ss:$8 sps:$4 sm:$0xff]  }
  0x32   : > { %981 = vmatprep.subr.bf16.mxu0 %v4429_v19  ;;  %1535 = vmatprep.subr.bf16.mxu1 %v4546_v57  ;;  %v4485_v19 = vld [vmem:[%s7264_s1 + $0x194] ss:$8 sps:$4 sm:$0xff]   ;;  %v4530_v57 = vld [vmem:[%s7264_s1 + $0x284] ss:$8 sps:$4 sm:$0xff]   ;;  %vm1504_vm2 = vcmask 326656   ;;  %vm2739_vm3 = vcmask 556032  }
  0x35   : > { %982 = vmatpush1.bf16.msra.mxu0 %v4431_v21  ;;  %1536 = vmatpush1.bf16.msra.mxu1 %v4548_v60  ;;  %v4488_v21 = vld [vmem:[%s7264_s1 + $0x1a4] ss:$8 sps:$4 sm:$0xff]   ;;  %v4533_v60 = vld [vmem:[%s7264_s1 + $0x294] ss:$8 sps:$4 sm:$0xff]  }
  0x36   : > { %983 = vmatprep.subr.bf16.mxu0 %v4432_v22  ;;  %1537 = vmatprep.subr.bf16.mxu1 %v4549_v61  ;;  %v4486_v22 = vld [vmem:[%s7264_s1 + $0x1a0] ss:$8 sps:$4 sm:$0xff]  }
  0x39   : > { %984 = vmatpush1.bf16.msra.mxu0 %v4434_v23  ;;  %1538 = vmatpush1.bf16.msra.mxu1 %v4551_v0  ;;  %v4491_v23 = vld [vmem:[%s7264_s1 + $0x1b4] ss:$8 sps:$4 sm:$0xff]  }
  0x3a   : > { %985 = vmatprep.subr.bf16.mxu0 %v4435_v24  ;;  %1539 = vmatprep.subr.bf16.mxu1 %v4552_v1  ;;  %v4489_v24 = vld [vmem:[%s7264_s1 + $0x1b0] ss:$8 sps:$4 sm:$0xff]   ;;  %v4561_v0 = vld [vmem:[%s7266_s3 + $0x1b4] ss:$24 sps:$4 sm:$0xff]  }
  0x3b   : > { %v4563_v1 = vld [vmem:[%s7266_s3 + $0x1b0] ss:$24 sps:$4 sm:$0xff]  }
  0x3d   : > { %986 = vmatpush1.bf16.msra.mxu0 %v4437_v25  ;;  %1540 = vmatpush1.bf16.msra.mxu1 %v4554_v4  ;;  %v4494_v25 = vld [vmem:[%s7264_s1 + $0x1c4] ss:$8 sps:$4 sm:$0xff]  }
  0x3e   : > { %987 = vmatprep.subr.bf16.mxu0 %v4438_v26  ;;  %1541 = vmatprep.subr.bf16.mxu1 %v4555_v5  ;;  %v4492_v26 = vld [vmem:[%s7264_s1 + $0x1c0] ss:$8 sps:$4 sm:$0xff]   ;;  %v4568_v5 = vld [vmem:[%s7266_s3 + $0xc] ss:$24 sps:$4 sm:$0xff]  }
  0x41   : > { %988 = vmatpush1.bf16.msra.mxu0 %v4440_v27  ;;  %1542 = vmatpush1.bf16.msra.mxu1 %v4557_v8  ;;  %v4497_v27 = vld [vmem:[%s7264_s1 + $0x1d4] ss:$8 sps:$4 sm:$0xff]   ;;  %v2058_v8 = vld [vmem:[%s7268_s5] sm:$0xff] }
  0x42   : > { %989 = vmatprep.subr.bf16.mxu0 %v4441_v28  ;;  %1543 = vmatprep.subr.bf16.mxu1 %v4558_v9  ;;  %v4495_v28 = vld [vmem:[%s7264_s1 + $0x1d0] ss:$8 sps:$4 sm:$0xff]  }
  0x45   : > { %990 = vmatpush1.bf16.msra.mxu0 %v4443_v29  ;;  %1544 = vmatpush1.bf16.msra.mxu1 %v4560_v14  ;;  %v4500_v29 = vld [vmem:[%s7264_s1 + $0x1e4] ss:$8 sps:$4 sm:$0xff]   ;;  %v2065_v14 = vld [vmem:[%s7268_s5 + $0x38] sm:$0xff] }
  0x46   : > { %991 = vmatprep.subr.bf16.mxu0 %v4444_v30  ;;  %v421_v30 = vsub.s32 2, %v4878_v10  ;;  %1545 = vmatprep.subr.bf16.mxu1 %v4561_v0 }
  0x49   : > { %992 = vmatpush1.bf16.msra.mxu0 %v4446_v31  ;;  %v4498_v31 = vld [vmem:[%s7264_s1 + $0x1e0] ss:$8 sps:$4 sm:$0xff]   ;;  %1546 = vmatpush1.bf16.msra.mxu1 %v4563_v1 }
  0x4a   : > { %993 = vmatprep.subr.bf16.mxu0 %v4447_v32  ;;  %v433_v32 = vsub.s32 5, %v4878_v10 }
  0x4d   : > { %994 = vmatpush1.bf16.msra.mxu0 %v4449_v33  ;;  %v4503_v33 = vld [vmem:[%s7264_s1 + $0x1f4] ss:$8 sps:$4 sm:$0xff]  }
  0x4e   : > { %995 = vmatprep.subr.bf16.mxu0 %v4450_v34  ;;  %v422_v34 = vrot.slane %v4898_v16, %v421_v30 }
  0x50   : > { %v443_v40 = vpack.c.bf16 %v422_v34, %v422_v34  ;;  %v2075_v34 = vld [vmem:[%s7268_s5 + $0x88] sm:$0xff] }
  0x51   : > { %996 = vmatpush1.bf16.msra.mxu0 %v4452_v36  ;;  %v4501_v36 = vld [vmem:[%s7264_s1 + $0x1f0] ss:$8 sps:$4 sm:$0xff]  }
  0x52   : > { %997 = vmatprep.subr.bf16.mxu0 %v4453_v38  ;;  %v434_v38 = vrot.slane %v4898_v16, %v433_v32 }
  0x54   : > { %v446_v42 = vpack.c.bf16 %v434_v38, %v434_v38 }
  0x55   : > { %998 = vmatpush1.bf16.msra.mxu0 %v4455_v41  ;;  %v4504_v41 = vld [vmem:[%s7264_s1 + $0x200] ss:$8 sps:$4 sm:$0xff]  }
  0x56   : > { %1008 = vmatprep.subr.bf16.mxu0 %v4458_v44  ;;  %v4507_v44 = vld [vmem:[%s7264_s1 + $0x210] ss:$8 sps:$4 sm:$0xff]  }
  0x58   : > { %1000 = vmatmul.mubr.bf16.vlgmr.msra.gmra.mrb[0].mxu0 %v441_v49  ;;  %v4518_v49 = vld [vmem:[%s7264_s1 + $0x244] ss:$8 sps:$4 sm:$0xff]  }
  0x59   : > { %1009 = vmatpush1.bf16.msra.mxu0 %v4456_v48  ;;  %1040 = vmatprep.mubr.bf16.mxu0 %v444_v51  ;;  %v4513_v48 = vld [vmem:[%s7264_s1 + $0x230] ss:$8 sps:$4 sm:$0xff]   ;;  %v4521_v51 = vld [vmem:[%s7264_s1 + $0x254] ss:$8 sps:$4 sm:$0xff]  }
  0x5a   : > { %1010 = vmatprep.subr.bf16.mxu0 %v4461_v50  ;;  %v4516_v50 = vld [vmem:[%s7264_s1 + $0x240] ss:$8 sps:$4 sm:$0xff]  }
  0x5d   : > { %1011 = vmatpush1.bf16.msra.mxu0 %v4459_v54  ;;  %v4522_v54 = vld [vmem:[%s7264_s1 + $0x260] ss:$8 sps:$4 sm:$0xff]  }
  0x5e   : > { %1012 = vmatprep.subr.bf16.mxu0 %v4464_v55  ;;  %v4527_v55 = vld [vmem:[%s7264_s1 + $0x274] ss:$8 sps:$4 sm:$0xff]  }
  0x61   : > { %1013 = vmatpush1.bf16.msra.mxu0 %v4462_v58  ;;  %v429_v58 = vsub.s32 4, %v4878_v10  ;;  %v2222_v10 = vld [vmem:[%s7268_s5 + $0x520] sm:$0xff] }
  0x62   : > { %1014 = vmatprep.subr.bf16.mxu0 %v4467_v59  ;;  %v4528_v59 = vld [vmem:[%s7264_s1 + $0x280] ss:$8 sps:$4 sm:$0xff]  }
  0x63   : > { %v430_v61 = vrot.slane %v4898_v16, %v429_v58  ;;  %v1154_v16 = vld [vmem:[%s7266_s3 + $0x1e0] sm:$0xff] }
  0x65   : > { %1015 = vmatpush1.bf16.msra.mxu0 %v4465_v62  ;;  %v4531_v62 = vld [vmem:[%s7264_s1 + $0x290] ss:$8 sps:$4 sm:$0xff]  }
  0x66   : > { %1016 = vmatprep.subr.bf16.mxu0 %v4470_v63  ;;  %v445_v63 = vpack.c.bf16 %v430_v61, %v430_v61  ;;  %v2088_v61 = vld [vmem:[%s7268_s5 + $0xf0] sm:$0xff] }
  0x69   : > { %1017 = vmatpush1.bf16.msra.mxu0 %v4468_v2  ;;  %v4153_v2 = vcombine.high %v1154_v16, %v1154_v16 }
  0x6a   : > { %1018 = vmatprep.subr.bf16.mxu0 %v4473_v3  ;;  %v4152_v3 = vcombine.low %v1154_v16, %v1154_v16 }
  0x6b   : > { %4158 = vmatprep.subr.msk.bf16.mxu1 %vm1508_vm1, %v4153_v2 }
  0x6c   : > { %v1510_v4 = vsel %vm1508_vm1, %v4152_v3, 0  ;;  %v2090_v3 = vld [vmem:[%s7268_s5 + $0x100] sm:$0xff] }
  0x6d   : > { %1019 = vmatpush1.bf16.msra.mxu0 %v4471_v6  ;;  %1548 = vmatpush1.bf16.msra.mxu1 %v1510_v4  ;;  %v2059_v6 = vld [vmem:[%s7268_s5 + $0x8] sm:$0xff]  ;;  %v2092_v4 = vld [vmem:[%s7268_s5 + $0x110] sm:$0xff] }
  0x6e   : > { %1020 = vmatprep.subr.bf16.mxu0 %v4476_v7  ;;  %1568 = vmatprep.subr.bf16.mxu1 %v4568_v5  ;;  %v2061_v7 = vld [vmem:[%s7268_s5 + $0x18] sm:$0xff]  ;;  %v2095_v5 = vld [vmem:[%s7268_s5 + $0x128] sm:$0xff] }
  0x6f   : > { %v2227_v9 = vpack.c.bf16 %v2061_v7, %v2059_v6  ;;  %v2097_v6 = vld [vmem:[%s7268_s5 + $0x138] sm:$0xff] }
  0x71   : > { %1021 = vmatpush1.bf16.msra.mxu0 %v4474_v11  ;;  %v2060_v11 = vld [vmem:[%s7268_s5 + $0x10] sm:$0xff] }
  0x72   : > { %1022 = vmatprep.subr.bf16.mxu0 %v4479_v12  ;;  %v2063_v12 = vld [vmem:[%s7268_s5 + $0x28] sm:$0xff] }
  0x75   : > { %1023 = vmatpush1.bf16.msra.mxu0 %v4477_v15  ;;  %v2226_v15 = vpack.c.bf16 %v2060_v11, %v2058_v8  ;;  %v2242_v11 = vpack.c.bf16 %v2092_v4, %v2090_v3  ;;  %v4609_v3 = vld [vmem:[%s7266_s3 + $0xa4] ss:$24 sps:$4 sm:$0xff]   ;;  %v4607_v4 = vld [vmem:[%s7266_s3 + $0xa0] ss:$24 sps:$4 sm:$0xff]  }
  0x76   : > { %1024 = vmatprep.subr.bf16.mxu0 %v4482_v17  ;;  %v2229_v17 = vpack.c.bf16 %v2065_v14, %v2063_v12 }
  0x79   : > { %1025 = vmatpush1.bf16.msra.mxu0 %v4480_v18  ;;  %v2062_v18 = vld [vmem:[%s7268_s5 + $0x20] sm:$0xff] }
  0x7a   : > { %1026 = vmatprep.subr.bf16.mxu0 %v4485_v19  ;;  %v2064_v19 = vld [vmem:[%s7268_s5 + $0x30] sm:$0xff] }
  0x7d   : > { %1027 = vmatpush1.bf16.msra.mxu0 %v4483_v20  ;;  %v2067_v20 = vld [vmem:[%s7268_s5 + $0x48] sm:$0xff] }
  0x7e   : > { %1028 = vmatprep.subr.bf16.mxu0 %v4488_v21  ;;  %v2069_v21 = vld [vmem:[%s7268_s5 + $0x58] sm:$0xff] }
  0x81   : > { %1029 = vmatpush1.bf16.msra.mxu0 %v4486_v22  ;;  %v2228_v22 = vpack.c.bf16 %v2064_v19, %v2062_v18  ;;  %v2096_v18 = vld [vmem:[%s7268_s5 + $0x130] sm:$0xff] }
  0x82   : > { %1030 = vmatprep.subr.bf16.mxu0 %v4491_v23  ;;  %v2231_v23 = vpack.c.bf16 %v2069_v21, %v2067_v20 }
  0x85   : > { %1031 = vmatpush1.bf16.msra.mxu0 %v4489_v24  ;;  %v2066_v24 = vld [vmem:[%s7268_s5 + $0x40] sm:$0xff] }
  0x86   : > { %1032 = vmatprep.subr.bf16.mxu0 %v4494_v25  ;;  %v2068_v25 = vld [vmem:[%s7268_s5 + $0x50] sm:$0xff] }
  0x89   : > { %1033 = vmatpush1.bf16.msra.mxu0 %v4492_v26  ;;  %v2071_v26 = vld [vmem:[%s7268_s5 + $0x68] sm:$0xff] }
  0x8a   : > { %1034 = vmatprep.subr.bf16.mxu0 %v4497_v27  ;;  %v2073_v27 = vld [vmem:[%s7268_s5 + $0x78] sm:$0xff] }
  0x8d   : > { %1035 = vmatpush1.bf16.msra.mxu0 %v4495_v28  ;;  %v2230_v28 = vpack.c.bf16 %v2068_v25, %v2066_v24 }
  0x8e   : > { %1036 = vmatprep.subr.bf16.mxu0 %v4500_v29  ;;  %v2233_v29 = vpack.c.bf16 %v2073_v27, %v2071_v26  ;;  %v4566_v26 = vld [vmem:[%s7266_s3 + $0x8] ss:$24 sps:$4 sm:$0xff]  }
  0x8f   : > { %v2098_v27 = vld [vmem:[%s7268_s5 + $0x140] sm:$0xff] }
  0x91   : > { %1037 = vmatpush1.bf16.msra.mxu0 %v4498_v31  ;;  %v2070_v31 = vld [vmem:[%s7268_s5 + $0x60] sm:$0xff] }
  0x92   : > { %1038 = vmatprep.subr.bf16.mxu0 %v4503_v33  ;;  %v2072_v33 = vld [vmem:[%s7268_s5 + $0x70] sm:$0xff] }
  0x93   : > { %v2232_v38 = vpack.c.bf16 %v2072_v33, %v2070_v31  ;;  %v4571_v31 = vld [vmem:[%s7266_s3 + $0x3c] ss:$24 sps:$4 sm:$0xff]  }
  0x95   : > { %1039 = vmatpush1.bf16.msra.mxu0 %v4501_v36  ;;  %v2077_v36 = vld [vmem:[%s7268_s5 + $0x98] sm:$0xff] }
  0x96   : > { %1049 = vmatprep.subr.bf16.mxu0 %v4506_v39  ;;  %v2235_v39 = vpack.c.bf16 %v2077_v36, %v2075_v34  ;;  %v2103_v34 = vld [vmem:[%s7268_s5 + $0x168] sm:$0xff]  ;;  %v2105_v36 = vld [vmem:[%s7268_s5 + $0x178] sm:$0xff] }
  0x98   : > { %1041 = vmatmul.mubr.bf16.vlgmr.msra.gmra.mrb[0].mxu0 %v443_v40  ;;  %v2074_v40 = vld [vmem:[%s7268_s5 + $0x80] sm:$0xff] }
  0x99   : > { %1050 = vmatpush1.bf16.msra.mxu0 %v4504_v41  ;;  %4091 = vmatprep.mubr.msk.bf16.mxu0 %vm963_vm0, %v446_v42  ;;  %v2076_v41 = vld [vmem:[%s7268_s5 + $0x90] sm:$0xff]  ;;  %v2079_v42 = vld [vmem:[%s7268_s5 + $0xa8] sm:$0xff] }
  0x9a   : > { %1051 = vmatprep.subr.bf16.mxu0 %v4509_v43  ;;  %v2081_v43 = vld [vmem:[%s7268_s5 + $0xb8] sm:$0xff] }
  0x9d   : > { %1052 = vmatpush1.bf16.msra.mxu0 %v4507_v44  ;;  %v2234_v44 = vpack.c.bf16 %v2076_v41, %v2074_v40  ;;  %v2249_v40 = vpack.c.bf16 %v2105_v36, %v2103_v34  ;;  %v4574_v41 = vld [vmem:[%s7266_s3 + $0x6c] ss:$24 sps:$4 sm:$0xff]  }
  0x9e   : > { %1053 = vmatprep.subr.bf16.mxu0 %v4512_v45  ;;  %v2237_v45 = vpack.c.bf16 %v2081_v43, %v2079_v42  ;;  %v4572_v42 = vld [vmem:[%s7266_s3 + $0x68] ss:$24 sps:$4 sm:$0xff]   ;;  %v4577_v43 = vld [vmem:[%s7266_s3 + $0x9c] ss:$24 sps:$4 sm:$0xff]  }
  0x9f   : > { %v2127_v36 = vld [vmem:[%s7268_s5 + $0x228] sm:$0xff] }
  0xa1   : > { %1054 = vmatpush1.bf16.msra.mxu0 %v4510_v46  ;;  %v2078_v46 = vld [vmem:[%s7268_s5 + $0xa0] sm:$0xff] }
  0xa2   : > { %1055 = vmatprep.subr.bf16.mxu0 %v4515_v47  ;;  %v2080_v47 = vld [vmem:[%s7268_s5 + $0xb0] sm:$0xff] }
  0xa5   : > { %1056 = vmatpush1.bf16.msra.mxu0 %v4513_v48  ;;  %v2083_v48 = vld [vmem:[%s7268_s5 + $0xc8] sm:$0xff] }
  0xa6   : > { %1057 = vmatprep.subr.bf16.mxu0 %v4518_v49  ;;  %v2085_v49 = vld [vmem:[%s7268_s5 + $0xd8] sm:$0xff] }
  0xa9   : > { %1058 = vmatpush1.bf16.msra.mxu0 %v4516_v50  ;;  %v2236_v50 = vpack.c.bf16 %v2080_v47, %v2078_v46  ;;  %v4578_v46 = vld [vmem:[%s7266_s3 + $0xc8] ss:$24 sps:$4 sm:$0xff]   ;;  %v4583_v47 = vld [vmem:[%s7266_s3 + $0xfc] ss:$24 sps:$4 sm:$0xff]  }
  0xaa   : > { %1059 = vmatprep.subr.bf16.mxu0 %v4521_v51  ;;  %v2239_v51 = vpack.c.bf16 %v2085_v49, %v2083_v48  ;;  %v4581_v48 = vld [vmem:[%s7266_s3 + $0xf8] ss:$24 sps:$4 sm:$0xff]   ;;  %v4586_v49 = vld [vmem:[%s7266_s3 + $0x12c] ss:$24 sps:$4 sm:$0xff]  }
  0xad   : > { %1060 = vmatpush1.bf16.msra.mxu0 %v4519_v52  ;;  %v2082_v52 = vld [vmem:[%s7268_s5 + $0xc0] sm:$0xff] }
  0xae   : > { %1061 = vmatprep.subr.bf16.mxu0 %v4524_v53  ;;  %v2084_v53 = vld [vmem:[%s7268_s5 + $0xd0] sm:$0xff] }
  0xb1   : > { %1062 = vmatpush1.bf16.msra.mxu0 %v4522_v54  ;;  %v2087_v54 = vld [vmem:[%s7268_s5 + $0xe8] sm:$0xff] }
  0xb2   : > { %1063 = vmatprep.subr.bf16.mxu0 %v4527_v55  ;;  %v2089_v55 = vld [vmem:[%s7268_s5 + $0xf8] sm:$0xff] }
  0xb5   : > { %1064 = vmatpush1.bf16.msra.mxu0 %v4525_v56  ;;  %v2238_v56 = vpack.c.bf16 %v2084_v53, %v2082_v52  ;;  %v4587_v52 = vld [vmem:[%s7266_s3 + $0x158] ss:$24 sps:$4 sm:$0xff]   ;;  %v4592_v53 = vld [vmem:[%s7266_s3 + $0x18c] ss:$24 sps:$4 sm:$0xff]  }
  0xb6   : > { %1065 = vmatprep.subr.bf16.mxu0 %v4530_v57  ;;  %v531_v57 = vld [vmem:[%s7265_s2] sm:$0x3] }
  0xb7   : > { %v956_v0 = vrot.slane %v531_v57, %v4951_v35  ;;  %v960_v16 = vrot.slane %v531_v57, %v4887_v13  ;;  %v4593_v57 = vld [vmem:[%s7266_s3 + $0x1b8] ss:$24 sps:$4 sm:$0xff]  }
  0xb9   : > { %1066 = vmatpush1.bf16.msra.mxu0 %v4528_v59  ;;  %v2241_v59 = vpack.c.bf16 %v2089_v55, %v2087_v54  ;;  %v4590_v54 = vld [vmem:[%s7266_s3 + $0x188] ss:$24 sps:$4 sm:$0xff]   ;;  %v4595_v55 = vld [vmem:[%s7266_s3 + $0x1bc] ss:$24 sps:$4 sm:$0xff]  }
  0xba   : > { %1067 = vmatprep.subr.bf16.mxu0 %v4533_v60  ;;  %v2086_v60 = vld [vmem:[%s7268_s5 + $0xe0] sm:$0xff] }
  0xbb   : > { %v2240_v1 = vpack.c.bf16 %v2088_v61, %v2086_v60 }
  0xbd   : > { %1068 = vmatpush1.bf16.msra.mxu0 %v4531_v62  ;;  %v2091_v62 = vld [vmem:[%s7268_s5 + $0x108] sm:$0xff] }
  0xbe   : > { %2340 = vmatprep.subr.bf16.mxu0 %v2227_v9 }
  0xc0   : > { %1082 = vmatmul.mubr.bf16.vlgmr.msra.gmra.mrb[0].mxu0 %v445_v63  ;;  %v2093_v63 = vld [vmem:[%s7268_s5 + $0x118] sm:$0xff] }
  0xc1   : > { %2341 = vmatpush1.bf16.msra.mxu0 %v2226_v15  ;;  %v2243_v2 = vpack.c.bf16 %v2093_v63, %v2091_v62  ;;  %v2245_v15 = vpack.c.bf16 %v2097_v6, %v2095_v5  ;;  %v4600_v62 = vld [vmem:[%s7266_s3 + $0x14] ss:$24 sps:$4 sm:$0xff]   ;;  %v4598_v63 = vld [vmem:[%s7266_s3 + $0x10] ss:$24 sps:$4 sm:$0xff]  }
  0xc2   : > { %2342 = vmatprep.subr.bf16.mxu0 %v2229_v17  ;;  %v2094_v17 = vld [vmem:[%s7268_s5 + $0x120] sm:$0xff]  ;;  %v4612_v5 = vld [vmem:[%s7266_s3 + $0xd4] ss:$24 sps:$4 sm:$0xff]   ;;  %v4610_v6 = vld [vmem:[%s7266_s3 + $0xd0] ss:$24 sps:$4 sm:$0xff]  }
  0xc3   : > { %v2244_v24 = vpack.c.bf16 %v2096_v18, %v2094_v17  ;;  %v4622_v17 = vld [vmem:[%s7266_s3 + $0x190] ss:$24 sps:$4 sm:$0xff]   ;;  %v4627_v18 = vld [vmem:[%s7266_s3 + $0x1c4] ss:$24 sps:$4 sm:$0xff]  }
  0xc5   : > { %2343 = vmatpush1.bf16.msra.mxu0 %v2228_v22  ;;  %v2099_v22 = vld [vmem:[%s7268_s5 + $0x148] sm:$0xff] }
  0xc6   : > { %2344 = vmatprep.subr.bf16.mxu0 %v2231_v23  ;;  %v2101_v23 = vld [vmem:[%s7268_s5 + $0x158] sm:$0xff] }
  0xc7   : > { %v2247_v33 = vpack.c.bf16 %v2101_v23, %v2099_v22  ;;  %v2123_v23 = vld [vmem:[%s7268_s5 + $0x208] sm:$0xff] }
  0xc9   : > { %2345 = vmatpush1.bf16.msra.mxu0 %v2230_v28  ;;  %v2100_v28 = vld [vmem:[%s7268_s5 + $0x150] sm:$0xff] }
  0xca   : > { %2346 = vmatprep.subr.bf16.mxu0 %v2233_v29 }
  0xcd   : > { %2347 = vmatpush1.bf16.msra.mxu0 %v2232_v38  ;;  %v2246_v38 = vpack.c.bf16 %v2100_v28, %v2098_v27 }
  0xce   : > { %2348 = vmatprep.subr.bf16.mxu0 %v2235_v39  ;;  %v4569_v39 = vld [vmem:[%s7266_s3 + $0x38] ss:$24 sps:$4 sm:$0xff]  }
  0xd1   : > { %2349 = vmatpush1.bf16.msra.mxu0 %v2234_v44  ;;  %v4575_v44 = vld [vmem:[%s7266_s3 + $0x98] ss:$24 sps:$4 sm:$0xff]  }
  0xd2   : > { %2350 = vmatprep.subr.bf16.mxu0 %v2237_v45  ;;  %v4580_v45 = vld [vmem:[%s7266_s3 + $0xcc] ss:$24 sps:$4 sm:$0xff]  }
  0xd5   : > { %2351 = vmatpush1.bf16.msra.mxu0 %v2236_v50  ;;  %v4584_v50 = vld [vmem:[%s7266_s3 + $0x128] ss:$24 sps:$4 sm:$0xff]  }
  0xd6   : > { %2352 = vmatprep.subr.bf16.mxu0 %v2239_v51  ;;  %v4589_v51 = vld [vmem:[%s7266_s3 + $0x15c] ss:$24 sps:$4 sm:$0xff]  }
  0xd9   : > { %2353 = vmatpush1.bf16.msra.mxu0 %v2238_v56  ;;  %v1155_v56 = vld [vmem:[%s7266_s3 + $0x1e8] sm:$0xff] }
  0xda   : > { %2354 = vmatprep.subr.bf16.mxu0 %v2241_v59  ;;  %v4155_v59 = vcombine.high %v1155_v56, %v1155_v56  ;;  %v4154_v60 = vcombine.low %v1155_v56, %v1155_v56  ;;  %v2130_v56 = vld [vmem:[%s7268_s5 + $0x240] sm:$0xff] }
  0xdc   : > { %v1516_v61 = vsel %vm1508_vm1, %v4154_v60, 0 }
  0xdd   : > { %2355 = vmatpush1.bf16.msra.mxu0 %v2240_v1  ;;  %v4601_v1 = vld [vmem:[%s7266_s3 + $0x40] ss:$24 sps:$4 sm:$0xff]  }
  0xde   : > { %2356 = vmatprep.subr.bf16.mxu0 %v2243_v2  ;;  %v4604_v2 = vld [vmem:[%s7266_s3 + $0x70] ss:$24 sps:$4 sm:$0xff]  }
  0xe1   : > { %2357 = vmatpush1.bf16.msra.mxu0 %v2242_v11  ;;  %v4616_v11 = vld [vmem:[%s7266_s3 + $0x130] ss:$24 sps:$4 sm:$0xff]  }
  0xe2   : > { %2358 = vmatprep.subr.bf16.mxu0 %v2245_v15  ;;  %v4624_v15 = vld [vmem:[%s7266_s3 + $0x194] ss:$24 sps:$4 sm:$0xff]  }
  0xe5   : > { %2359 = vmatpush1.bf16.msra.mxu0 %v2244_v24  ;;  %v2125_v24 = vld [vmem:[%s7268_s5 + $0x218] sm:$0xff] }
  0xe6   : > { %2360 = vmatprep.subr.bf16.mxu0 %v2247_v33  ;;  %v5499_v28 = vpack.c.bf16 %v2125_v24, %v2123_v23  ;;  %v2124_v33 = vld [vmem:[%s7268_s5 + $0x210] sm:$0xff]  ;;  %v2143_v23 = vld [vmem:[%s7268_s5 + $0x2a8] sm:$0xff]  ;;  %v2145_v24 = vld [vmem:[%s7268_s5 + $0x2b8] sm:$0xff] }
  0xe9   : > { %2361 = vmatpush1.bf16.msra.mxu0 %v2246_v38  ;;  %v2129_v38 = vld [vmem:[%s7268_s5 + $0x238] sm:$0xff] }
  0xea   : > { %2362 = vmatprep.subr.bf16.mxu0 %v2249_v40 }
 0x193   : > { %v1083_v7 = vpop.f32.mrb[0].mxu0 }
 0x194   : > { %v4255_v8 = vadd.f32 %v1083_v7, %v956_v0  ;;  %v1085_v9 = vpop.f32.mrb[1].mxu0  ;;  %v4603_v0 = vld [vmem:[%s7266_s3 + $0x44] ss:$24 sps:$4 sm:$0xff]  }
 0x195   : > { %v4256_v12 = vadd.f32 %v1085_v9, %v960_v16  ;;  %v1087_v14 = vpop.f32.mrb[2].mxu0  ;;  %v4606_v16 = vld [vmem:[%s7266_s3 + $0x74] ss:$24 sps:$4 sm:$0xff]   ;;  %v4615_v7 = vld [vmem:[%s7266_s3 + $0x104] ss:$24 sps:$4 sm:$0xff]  }
 0x196   : > { %v1090_v19 = vmax.f32 %v4255_v8, 0.0  ;;  %v1088_v20 = vpop.f32.mrb[3].mxu0  ;;  %v4613_v8 = vld [vmem:[%s7266_s3 + $0x100] ss:$24 sps:$4 sm:$0xff]   ;;  %v4618_v9 = vld [vmem:[%s7266_s3 + $0x134] ss:$24 sps:$4 sm:$0xff]  }
 0x197   : > { %v1091_v21 = vmax.f32 %v4256_v12, 0.0  ;;  %v4621_v12 = vld [vmem:[%s7266_s3 + $0x164] ss:$24 sps:$4 sm:$0xff]   ;;  %v4619_v14 = vld [vmem:[%s7266_s3 + $0x160] ss:$24 sps:$4 sm:$0xff]  }
 0x198   : > { %v5347_v29 = vpack.c.bf16 %v1090_v19, %v1090_v19  ;;  %v1156_v19 = vld [vmem:[%s7266_s3 + $0x1f0] sm:$0xff]  ;;  %v4625_v20 = vld [vmem:[%s7266_s3 + $0x1c0] ss:$24 sps:$4 sm:$0xff]  }
 0x199   : > { %v5336_v25 = vpack.c.bf16 %v1091_v21, %v1091_v21  ;;  %v4157_v21 = vcombine.high %v1156_v19, %v1156_v19  ;;  %v4156_v22 = vcombine.low %v1156_v19, %v1156_v19 }
 0x19b   : > { %4159 = vmatprep.mubr.msk.bf16.mxu1 %vm1504_vm2, %v5336_v25  ;;  %v1522_v27 = vsel %vm1508_vm1, %v4156_v22, 0 }
 0x19c   : > { %1560 = vmatmul.mubr.bf16.vlgmr.msra.gmra.mrb[0].mxu1 %v5347_v29 }
 0x19d   : > { %1569 = vmatpush1.bf16.msra.mxu1 %v4566_v26  ;;  %4161 = vmatprep.mubr.msk.bf16.mxu1 %vm1504_vm2, %v5336_v25  ;;  %v2104_v26 = vld [vmem:[%s7268_s5 + $0x170] sm:$0xff] }
 0x19e   : > { %1570 = vmatprep.subr.bf16.mxu1 %v4571_v31  ;;  %v2122_v31 = vld [vmem:[%s7268_s5 + $0x200] sm:$0xff] }
 0x19f   : > { %v5516_v40 = vpack.c.bf16 %v2124_v33, %v2122_v31  ;;  %v2144_v31 = vld [vmem:[%s7268_s5 + $0x2b0] sm:$0xff]  ;;  %v2147_v33 = vld [vmem:[%s7268_s5 + $0x2c8] sm:$0xff] }
 0x1a1   : > { %1571 = vmatpush1.bf16.msra.mxu1 %v4569_v39  ;;  %v2107_v39 = vld [vmem:[%s7268_s5 + $0x188] sm:$0xff] }
 0x1a2   : > { %1572 = vmatprep.subr.bf16.mxu1 %v4574_v41  ;;  %v2109_v41 = vld [vmem:[%s7268_s5 + $0x198] sm:$0xff] }
 0x1a5   : > { %1573 = vmatpush1.bf16.msra.mxu1 %v4572_v42  ;;  %v2106_v42 = vld [vmem:[%s7268_s5 + $0x180] sm:$0xff] }
 0x1a6   : > { %1574 = vmatprep.subr.bf16.mxu1 %v4577_v43  ;;  %v2108_v43 = vld [vmem:[%s7268_s5 + $0x190] sm:$0xff] }
 0x1a9   : > { %1575 = vmatpush1.bf16.msra.mxu1 %v4575_v44  ;;  %v5528_v44 = vpack.c.bf16 %v2129_v38, %v2127_v36 }
 0x1aa   : > { %1576 = vmatprep.subr.bf16.mxu1 %v4580_v45  ;;  %v2126_v45 = vld [vmem:[%s7268_s5 + $0x220] sm:$0xff] }
 0x1ad   : > { %1577 = vmatpush1.bf16.msra.mxu1 %v4578_v46  ;;  %v2128_v46 = vld [vmem:[%s7268_s5 + $0x230] sm:$0xff] }
 0x1ae   : > { %1578 = vmatprep.subr.bf16.mxu1 %v4583_v47  ;;  %v2251_v47 = vpack.c.bf16 %v2109_v41, %v2107_v39  ;;  %v2148_v39 = vld [vmem:[%s7268_s5 + $0x2d0] sm:$0xff]  ;;  %v2151_v41 = vld [vmem:[%s7268_s5 + $0x2e8] sm:$0xff] }
 0x1b1   : > { %1579 = vmatpush1.bf16.msra.mxu1 %v4581_v48  ;;  %v2250_v48 = vpack.c.bf16 %v2108_v43, %v2106_v42  ;;  %v2153_v42 = vld [vmem:[%s7268_s5 + $0x2f8] sm:$0xff] }
 0x1b2   : > { %1580 = vmatprep.subr.bf16.mxu1 %v4586_v49  ;;  %v2131_v49 = vld [vmem:[%s7268_s5 + $0x248] sm:$0xff] }
 0x1b5   : > { %1581 = vmatpush1.bf16.msra.mxu1 %v4584_v50  ;;  %v2133_v50 = vld [vmem:[%s7268_s5 + $0x258] sm:$0xff] }
 0x1b6   : > { %1582 = vmatprep.subr.bf16.mxu1 %v4589_v51  ;;  %v2111_v51 = vld [vmem:[%s7268_s5 + $0x1a8] sm:$0xff] }
 0x1b9   : > { %1583 = vmatpush1.bf16.msra.mxu1 %v4587_v52  ;;  %v5547_v52 = vpack.c.bf16 %v2128_v46, %v2126_v45  ;;  %v5674_v45 = vpack.c.bf16 %v2153_v42, %v2151_v41  ;;  %v2150_v46 = vld [vmem:[%s7268_s5 + $0x2e0] sm:$0xff] }
 0x1ba   : > { %1584 = vmatprep.subr.bf16.mxu1 %v4592_v53  ;;  %v2113_v53 = vld [vmem:[%s7268_s5 + $0x1b8] sm:$0xff]  ;;  %v2178_v41 = vld [vmem:[%s7268_s5 + $0x3c0] sm:$0xff] }
 0x1bd   : > { %1585 = vmatpush1.bf16.msra.mxu1 %v4590_v54  ;;  %v2110_v54 = vld [vmem:[%s7268_s5 + $0x1a0] sm:$0xff] }
 0x1be   : > { %1586 = vmatprep.subr.bf16.mxu1 %v4595_v55  ;;  %v5559_v55 = vpack.c.bf16 %v2133_v50, %v2131_v49  ;;  %v2157_v49 = vld [vmem:[%s7268_s5 + $0x318] sm:$0xff] }
 0x1c1   : > { %1587 = vmatpush1.bf16.msra.mxu1 %v4593_v57  ;;  %v2132_v57 = vld [vmem:[%s7268_s5 + $0x250] sm:$0xff] }
 0x1c2   : > { %4160 = vmatprep.subr.msk.bf16.mxu1 %vm1508_vm1, %v4155_v59  ;;  %v2253_v59 = vpack.c.bf16 %v2113_v53, %v2111_v51  ;;  %v2154_v53 = vld [vmem:[%s7268_s5 + $0x300] sm:$0xff] }
 0x1c5   : > { %1589 = vmatpush1.bf16.msra.mxu1 %v1516_v61  ;;  %v2135_v61 = vld [vmem:[%s7268_s5 + $0x268] sm:$0xff] }
 0x1c6   : > { %1609 = vmatprep.subr.bf16.mxu1 %v4600_v62  ;;  %v2137_v62 = vld [vmem:[%s7268_s5 + $0x278] sm:$0xff] }
 0x1c8   : > { %1601 = vmatmul.mubr.bf16.vlgmr.msra.gmra.mrb[4].mxu1 %v5347_v29 }
 0x1c9   : > { %1610 = vmatpush1.bf16.msra.mxu1 %v4598_v63  ;;  %4163 = vmatprep.mubr.msk.bf16.mxu1 %vm1504_vm2, %v5336_v25  ;;  %v2102_v25 = vld [vmem:[%s7268_s5 + $0x160] sm:$0xff]  ;;  %v2115_v63 = vld [vmem:[%s7268_s5 + $0x1c8] sm:$0xff] }
 0x1ca   : > { %1611 = vmatprep.subr.bf16.mxu1 %v4603_v0  ;;  %v2248_v34 = vpack.c.bf16 %v2104_v26, %v2102_v25  ;;  %v5577_v0 = vpack.c.bf16 %v2132_v57, %v2130_v56  ;;  %v5637_v26 = vpack.c.bf16 %v2145_v24, %v2143_v23  ;;  %v2161_v56 = vld [vmem:[%s7268_s5 + $0x338] sm:$0xff]  ;;  %v2175_v23 = vld [vmem:[%s7268_s5 + $0x3a8] sm:$0xff] }
 0x1cb   : > { %v2177_v24 = vld [vmem:[%s7268_s5 + $0x3b8] sm:$0xff] }
 0x1cc   : > { %2363 = vmatpush1.bf16.msra.mxu0 %v2248_v34  ;;  %v2149_v34 = vld [vmem:[%s7268_s5 + $0x2d8] sm:$0xff] }
 0x1cd   : > { %1612 = vmatpush1.bf16.msra.mxu1 %v4601_v1  ;;  %2364 = vmatprep.subr.bf16.mxu0 %v2251_v47  ;;  %v2117_v1 = vld [vmem:[%s7268_s5 + $0x1d8] sm:$0xff]  ;;  %v5656_v38 = vpack.c.bf16 %v2149_v34, %v2147_v33  ;;  %v2152_v47 = vld [vmem:[%s7268_s5 + $0x2f0] sm:$0xff] }
 0x1ce   : > { %1613 = vmatprep.subr.bf16.mxu1 %v4606_v16  ;;  %v2114_v16 = vld [vmem:[%s7268_s5 + $0x1c0] sm:$0xff]  ;;  %v5689_v50 = vpack.c.bf16 %v2152_v47, %v2150_v46  ;;  %v2176_v33 = vld [vmem:[%s7268_s5 + $0x3b0] sm:$0xff]  ;;  %v2183_v47 = vld [vmem:[%s7268_s5 + $0x3e8] sm:$0xff] }
 0x1cf   : > { %v2180_v46 = vld [vmem:[%s7268_s5 + $0x3d0] sm:$0xff] }
 0x1d0   : > { %2365 = vmatpush1.bf16.msra.mxu0 %v2250_v48  ;;  %v2155_v48 = vld [vmem:[%s7268_s5 + $0x308] sm:$0xff] }
 0x1d1   : > { %1614 = vmatpush1.bf16.msra.mxu1 %v4604_v2  ;;  %2366 = vmatprep.subr.bf16.mxu0 %v2253_v59  ;;  %v2116_v2 = vld [vmem:[%s7268_s5 + $0x1d0] sm:$0xff]  ;;  %v5692_v51 = vpack.c.bf16 %v2157_v49, %v2155_v48  ;;  %v2185_v48 = vld [vmem:[%s7268_s5 + $0x3f8] sm:$0xff]  ;;  %v5815_v49 = vpack.c.bf16 %v2180_v46, %v2178_v41 }
 0x1d2   : > { %1615 = vmatprep.subr.bf16.mxu1 %v4609_v3  ;;  %v5589_v3 = vpack.c.bf16 %v2137_v62, %v2135_v61  ;;  %v2160_v61 = vld [vmem:[%s7268_s5 + $0x330] sm:$0xff]  ;;  %v2163_v62 = vld [vmem:[%s7268_s5 + $0x348] sm:$0xff] }
 0x1d5   : > { %1616 = vmatpush1.bf16.msra.mxu1 %v4607_v4  ;;  %v2134_v4 = vld [vmem:[%s7268_s5 + $0x260] sm:$0xff] }
 0x1d6   : > { %1617 = vmatprep.subr.bf16.mxu1 %v4612_v5  ;;  %v2136_v5 = vld [vmem:[%s7268_s5 + $0x270] sm:$0xff] }
 0x1d9   : > { %1618 = vmatpush1.bf16.msra.mxu1 %v4610_v6  ;;  %v2255_v6 = vpack.c.bf16 %v2117_v1, %v2115_v63  ;;  %v2165_v63 = vld [vmem:[%s7268_s5 + $0x358] sm:$0xff] }
 0x1da   : > { %1619 = vmatprep.subr.bf16.mxu1 %v4615_v7  ;;  %v2254_v7 = vpack.c.bf16 %v2116_v2, %v2114_v16  ;;  %v5728_v16 = vpack.c.bf16 %v2165_v63, %v2163_v62  ;;  %v2162_v2 = vld [vmem:[%s7268_s5 + $0x340] sm:$0xff] }
 0x1db   : > { %v5840_v63 = vld [vmem:[%s7267_s4] sm:$0x3f] }
 0x1dd   : > { %1620 = vmatpush1.bf16.msra.mxu1 %v4613_v8  ;;  %v2139_v8 = vld [vmem:[%s7268_s5 + $0x288] sm:$0xff] }
 0x1de   : > { %1621 = vmatprep.subr.bf16.mxu1 %v4618_v9  ;;  %v2141_v9 = vld [vmem:[%s7268_s5 + $0x298] sm:$0xff] }
 0x1df   : > { %v5619_v19 = vpack.c.bf16 %v2141_v9, %v2139_v8  ;;  %v2166_v9 = vld [vmem:[%s7268_s5 + $0x360] sm:$0xff] }
 0x1e1   : > { %1622 = vmatpush1.bf16.msra.mxu1 %v4616_v11  ;;  %v2119_v11 = vld [vmem:[%s7268_s5 + $0x1e8] sm:$0xff] }
 0x1e2   : > { %1623 = vmatprep.subr.bf16.mxu1 %v4621_v12  ;;  %v2121_v12 = vld [vmem:[%s7268_s5 + $0x1f8] sm:$0xff] }
 0x1e5   : > { %1624 = vmatpush1.bf16.msra.mxu1 %v4619_v14  ;;  %v5610_v14 = vpack.c.bf16 %v2136_v5, %v2134_v4  ;;  %v2164_v4 = vld [vmem:[%s7268_s5 + $0x350] sm:$0xff]  ;;  %v2167_v5 = vld [vmem:[%s7268_s5 + $0x368] sm:$0xff] }
 0x1e6   : > { %1625 = vmatprep.subr.bf16.mxu1 %v4624_v15  ;;  %v2257_v15 = vpack.c.bf16 %v2121_v12, %v2119_v11  ;;  %v2168_v11 = vld [vmem:[%s7268_s5 + $0x370] sm:$0xff] }
 0x1e7   : > { %v5755_v12 = vpack.c.bf16 %v2168_v11, %v2166_v9 }
 0x1e9   : > { %1626 = vmatpush1.bf16.msra.mxu1 %v4622_v17  ;;  %v2118_v17 = vld [vmem:[%s7268_s5 + $0x1e0] sm:$0xff] }
 0x1ea   : > { %1627 = vmatprep.subr.bf16.mxu1 %v4627_v18  ;;  %v2120_v18 = vld [vmem:[%s7268_s5 + $0x1f0] sm:$0xff] }
 0x1eb   : > { %v2256_v22 = vpack.c.bf16 %v2120_v18, %v2118_v17  ;;  %v2173_v17 = vld [vmem:[%s7268_s5 + $0x398] sm:$0xff] }
 0x1ed   : > { %1628 = vmatpush1.bf16.msra.mxu1 %v4625_v20  ;;  %v2138_v20 = vld [vmem:[%s7268_s5 + $0x280] sm:$0xff] }
 0x1ee   : > { %4162 = vmatprep.subr.msk.bf16.mxu1 %vm1508_vm1, %v4157_v21  ;;  %v2140_v21 = vld [vmem:[%s7268_s5 + $0x290] sm:$0xff] }
 0x1ef   : > { %v5634_v25 = vpack.c.bf16 %v2140_v21, %v2138_v20  ;;  %v2170_v20 = vld [vmem:[%s7268_s5 + $0x380] sm:$0xff]  ;;  %v2172_v21 = vld [vmem:[%s7268_s5 + $0x390] sm:$0xff] }
 0x1f1   : > { %1630 = vmatpush1.bf16.msra.mxu1 %v1522_v27  ;;  %v2142_v27 = vld [vmem:[%s7268_s5 + $0x2a0] sm:$0xff] }
 0x1f2   : > { %4223 = vmatprep.subr.bf16.mxu1 %v5499_v28  ;;  %v5653_v36 = vpack.c.bf16 %v2144_v31, %v2142_v27  ;;  %v5782_v27 = vpack.c.bf16 %v2177_v24, %v2175_v23  ;;  %v2174_v31 = vld [vmem:[%s7268_s5 + $0x3a0] sm:$0xff] }
 0x1f3   : > { %v5791_v34 = vpack.c.bf16 %v2176_v33, %v2174_v31  ;;  %v1674_v31 = vld [vmem:[%s7269_s6] sm:$0xff]  ;;  %v1677_v33 = vld [vmem:[%s7269_s6 + $0x18] sm:$0xff] }
 0x1f4   : > { %1642 = vmatmul.mubr.bf16.vlgmr.msra.gmra.mrb[8].mxu1 %v5347_v29  ;;  %v2112_v29 = vld [vmem:[%s7268_s5 + $0x1b0] sm:$0xff] }
 0x1f5   : > { %4239 = vmatpush1.bf16.msra.mxu1 %v5516_v40  ;;  %v2252_v60 = vpack.c.bf16 %v2112_v29, %v2110_v54  ;;  %v2156_v54 = vld [vmem:[%s7268_s5 + $0x310] sm:$0xff]  ;;  %v2159_v29 = vld [vmem:[%s7268_s5 + $0x328] sm:$0xff] }
 0x1f6   : > { %4224 = vmatprep.subr.bf16.mxu1 %v5528_v44  ;;  %v5707_v57 = vpack.c.bf16 %v2156_v54, %v2154_v53  ;;  %v5710_v59 = vpack.c.bf16 %v2161_v56, %v2159_v29  ;;  %v5818_v53 = vpack.c.bf16 %v2185_v48, %v2183_v47  ;;  %v2182_v54 = vld [vmem:[%s7268_s5 + $0x3e0] sm:$0xff]  ;;  %v2184_v29 = vld [vmem:[%s7268_s5 + $0x3f0] sm:$0xff]  ;;  %v1734_v47 = vunpack.c.l.bf16 %v1674_v31 }
 0x1f7   : > { %2367 = vmatpush1.bf16.msra.mxu0 %v2252_v60  ;;  %v2158_v60 = vld [vmem:[%s7268_s5 + $0x320] sm:$0xff]  ;;  %v5827_v56 = vpack.c.bf16 %v2184_v29, %v2182_v54  ;;  %v1735_v48 = vunpack.c.h.bf16 %v1674_v31  ;;  %v1740_v54 = vunpack.c.l.bf16 %v1677_v33 }
 0x1f8   : > { %2368 = vmatprep.subr.bf16.mxu0 %v2255_v6  ;;  %v5725_v1 = vpack.c.bf16 %v2160_v61, %v2158_v60  ;;  %v2169_v6 = vld [vmem:[%s7268_s5 + $0x378] sm:$0xff]  ;;  %v2187_v60 = vld [vmem:[%s7268_s5 + $0x408] sm:$0xff] }
 0x1f9   : > { %4240 = vmatpush1.bf16.msra.mxu1 %v5547_v52  ;;  %v5746_v8 = vpack.c.bf16 %v2169_v6, %v2167_v5  ;;  %v2189_v61 = vld [vmem:[%s7268_s5 + $0x418] sm:$0xff] }
 0x1fa   : > { %4225 = vmatprep.subr.bf16.mxu1 %v5559_v55  ;;  %v2291_v62 = vpack.c.bf16 %v2189_v61, %v2187_v60  ;;  %v1741_v60 = vunpack.c.h.bf16 %v1677_v33 }
 0x1fb   : > { %2369 = vmatpush1.bf16.msra.mxu0 %v2254_v7  ;;  %v5743_v7 = vpack.c.bf16 %v2164_v4, %v2162_v2  ;;  %v1477_v2 = vrot.slane %v5840_v63, %v4951_v35  ;;  %v1481_v4 = vrot.slane %v5840_v63, %v4887_v13  ;;  %v1680_v13 = vld [vmem:[%s7269_s6 + $0x30] sm:$0xff] }
 0x1fc   : > { %2370 = vmatprep.subr.bf16.mxu0 %v2257_v15  ;;  %v2171_v15 = vld [vmem:[%s7268_s5 + $0x388] sm:$0xff]  ;;  %v1747_v61 = vunpack.c.h.bf16 %v1680_v13  ;;  %v1746_v31 = vunpack.c.l.bf16 %v1680_v13  ;;  %v1692_v13 = vld [vmem:[%s7269_s6 + $0x90] sm:$0xff] }
 0x1fd   : > { %4241 = vmatpush1.bf16.msra.mxu1 %v5577_v0  ;;  %v5764_v18 = vpack.c.bf16 %v2173_v17, %v2171_v15 }
 0x1fe   : > { %4226 = vmatprep.subr.bf16.mxu1 %v5589_v3 }
 0x1ff   : > { %2371 = vmatpush1.bf16.msra.mxu0 %v2256_v22  ;;  %v5773_v22 = vpack.c.bf16 %v2172_v21, %v2170_v20 }
 0x200   : > { %2473 = vmatprep.subr.bf16.mxu0 %v5499_v28  ;;  %v2146_v28 = vld [vmem:[%s7268_s5 + $0x2c0] sm:$0xff] }
 0x201   : > { %4242 = vmatpush1.bf16.msra.mxu1 %v5610_v14  ;;  %v5671_v43 = vpack.c.bf16 %v2148_v39, %v2146_v28  ;;  %v2179_v28 = vld [vmem:[%s7268_s5 + $0x3c8] sm:$0xff]  ;;  %v2181_v39 = vld [vmem:[%s7268_s5 + $0x3d8] sm:$0xff] }
 0x202   : > { %4227 = vmatprep.subr.bf16.mxu1 %v5619_v19  ;;  %v5803_v42 = vpack.c.bf16 %v2181_v39, %v2179_v28  ;;  %v1683_v39 = vld [vmem:[%s7269_s6 + $0x48] sm:$0xff] }
 0x203   : > { %v1752_v33 = vunpack.c.l.bf16 %v1683_v39 }
 0x205   : > { %4243 = vmatpush1.bf16.msra.mxu1 %v5634_v25 }
 0x206   : > { %4228 = vmatprep.subr.bf16.mxu1 %v5637_v26 }
 0x209   : > { %4244 = vmatpush1.bf16.msra.mxu1 %v5653_v36 }
 0x20a   : > { %4229 = vmatprep.subr.bf16.mxu1 %v5656_v38 }
 0x20d   : > { %4245 = vmatpush1.bf16.msra.mxu1 %v5671_v43 }
 0x20e   : > { %4230 = vmatprep.subr.bf16.mxu1 %v5674_v45 }
 0x211   : > { %4246 = vmatpush1.bf16.msra.mxu1 %v5689_v50 }
 0x212   : > { %4231 = vmatprep.subr.bf16.mxu1 %v5692_v51 }
 0x215   : > { %4247 = vmatpush1.bf16.msra.mxu1 %v5707_v57 }
 0x216   : > { %4232 = vmatprep.subr.bf16.mxu1 %v5710_v59 }
 0x219   : > { %4248 = vmatpush1.bf16.msra.mxu1 %v5725_v1 }
 0x21a   : > { %4233 = vmatprep.subr.bf16.mxu1 %v5728_v16 }
 0x21d   : > { %4249 = vmatpush1.bf16.msra.mxu1 %v5743_v7 }
 0x21e   : > { %4234 = vmatprep.subr.bf16.mxu1 %v5746_v8 }
 0x221   : > { %4250 = vmatpush1.bf16.msra.mxu1 %v5755_v12 }
 0x222   : > { %4235 = vmatprep.subr.bf16.mxu1 %v5764_v18 }
 0x225   : > { %4251 = vmatpush1.bf16.msra.mxu1 %v5773_v22 }
 0x226   : > { %4236 = vmatprep.subr.bf16.mxu1 %v5782_v27 }
 0x229   : > { %4252 = vmatpush1.bf16.msra.mxu1 %v5791_v34 }
 0x22a   : > { %4237 = vmatprep.subr.bf16.mxu1 %v5803_v42 }
 0x22d   : > { %4253 = vmatpush1.bf16.msra.mxu1 %v5815_v49 }
 0x22e   : > { %4238 = vmatprep.subr.bf16.mxu1 %v5818_v53 }
 0x231   : > { %4254 = vmatpush1.bf16.msra.mxu1 %v5827_v56 }
 0x232   : > { %2606 = vmatprep.subr.bf16.mxu1 %v2291_v62  ;;  %v1753_v62 = vunpack.c.h.bf16 %v1683_v39  ;;  %v1695_v39 = vld [vmem:[%s7269_s6 + $0xa8] sm:$0xff] }
 0x26f   : > { %v1561_v5 = vpop.f32.mrb[0].mxu1 }
 0x270   : > { %v1562_v6 = vadd.f32 %v1561_v5, %v1477_v2  ;;  %v1563_v9 = vpop.f32.mrb[1].mxu1 }
 0x271   : > { %v1564_v11 = vadd.f32 %v1563_v9, %v1481_v4  ;;  %v1565_v15 = vpop.f32.mrb[2].mxu1 }
 0x272   : > { %v1650_v17 = vadd.f32 3.0, %v1562_v6  ;;  %v1566_v20 = vpop.f32.mrb[3].mxu1 }
 0x273   : > { %v1651_v21 = vadd.f32 3.0, %v1564_v11  ;;  %v1686_v20 = vld [vmem:[%s7269_s6 + $0x60] sm:$0xff] }
 0x274   : > { %v1656_v23 = vmax.f32 %v1650_v17, 0.0 }
 0x275   : > { %v1657_v24 = vmax.f32 %v1651_v21, 0.0  ;;  %v1689_v21 = vld [vmem:[%s7269_s6 + $0x78] sm:$0xff] }
 0x276   : > { %v1662_v28 = vmin.f32 %v1656_v23, 6.0 }
 0x277   : > { %v1663_v41 = vmin.f32 %v1657_v24, 6.0 }
 0x278   : > { %v1668_v46 = vmul.f32 0.16666667, %v1662_v28 }
 0x279   : > { %v1669_v29 = vmul.f32 0.16666667, %v1663_v41  ;;  %v1759_v41 = vunpack.c.h.bf16 %v1686_v20 }
 0x27a   : > { %v5859_v2 = vrot.slane %v1668_v46, %v4951_v35  ;;  %v1765_v46 = vunpack.c.h.bf16 %v1689_v21 }
 0x27b   : > { %v5862_v4 = vrot.slane %v1669_v29, %v4951_v35 }
 0x27c   : > { %v1878_v5 = vmul.f32 %v5859_v2, %v1734_v47  ;;  %v1884_v6 = vmul.f32 %v5859_v2, %v1740_v54  ;;  %v1890_v47 = vmul.f32 %v5859_v2, %v1746_v31 }
 0x27d   : > { %v1879_v9 = vmul.f32 %v5862_v4, %v1735_v48  ;;  %v1885_v11 = vmul.f32 %v5862_v4, %v1741_v60  ;;  %v1891_v15 = vmul.f32 %v5862_v4, %v1747_v61  ;;  %v1897_v17 = vmul.f32 %v5862_v4, %v1753_v62 }
 0x27e   : > { %v1998_v24 = vpack.c.bf16 %v1884_v6, %v1878_v5  ;;  %v1896_v48 = vmul.f32 %v5859_v2, %v1752_v33  ;;  %v1903_v54 = vmul.f32 %v5862_v4, %v1759_v41  ;;  %v1909_v29 = vmul.f32 %v5862_v4, %v1765_v46 }
 0x27f   : > { %v1999_v23 = vpack.c.bf16 %v1885_v11, %v1879_v9  ;;  %v2005_v28 = vpack.c.bf16 %v1897_v17, %v1891_v15  ;;  %v1758_v60 = vunpack.c.l.bf16 %v1686_v20  ;;  %v1764_v61 = vunpack.c.l.bf16 %v1689_v21  ;;  %v1701_v15 = vld [vmem:[%s7269_s6 + $0xd8] sm:$0xff] }
 0x280   : > { %v1771_v62 = vunpack.c.h.bf16 %v1692_v13  ;;  %v1777_v5 = vunpack.c.h.bf16 %v1695_v39  ;;  %v1770_v17 = vunpack.c.l.bf16 %v1692_v13  ;;  %v1776_v20 = vunpack.c.l.bf16 %v1695_v39 }
 0x281   : > { %2372 = vmatprep.mubr.bf16.mxu0 %v1999_v23  ;;  %v1902_v6 = vmul.f32 %v5859_v2, %v1758_v60  ;;  %v1908_v9 = vmul.f32 %v5859_v2, %v1764_v61  ;;  %v1789_v23 = vunpack.c.h.bf16 %v1701_v15  ;;  %v1788_v46 = vunpack.c.l.bf16 %v1701_v15 }
 0x282   : > { %2373 = vmatmul.mubr.bf16.vlgmr.msra.gmra.mrb[4].mxu0 %v1998_v24  ;;  %v1921_v11 = vmul.f32 %v5862_v4, %v1777_v5  ;;  %v1914_v24 = vmul.f32 %v5859_v2, %v1770_v17  ;;  %v1920_v31 = vmul.f32 %v5859_v2, %v1776_v20  ;;  %v1690_v17 = vld [vmem:[%s7269_s6 + $0x80] sm:$0xff] }
 0x283   : > { %2382 = vmatprep.mubr.bf16.mxu0 %v2005_v28  ;;  %2474 = vmatpush1.bf16.msra.mxu0 %v5516_v40  ;;  %v2004_v40 = vpack.c.bf16 %v1896_v48, %v1890_v47  ;;  %v1933_v33 = vmul.f32 %v5862_v4, %v1789_v23  ;;  %v1707_v28 = vld [vmem:[%s7269_s6 + $0x108] sm:$0xff]  ;;  %v1489_v47 = vrot.slane %v5840_v63, %v425_v37 }
 0x284   : > { %2475 = vmatprep.subr.bf16.mxu0 %v5528_v44  ;;  %v2011_v44 = vpack.c.bf16 %v1909_v29, %v1903_v54  ;;  %v2016_v41 = vpack.c.bf16 %v1920_v31, %v1914_v24  ;;  %v1801_v29 = vunpack.c.h.bf16 %v1707_v28  ;;  %v5958_v24 = vld [vmem:[%s7269_s6 + $0xb0] sm:$0xff] }
 0x286   : > { %v1945_v61 = vmul.f32 %v5862_v4, %v1801_v29 }
 0x287   : > { %2476 = vmatpush1.bf16.msra.mxu0 %v5547_v52  ;;  %v1915_v52 = vmul.f32 %v5862_v4, %v1771_v62 }
 0x288   : > { %2477 = vmatprep.subr.bf16.mxu0 %v5559_v55  ;;  %v1698_v55 = vld [vmem:[%s7269_s6 + $0xc0] sm:$0xff] }
 0x289   : > { %v1783_v21 = vunpack.c.h.bf16 %v1698_v55 }
 0x28a   : > { %2383 = vmatmul.mubr.bf16.gmra.mrb[8].mxu0 %v2004_v40  ;;  %v1932_v40 = vmul.f32 %v5859_v2, %v1788_v46  ;;  %v5973_v46 = vld [vmem:[%s7269_s6 + $0x168] sm:$0xff] }
 0x28b   : > { %2392 = vmatprep.mubr.bf16.mxu0 %v2011_v44  ;;  %2478 = vmatpush1.bf16.msra.mxu0 %v5577_v0  ;;  %v2010_v0 = vpack.c.bf16 %v1908_v9, %v1902_v6  ;;  %v5933_v44 = vld [vmem:[%s7269_s6 + $0x120] sm:$0xff]  ;;  %v1800_v9 = vunpack.c.l.bf16 %v1707_v28 }
 0x28c   : > { %2479 = vmatprep.subr.bf16.mxu0 %v5589_v3  ;;  %v2017_v3 = vpack.c.bf16 %v1921_v11, %v1915_v52  ;;  %v1687_v52 = vld [vmem:[%s7269_s6 + $0x68] sm:$0xff]  ;;  %v1807_v15 = vunpack.c.h.bf16 %v5933_v44 }
 0x28d   : > { %v1760_v23 = vunpack.c.l.bf16 %v1687_v52  ;;  %v1944_v28 = vmul.f32 %v5859_v2, %v1800_v9  ;;  %v2193_v9 = vld [vmem:[%s7268_s5 + $0x438] sm:$0xff] }
 0x28f   : > { %2480 = vmatpush1.bf16.msra.mxu0 %v5610_v14  ;;  %v1927_v14 = vmul.f32 %v5862_v4, %v1783_v21 }
 0x290   : > { %2481 = vmatprep.subr.bf16.mxu0 %v5619_v19  ;;  %v1704_v19 = vld [vmem:[%s7269_s6 + $0xf0] sm:$0xff] }
 0x291   : > { %v2023_v48 = vpack.c.bf16 %v1933_v33, %v1927_v14  ;;  %v1795_v54 = vunpack.c.h.bf16 %v1704_v19  ;;  %v1766_v33 = vunpack.c.l.bf16 %v1690_v17 }
 0x292   : > { %2393 = vmatmul.mubr.bf16.gmra.mrb[12].mxu0 %v2010_v0 }
 0x293   : > { %2402 = vmatprep.mubr.bf16.mxu0 %v2017_v3  ;;  %2482 = vmatpush1.bf16.msra.mxu0 %v5634_v25  ;;  %v1485_v25 = vrot.slane %v5840_v63, %v421_v30  ;;  %v1939_v37 = vmul.f32 %v5862_v4, %v1795_v54  ;;  %v1779_v54 = vunpack.c.h.bf16 %v5958_v24 }
 0x294   : > { %2483 = vmatprep.subr.bf16.mxu0 %v5637_v26  ;;  %v1782_v26 = vunpack.c.l.bf16 %v1698_v55 }
 0x295   : > { %v2029_v3 = vpack.c.bf16 %v1945_v61, %v1939_v37  ;;  %v2186_v61 = vld [vmem:[%s7268_s5 + $0x400] sm:$0xff] }
 0x296   : > { %v1926_v30 = vmul.f32 %v5859_v2, %v1782_v26  ;;  %v5968_v26 = vld [vmem:[%s7269_s6 + $0x150] sm:$0xff] }
 0x297   : > { %2484 = vmatpush1.bf16.msra.mxu0 %v5653_v36 }
 0x298   : > { %2485 = vmatprep.subr.bf16.mxu0 %v5656_v38  ;;  %v2022_v55 = vpack.c.bf16 %v1932_v40, %v1926_v30  ;;  %v1819_v30 = vunpack.c.h.bf16 %v5968_v26 }
 0x29a   : > { %2403 = vmatmul.mubr.bf16.gmra.mrb[16].mxu0 %v2016_v41 }
 0x29b   : > { %v1602_v13 = vpop.f32.mrb[4].mxu1  ;;  %2412 = vmatprep.mubr.bf16.mxu0 %v2023_v48  ;;  %2486 = vmatpush1.bf16.msra.mxu0 %v5671_v43  ;;  %v5938_v43 = vld [vmem:[%s7269_s6 + $0x138] sm:$0xff] }
 0x29c   : > { %v1603_v36 = vadd.f32 %v1602_v13, %v1485_v25  ;;  %v1604_v39 = vpop.f32.mrb[5].mxu1  ;;  %2487 = vmatprep.subr.bf16.mxu0 %v5674_v45  ;;  %v1794_v45 = vunpack.c.l.bf16 %v1704_v19  ;;  %v1813_v0 = vunpack.c.h.bf16 %v5938_v43  ;;  %v1951_v25 = vmul.f32 %v5862_v4, %v1807_v15  ;;  %v2190_v15 = vld [vmem:[%s7268_s5 + $0x420] sm:$0xff] }
 0x29d   : > { %v1605_v38 = vadd.f32 %v1604_v39, %v1489_v47  ;;  %v1606_v60 = vpop.f32.mrb[6].mxu1  ;;  %v1767_v47 = vunpack.c.h.bf16 %v1690_v17  ;;  %v1806_v13 = vunpack.c.l.bf16 %v5933_v44  ;;  %v1812_v39 = vunpack.c.l.bf16 %v5938_v43  ;;  %v2188_v44 = vld [vmem:[%s7268_s5 + $0x410] sm:$0xff]  ;;  %v6000_v43 = vld [vmem:[%s7269_s6 + $0xc8] sm:$0xff] }
 0x29e   : > { %v1652_v62 = vadd.f32 3.0, %v1603_v36  ;;  %v1607_v5 = vpop.f32.mrb[7].mxu1  ;;  %v1938_v14 = vmul.f32 %v5859_v2, %v1794_v45  ;;  %v1957_v41 = vmul.f32 %v5862_v4, %v1813_v0  ;;  %v2191_v45 = vld [vmem:[%s7268_s5 + $0x428] sm:$0xff]  ;;  %v1778_v0 = vunpack.c.l.bf16 %v5958_v24  ;;  %v2197_v24 = vld [vmem:[%s7268_s5 + $0x458] sm:$0xff] }
 0x29f   : > { %v1653_v6 = vadd.f32 3.0, %v1605_v38  ;;  %2488 = vmatpush1.bf16.msra.mxu0 %v5689_v50  ;;  %v5953_v50 = vld [vmem:[%s7269_s6 + $0x98] sm:$0xff]  ;;  %v1785_v17 = vunpack.c.h.bf16 %v6000_v43 }
 0x2a0   : > { %v1658_v11 = vmax.f32 %v1652_v62, 0.0  ;;  %2489 = vmatprep.subr.bf16.mxu0 %v5692_v51  ;;  %v1761_v51 = vunpack.c.h.bf16 %v1687_v52  ;;  %v1773_v48 = vunpack.c.h.bf16 %v5953_v50  ;;  %v2028_v40 = vpack.c.bf16 %v1944_v28, %v1938_v14  ;;  %v6048_v28 = vld [vmem:[%s7269_s6 + $0x198] sm:$0xff] }
 0x2a1   : > { %v1659_v20 = vmax.f32 %v1653_v6, 0.0  ;;  %v2035_v38 = vpack.c.bf16 %v1957_v41, %v1951_v25  ;;  %v1772_v52 = vunpack.c.l.bf16 %v5953_v50  ;;  %v2192_v50 = vld [vmem:[%s7268_s5 + $0x430] sm:$0xff]  ;;  %v1963_v14 = vmul.f32 %v5862_v4, %v1819_v30 }
 0x2a2   : > { %v1664_v21 = vmin.f32 %v1658_v11, 6.0  ;;  %2413 = vmatmul.mubr.bf16.gmra.mrb[20].mxu0 %v2022_v55  ;;  %v2290_v55 = vpack.c.bf16 %v2188_v44, %v2186_v61  ;;  %v1818_v41 = vunpack.c.l.bf16 %v5968_v26  ;;  %v2199_v26 = vld [vmem:[%s7268_s5 + $0x468] sm:$0xff]  ;;  %v1784_v44 = vunpack.c.l.bf16 %v6000_v43 }
 0x2a3   : > { %v1665_v31 = vmin.f32 %v1659_v20, 6.0  ;;  %2422 = vmatprep.mubr.bf16.mxu0 %v2029_v3  ;;  %2490 = vmatpush1.bf16.msra.mxu0 %v5707_v57  ;;  %v1950_v3 = vmul.f32 %v5859_v2, %v1806_v13  ;;  %v2203_v43 = vld [vmem:[%s7268_s5 + $0x488] sm:$0xff] }
 0x2a4   : > { %v1670_v19 = vmul.f32 0.16666667, %v1664_v21  ;;  %2491 = vmatprep.subr.bf16.mxu0 %v5710_v59  ;;  %v1825_v59 = vunpack.c.h.bf16 %v5973_v46  ;;  %v1956_v21 = vmul.f32 %v5859_v2, %v1812_v39  ;;  %v2196_v39 = vld [vmem:[%s7268_s5 + $0x450] sm:$0xff] }
 0x2a5   : > { %v1671_v57 = vmul.f32 0.16666667, %v1665_v31  ;;  %v2195_v31 = vld [vmem:[%s7268_s5 + $0x448] sm:$0xff] }
 0x2a6   : > { %v5979_v29 = vrot.slane %v1670_v19, %v4951_v35  ;;  %v6043_v19 = vld [vmem:[%s7269_s6 + $0x180] sm:$0xff]  ;;  %v2295_v25 = vpack.c.bf16 %v2197_v24, %v2195_v31 }
 0x2a7   : > { %v5983_v36 = vrot.slane %v1671_v57, %v4951_v35  ;;  %2492 = vmatpush1.bf16.msra.mxu0 %v5725_v1  ;;  %v1824_v57 = vunpack.c.l.bf16 %v5973_v46  ;;  %v1831_v30 = vunpack.c.h.bf16 %v6043_v19  ;;  %v2201_v46 = vld [vmem:[%s7268_s5 + $0x478] sm:$0xff] }
 0x2a8   : > { %v1904_v60 = vmul.f32 %v5979_v29, %v1760_v23  ;;  %v1910_v37 = vmul.f32 %v5979_v29, %v1766_v33  ;;  %2493 = vmatprep.subr.bf16.mxu0 %v5728_v16  ;;  %v6017_v16 = vld [vmem:[%s7269_s6 + $0xe0] sm:$0xff]  ;;  %v2293_v23 = vpack.c.bf16 %v2193_v9, %v2191_v45  ;;  %v1922_v13 = vmul.f32 %v5979_v29, %v1778_v0 }
 0x2a9   : > { %v1905_v1 = vmul.f32 %v5983_v36, %v1761_v51  ;;  %v1911_v62 = vmul.f32 %v5983_v36, %v1767_v47  ;;  %v1917_v5 = vmul.f32 %v5983_v36, %v1773_v48  ;;  %v1923_v6 = vmul.f32 %v5983_v36, %v1779_v54  ;;  %v2194_v47 = vld [vmem:[%s7268_s5 + $0x440] sm:$0xff] }
 0x2aa   : > { %2423 = vmatmul.mubr.bf16.gmra.mrb[24].mxu0 %v2028_v40  ;;  %v2012_v20 = vpack.c.bf16 %v1910_v37, %v1904_v60  ;;  %v1969_v51 = vmul.f32 %v5862_v4, %v1825_v59  ;;  %v1791_v33 = vunpack.c.h.bf16 %v6017_v16  ;;  %v2034_v48 = vpack.c.bf16 %v1956_v21, %v1950_v3  ;;  %v6074_v37 = vld [vmem:[%s7269_s6 + $0xf8] sm:$0xff] }
 0x2ab   : > { %2432 = vmatprep.mubr.bf16.mxu0 %v2035_v38  ;;  %v2013_v11 = vpack.c.bf16 %v1911_v62, %v1905_v1  ;;  %2494 = vmatpush1.bf16.msra.mxu0 %v5743_v7  ;;  %v2019_v7 = vpack.c.bf16 %v1923_v6, %v1917_v5  ;;  %v1916_v54 = vmul.f32 %v5979_v29, %v1772_v52  ;;  %v1837_v60 = vunpack.c.h.bf16 %v6048_v28  ;;  %v2198_v5 = vld [vmem:[%s7268_s5 + $0x460] sm:$0xff]  ;;  %v2200_v52 = vld [vmem:[%s7268_s5 + $0x470] sm:$0xff] }
 0x2ac   : > { %2495 = vmatprep.subr.bf16.mxu0 %v5746_v8  ;;  %v2292_v8 = vpack.c.bf16 %v2192_v50, %v2190_v15  ;;  %v2041_v59 = vpack.c.bf16 %v1969_v51, %v1963_v14  ;;  %v1929_v40 = vmul.f32 %v5983_v36, %v1785_v17  ;;  %v1935_v38 = vmul.f32 %v5983_v36, %v1791_v33  ;;  %v6106_v17 = vld [vmem:[%s7269_s6 + $0x1b0] sm:$0xff]  ;;  %v2202_v50 = vld [vmem:[%s7268_s5 + $0x480] sm:$0xff]  ;;  %v2207_v51 = vld [vmem:[%s7268_s5 + $0x4a8] sm:$0xff] }
 0x2ad   : > { %2525 = vmatprep.mubr.bf16.mxu1 %v2013_v11  ;;  %v2294_v61 = vpack.c.bf16 %v2196_v39, %v2194_v47  ;;  %v1790_v1 = vunpack.c.l.bf16 %v6017_v16  ;;  %v2297_v62 = vpack.c.bf16 %v2201_v46, %v2199_v26  ;;  %v2018_v6 = vpack.c.bf16 %v1922_v13, %v1916_v54  ;;  %v2205_v16 = vld [vmem:[%s7268_s5 + $0x498] sm:$0xff]  ;;  %v2204_v14 = vld [vmem:[%s7268_s5 + $0x490] sm:$0xff]  ;;  %v2206_v13 = vld [vmem:[%s7268_s5 + $0x4a0] sm:$0xff] }
 0x2ae   : > { %2526 = vmatmul.mubr.bf16.vlgmr.msra.gmra.mrb[12].mxu1 %v2012_v20  ;;  %v1968_v45 = vmul.f32 %v5859_v2, %v1824_v57  ;;  %v1797_v9 = vunpack.c.h.bf16 %v6074_v37  ;;  %v2025_v11 = vpack.c.bf16 %v1935_v38, %v1929_v40  ;;  %v1981_v15 = vmul.f32 %v5862_v4, %v1837_v60  ;;  %v2209_v33 = vld [vmem:[%s7268_s5 + $0x4b8] sm:$0xff]  ;;  %v2208_v46 = vld [vmem:[%s7268_s5 + $0x4b0] sm:$0xff] }
 0x2af   : > { %2607 = vmatpush1.bf16.msra.mxu1 %v2290_v55  ;;  %2535 = vmatprep.mubr.bf16.mxu1 %v2019_v7  ;;  %v1975_v55 = vmul.f32 %v5862_v4, %v1831_v30  ;;  %v2296_v20 = vpack.c.bf16 %v2200_v52, %v2198_v5  ;;  %v1830_v3 = vunpack.c.l.bf16 %v6043_v19  ;;  %v1836_v21 = vunpack.c.l.bf16 %v6048_v28  ;;  %v2213_v40 = vld [vmem:[%s7268_s5 + $0x4d8] sm:$0xff]  ;;  %v2210_v52 = vld [vmem:[%s7268_s5 + $0x4c0] sm:$0xff] }
 0x2b0   : > { %2608 = vmatprep.subr.bf16.mxu1 %v2293_v23  ;;  %2496 = vmatpush1.bf16.msra.mxu0 %v5755_v12  ;;  %v6080_v12 = vld [vmem:[%s7269_s6 + $0x110] sm:$0xff]  ;;  %v2299_v23 = vpack.c.bf16 %v2205_v16, %v2203_v43  ;;  %v1934_v24 = vmul.f32 %v5979_v29, %v1790_v1  ;;  %v1843_v7 = vunpack.c.h.bf16 %v6106_v17  ;;  %v1941_v28 = vmul.f32 %v5983_v36, %v1797_v9 }
 0x2b1   : > { %2497 = vmatprep.subr.bf16.mxu0 %v5764_v18  ;;  %v1962_v18 = vmul.f32 %v5859_v2, %v1818_v41  ;;  %v1803_v0 = vunpack.c.h.bf16 %v6080_v12  ;;  %v2047_v19 = vpack.c.bf16 %v1981_v15, %v1975_v55  ;;  %v6144_v41 = vld [vmem:[%s7269_s6 + $0x140] sm:$0xff]  ;;  %v1796_v57 = vunpack.c.l.bf16 %v6074_v37  ;;  %v6191_v9 = vld [vmem:[%s7269_s6 + $0x170] sm:$0xff] }
 0x2b2   : > { %2433 = vmatmul.mubr.bf16.gmra.mrb[28].mxu0 %v2034_v48  ;;  %v1802_v47 = vunpack.c.l.bf16 %v6080_v12  ;;  %v2298_v48 = vpack.c.bf16 %v2204_v14, %v2202_v50  ;;  %v2301_v54 = vpack.c.bf16 %v2209_v33, %v2207_v51  ;;  %v1980_v30 = vmul.f32 %v5859_v2, %v1836_v21  ;;  %v2212_v43 = vld [vmem:[%s7268_s5 + $0x4d0] sm:$0xff]  ;;  %v6216_v21 = vld [vmem:[%s7269_s6 + $0x38] sm:$0xff]  ;;  %v2214_v14 = vld [vmem:[%s7268_s5 + $0x4e0] sm:$0xff] }
 0x2b3   : > { %2442 = vmatprep.mubr.bf16.mxu0 %v2041_v59  ;;  %2609 = vmatpush1.bf16.msra.mxu1 %v2292_v8  ;;  %v2040_v31 = vpack.c.bf16 %v1968_v45, %v1962_v18  ;;  %v1947_v8 = vmul.f32 %v5983_v36, %v1803_v0  ;;  %v2211_v59 = vld [vmem:[%s7268_s5 + $0x4c8] sm:$0xff]  ;;  %v1987_v60 = vmul.f32 %v5862_v4, %v1843_v7  ;;  %v1815_v12 = vunpack.c.h.bf16 %v6144_v41  ;;  %v2216_v51 = vld [vmem:[%s7268_s5 + $0x4f0] sm:$0xff] }
 0x2b4   : > { %2610 = vmatprep.subr.bf16.mxu1 %v2295_v25  ;;  %2498 = vmatpush1.bf16.msra.mxu0 %v5773_v22  ;;  %v6112_v22 = vld [vmem:[%s7269_s6 + $0x1c8] sm:$0xff]  ;;  %v2300_v1 = vpack.c.bf16 %v2208_v46, %v2206_v13  ;;  %v2303_v5 = vpack.c.bf16 %v2213_v40, %v2211_v59  ;;  %v1946_v18 = vmul.f32 %v5979_v29, %v1802_v47  ;;  %v2218_v59 = vld [vmem:[%s7268_s5 + $0x500] sm:$0xff]  ;;  %v2220_v40 = vld [vmem:[%s7268_s5 + $0x510] sm:$0xff] }
 0x2b5   : > { %2499 = vmatprep.subr.bf16.mxu0 %v5782_v27  ;;  %v1928_v27 = vmul.f32 %v5979_v29, %v1784_v44  ;;  %v1849_v25 = vunpack.c.h.bf16 %v6112_v22  ;;  %v2031_v38 = vpack.c.bf16 %v1947_v8, %v1941_v28  ;;  %v1842_v44 = vunpack.c.l.bf16 %v6106_v17  ;;  %v2215_v0 = vld [vmem:[%s7268_s5 + $0x4e8] sm:$0xff] }
 0x2b6   : > { %2536 = vmatmul.mubr.bf16.gmra.mrb[16].mxu1 %v2018_v6  ;;  %v1940_v6 = vmul.f32 %v5979_v29, %v1796_v57  ;;  %v1959_v55 = vmul.f32 %v5983_v36, %v1815_v12  ;;  %v2219_v8 = vld [vmem:[%s7268_s5 + $0x508] sm:$0xff] }
 0x2b7   : > { %2545 = vmatprep.mubr.bf16.mxu1 %v2025_v11  ;;  %2611 = vmatpush1.bf16.msra.mxu1 %v2294_v61  ;;  %v2024_v39 = vpack.c.bf16 %v1934_v24, %v1928_v27  ;;  %v1993_v37 = vmul.f32 %v5862_v4, %v1849_v25  ;;  %v6176_v61 = vld [vmem:[%s7269_s6 + $0x20] sm:$0xff]  ;;  %v1848_v4 = vunpack.c.l.bf16 %v6112_v22  ;;  %v1814_v22 = vunpack.c.l.bf16 %v6144_v41  ;;  %v6223_v24 = vld [vmem:[%s7269_s6 + $0x50] sm:$0xff]  ;;  %v2221_v25 = vld [vmem:[%s7268_s5 + $0x518] sm:$0xff] }
 0x2b8   : > { %2612 = vmatprep.subr.bf16.mxu1 %v2297_v62  ;;  %2500 = vmatpush1.bf16.msra.mxu0 %v5791_v34  ;;  %v6138_v34 = vld [vmem:[%s7269_s6 + $0x128] sm:$0xff]  ;;  %v6183_v62 = vld [vmem:[%s7269_s6 + $0x158] sm:$0xff]  ;;  %v1743_v15 = vunpack.c.h.bf16 %v6176_v61  ;;  %v2030_v50 = vpack.c.bf16 %v1946_v18, %v1940_v6  ;;  %v1742_v57 = vunpack.c.l.bf16 %v6176_v61  ;;  %v1755_v47 = vunpack.c.h.bf16 %v6223_v24 }
 0x2b9   : > { %2501 = vmatprep.subr.bf16.mxu0 %v5803_v42  ;;  %v1974_v42 = vmul.f32 %v5859_v2, %v1830_v3  ;;  %v1809_v26 = vunpack.c.h.bf16 %v6138_v34  ;;  %v2053_v16 = vpack.c.bf16 %v1993_v37, %v1987_v60  ;;  %v1808_v17 = vunpack.c.l.bf16 %v6138_v34  ;;  %v2223_v61 = vld [vmem:[%s7268_s5 + $0x528] sm:$0xff] }
 0x2ba   : > { %2443 = vmatmul.mubr.bf16.gmra.mrb[32].mxu0 %v2040_v31  ;;  %v1827_v3 = vunpack.c.h.bf16 %v6191_v9  ;;  %v1986_v31 = vmul.f32 %v5859_v2, %v1842_v44  ;;  %v1992_v27 = vmul.f32 %v5859_v2, %v1848_v4  ;;  %v1497_v2 = vrot.slane %v5840_v63, %v433_v32  ;;  %v2225_v44 = vld [vmem:[%s7268_s5 + $0x538] sm:$0xff] }
 0x2bb   : > { %2452 = vmatprep.mubr.bf16.mxu0 %v2047_v19  ;;  %2613 = vmatpush1.bf16.msra.mxu1 %v2296_v20  ;;  %v1953_v11 = vmul.f32 %v5983_v36, %v1809_v26  ;;  %v1821_v20 = vunpack.c.h.bf16 %v6183_v62  ;;  %v1887_v28 = vmul.f32 %v5983_v36, %v1743_v15  ;;  %v1749_v32 = vunpack.c.h.bf16 %v6216_v21  ;;  %v6256_v26 = vld [vmem:[%s7269_s6 + $0x1a0] sm:$0xff] }
 0x2bc   : > { %2614 = vmatprep.subr.bf16.mxu1 %v2299_v23  ;;  %2502 = vmatpush1.bf16.msra.mxu0 %v5815_v49  ;;  %v6170_v49 = vld [vmem:[%s7269_s6 + $0x8] sm:$0xff]  ;;  %v2302_v23 = vpack.c.bf16 %v2212_v43, %v2210_v52  ;;  %v2307_v46 = vpack.c.bf16 %v2221_v25, %v2219_v8  ;;  %v1839_v18 = vunpack.c.h.bf16 %v6256_v26  ;;  %v1886_v43 = vmul.f32 %v5979_v29, %v1742_v57 }
 0x2bd   : > { %2503 = vmatprep.subr.bf16.mxu0 %v5818_v53  ;;  %v2046_v53 = vpack.c.bf16 %v1980_v30, %v1974_v42  ;;  %v1737_v45 = vunpack.c.h.bf16 %v6170_v49  ;;  %v2037_v33 = vpack.c.bf16 %v1959_v55, %v1953_v11  ;;  %v1736_v34 = vunpack.c.l.bf16 %v6170_v49 }
 0x2be   : > { %2546 = vmatmul.mubr.bf16.gmra.mrb[20].mxu1 %v2024_v39  ;;  %v2052_v39 = vpack.c.bf16 %v1992_v27, %v1986_v31  ;;  %v1952_v42 = vmul.f32 %v5979_v29, %v1808_v17  ;;  %v1958_v30 = vmul.f32 %v5979_v29, %v1814_v22  ;;  %v1965_v12 = vmul.f32 %v5983_v36, %v1821_v20 }
 0x2bf   : > { %2555 = vmatprep.mubr.bf16.mxu1 %v2031_v38  ;;  %2615 = vmatpush1.bf16.msra.mxu1 %v2298_v48  ;;  %v1881_v19 = vmul.f32 %v5983_v36, %v1737_v45  ;;  %v6249_v48 = vld [vmem:[%s7269_s6 + $0x188] sm:$0xff]  ;;  %v1971_v49 = vmul.f32 %v5983_v36, %v1827_v3  ;;  %v2306_v45 = vpack.c.bf16 %v2220_v40, %v2218_v59  ;;  %v1748_v15 = vunpack.c.l.bf16 %v6216_v21  ;;  %v1729_v21 = vld [vmem:[%s7269_s6 + $0x1b8] sm:$0xff] }
 0x2c0   : > { %2616 = vmatprep.subr.bf16.mxu1 %v2301_v54  ;;  %2504 = vmatpush1.bf16.msra.mxu0 %v5827_v56  ;;  %v2217_v56 = vld [vmem:[%s7268_s5 + $0x4f8] sm:$0xff]  ;;  %v2304_v54 = vpack.c.bf16 %v2216_v51, %v2214_v14  ;;  %v1833_v6 = vunpack.c.h.bf16 %v6249_v48  ;;  %v1880_v52 = vmul.f32 %v5979_v29, %v1736_v34  ;;  %v1893_v11 = vmul.f32 %v5983_v36, %v1749_v32 }
 0x2c1   : > { %v2305_v7 = vpack.c.bf16 %v2217_v56, %v2215_v0  ;;  %v2001_v37 = vpack.c.bf16 %v1887_v28, %v1881_v19  ;;  %v1899_v55 = vmul.f32 %v5983_v36, %v1755_v47  ;;  %v1754_v0 = vunpack.c.l.bf16 %v6223_v24  ;;  %v1732_v24 = vld [vmem:[%s7269_s6 + $0x1d0] sm:$0xff] }
 0x2c2   : > { %2453 = vmatmul.mubr.bf16.gmra.mrb[36].mxu0 %v2046_v53  ;;  %v1493_v53 = vrot.slane %v5840_v63, %v429_v58  ;;  %v2224_v58 = vld [vmem:[%s7268_s5 + $0x530] sm:$0xff]  ;;  %v2000_v22 = vpack.c.bf16 %v1886_v43, %v1880_v52  ;;  %v1977_v31 = vmul.f32 %v5983_v36, %v1833_v6  ;;  %v1983_v27 = vmul.f32 %v5983_v36, %v1839_v18 }
 0x2c3   : > { %2462 = vmatprep.mubr.bf16.mxu0 %v2053_v16  ;;  %2617 = vmatpush1.bf16.msra.mxu1 %v2300_v1  ;;  %v1820_v1 = vunpack.c.l.bf16 %v6183_v62  ;;  %v2036_v16 = vpack.c.bf16 %v1958_v30, %v1952_v42  ;;  %v2309_v62 = vpack.c.bf16 %v2225_v44, %v2223_v61  ;;  %v2308_v56 = vpack.c.bf16 %v2224_v58, %v2222_v10  ;;  %v1679_v42 = vld [vmem:[%s7269_s6 + $0x28] sm:$0xff] }
 0x2c4   : > { %2618 = vmatprep.subr.bf16.mxu1 %v2303_v5  ;;  %v1826_v5 = vunpack.c.l.bf16 %v6191_v9  ;;  %v2043_v9 = vpack.c.bf16 %v1971_v49, %v1965_v12  ;;  %v1838_v14 = vunpack.c.l.bf16 %v6256_v26  ;;  %v1898_v19 = vmul.f32 %v5979_v29, %v1754_v0  ;;  %v1691_v58 = vld [vmem:[%s7269_s6 + $0x88] sm:$0xff] }
 0x2c5   : > { %v1964_v20 = vmul.f32 %v5979_v29, %v1820_v1  ;;  %v2049_v8 = vpack.c.bf16 %v1983_v27, %v1977_v31  ;;  %v1845_v25 = vunpack.c.h.bf16 %v1729_v21  ;;  %v1851_v34 = vunpack.c.h.bf16 %v1732_v24  ;;  %v1685_v1 = vld [vmem:[%s7269_s6 + $0x58] sm:$0xff] }
 0x2c6   : > { %2556 = vmatmul.mubr.bf16.gmra.mrb[24].mxu1 %v2030_v50  ;;  %v1970_v3 = vmul.f32 %v5979_v29, %v1826_v5  ;;  %v2007_v50 = vpack.c.bf16 %v1899_v55, %v1893_v11  ;;  %v1982_v47 = vmul.f32 %v5979_v29, %v1838_v14  ;;  %v1850_v59 = vunpack.c.l.bf16 %v1732_v24 }
 0x2c7   : > { %v1643_v41 = vpop.f32.mrb[8].mxu1  ;;  %2565 = vmatprep.mubr.bf16.mxu1 %v2037_v33  ;;  %2619 = vmatpush1.bf16.msra.mxu1 %v2302_v23  ;;  %v1744_v18 = vunpack.c.l.bf16 %v1679_v42  ;;  %v1757_v52 = vunpack.c.h.bf16 %v1685_v1  ;;  %v1756_v11 = vunpack.c.l.bf16 %v1685_v1  ;;  %v1769_v0 = vunpack.c.h.bf16 %v1691_v58 }
 0x2c8   : > { %v1645_v13 = vpop.f32.mrb[9].mxu1  ;;  %2620 = vmatprep.subr.bf16.mxu1 %v2305_v7  ;;  %v1644_v17 = vadd.f32 %v1643_v41, %v1493_v53  ;;  %v1832_v7 = vunpack.c.l.bf16 %v6249_v48  ;;  %v2042_v33 = vpack.c.bf16 %v1970_v3, %v1964_v20  ;;  %v1994_v49 = vmul.f32 %v5979_v29, %v1850_v59  ;;  %v1694_v3 = vld [vmem:[%s7269_s6 + $0xa0] sm:$0xff] }
 0x2c9   : > { %v1646_v38 = vadd.f32 %v1645_v13, %v1497_v2  ;;  %v1647_v60 = vpop.f32.mrb[10].mxu1  ;;  %v1892_v2 = vmul.f32 %v5979_v29, %v1748_v15  ;;  %v1995_v13 = vmul.f32 %v5983_v36, %v1851_v34  ;;  %v1768_v27 = vunpack.c.l.bf16 %v1691_v58 }
 0x2ca   : > { %v1648_v4 = vpop.f32.mrb[11].mxu1  ;;  %2463 = vmatmul.mubr.bf16.gmra.mrb[40].mxu0 %v2052_v39  ;;  %v1654_v51 = vadd.f32 3.0, %v1644_v17  ;;  %v1976_v32 = vmul.f32 %v5979_v29, %v1832_v7  ;;  %v1676_v39 = vld [vmem:[%s7269_s6 + $0x10] sm:$0xff]  ;;  %v1775_v24 = vunpack.c.h.bf16 %v1694_v3 }
 0x2cb   : > { %2505 = vmatprep.mubr.bf16.mxu0 %v2001_v37  ;;  %2621 = vmatpush1.bf16.msra.mxu1 %v2304_v54  ;;  %v1655_v63 = vadd.f32 3.0, %v1646_v38  ;;  %v2006_v57 = vpack.c.bf16 %v1898_v19, %v1892_v2  ;;  %v1989_v54 = vmul.f32 %v5983_v36, %v1845_v25  ;;  %v1739_v60 = vunpack.c.h.bf16 %v1676_v39  ;;  %v1682_v4 = vld [vmem:[%s7269_s6 + $0x40] sm:$0xff]  ;;  %v1700_v19 = vld [vmem:[%s7269_s6 + $0xd0] sm:$0xff] }
 0x2cc   : > { %2622 = vmatprep.subr.bf16.mxu1 %v2307_v46  ;;  %v1660_v41 = vmax.f32 %v1654_v51, 0.0  ;;  %v2048_v26 = vpack.c.bf16 %v1982_v47, %v1976_v32  ;;  %v1844_v46 = vunpack.c.l.bf16 %v1729_v21  ;;  %v1745_v37 = vunpack.c.h.bf16 %v1679_v42  ;;  %v1709_v42 = vld [vmem:[%s7269_s6 + $0x118] sm:$0xff] }
 0x2cd   : > { %v1661_v23 = vmax.f32 %v1655_v63, 0.0  ;;  %v2055_v38 = vpack.c.bf16 %v1995_v13, %v1989_v54  ;;  %v1738_v6 = vunpack.c.l.bf16 %v1676_v39  ;;  %v1774_v25 = vunpack.c.l.bf16 %v1694_v3  ;;  %v1706_v39 = vld [vmem:[%s7269_s6 + $0x100] sm:$0xff] }
 0x2ce   : > { %2566 = vmatmul.mubr.bf16.gmra.mrb[28].mxu1 %v2036_v16  ;;  %v1666_v30 = vmin.f32 %v1660_v41, 6.0  ;;  %v1988_v12 = vmul.f32 %v5979_v29, %v1844_v46  ;;  %v1751_v29 = vunpack.c.h.bf16 %v1682_v4  ;;  %v1798_v1 = vunpack.c.l.bf16 %v1706_v39 }
 0x2cf   : > { %2575 = vmatprep.mubr.bf16.mxu1 %v2043_v9  ;;  %2623 = vmatpush1.bf16.msra.mxu1 %v2306_v45  ;;  %v1667_v28 = vmin.f32 %v1661_v23, 6.0  ;;  %v1750_v9 = vunpack.c.l.bf16 %v1682_v4  ;;  %v1697_v23 = vld [vmem:[%s7269_s6 + $0xb8] sm:$0xff] }
 0x2d0   : > { %2624 = vmatprep.subr.bf16.mxu1 %v2309_v62  ;;  %v1672_v36 = vmul.f32 0.16666667, %v1666_v30  ;;  %v2054_v53 = vpack.c.bf16 %v1994_v49, %v1988_v12  ;;  %v1781_v7 = vunpack.c.h.bf16 %v1697_v23  ;;  %v1780_v34 = vunpack.c.l.bf16 %v1697_v23 }
 0x2d1   : > { %v1673_v48 = vmul.f32 0.16666667, %v1667_v28  ;;  %v1703_v28 = vld [vmem:[%s7269_s6 + $0xe8] sm:$0xff] }
 0x2d2   : > { %2506 = vmatmul.mubr.bf16.vlgmr.msra.gmra.mrb[4].mxu0 %v2000_v22  ;;  %v6329_v5 = vrot.slane %v1672_v36, %v4951_v35  ;;  %v1793_v32 = vunpack.c.h.bf16 %v1703_v28  ;;  %v1792_v46 = vunpack.c.l.bf16 %v1703_v28 }
 0x2d3   : > { %2515 = vmatprep.mubr.bf16.mxu0 %v2007_v50  ;;  %2625 = vmatpush1.bf16.msra.mxu1 %v2308_v56  ;;  %v6316_v40 = vrot.slane %v1673_v48, %v4951_v35  ;;  %v1688_v35 = vld [vmem:[%s7269_s6 + $0x70] sm:$0xff] }
 0x2d4   : > { %v1882_v43 = vmul.f32 %v6329_v5, %v1738_v6  ;;  %v1888_v16 = vmul.f32 %v6329_v5, %v1744_v18  ;;  %v1763_v15 = vunpack.c.h.bf16 %v1688_v35  ;;  %v1894_v56 = vmul.f32 %v6329_v5, %v1750_v9 }
 0x2d5   : > { %v1883_v61 = vmul.f32 %v6316_v40, %v1739_v60  ;;  %v1889_v44 = vmul.f32 %v6316_v40, %v1745_v37  ;;  %v1895_v62 = vmul.f32 %v6316_v40, %v1751_v29  ;;  %v1901_v10 = vmul.f32 %v6316_v40, %v1757_v52 }
 0x2d6   : > { %2576 = vmatmul.mubr.bf16.gmra.mrb[32].mxu1 %v2042_v33  ;;  %v2002_v63 = vpack.c.bf16 %v1888_v16, %v1882_v43  ;;  %v1900_v17 = vmul.f32 %v6329_v5, %v1756_v11  ;;  %v1907_v22 = vmul.f32 %v6316_v40, %v1763_v15  ;;  %v1913_v20 = vmul.f32 %v6316_v40, %v1769_v0 }
 0x2d7   : > { %2585 = vmatprep.mubr.bf16.mxu1 %v2049_v8  ;;  %v2003_v45 = vpack.c.bf16 %v1889_v44, %v1883_v61  ;;  %v2009_v55 = vpack.c.bf16 %v1901_v10, %v1895_v62  ;;  %v1762_v31 = vunpack.c.l.bf16 %v1688_v35  ;;  %v1912_v51 = vmul.f32 %v6329_v5, %v1768_v27  ;;  %v1712_v61 = vld [vmem:[%s7269_s6 + $0x130] sm:$0xff]  ;;  %v1715_v44 = vld [vmem:[%s7269_s6 + $0x148] sm:$0xff]  ;;  %v1718_v62 = vld [vmem:[%s7269_s6 + $0x160] sm:$0xff] }
 0x2d8   : > { %v2008_v50 = vpack.c.bf16 %v1900_v17, %v1894_v56  ;;  %v2015_v21 = vpack.c.bf16 %v1913_v20, %v1907_v22  ;;  %v1919_v33 = vmul.f32 %v6316_v40, %v1775_v24  ;;  %v1925_v2 = vmul.f32 %v6316_v40, %v1781_v7  ;;  %v1721_v10 = vld [vmem:[%s7269_s6 + $0x178] sm:$0xff]  ;;  %v1724_v22 = vld [vmem:[%s7269_s6 + $0x190] sm:$0xff]  ;;  %v1727_v20 = vld [vmem:[%s7269_s6 + $0x1a8] sm:$0xff] }
 0x2d9   : > { %v1906_v14 = vmul.f32 %v6329_v5, %v1762_v31  ;;  %v1918_v47 = vmul.f32 %v6329_v5, %v1774_v25  ;;  %v1924_v48 = vmul.f32 %v6329_v5, %v1780_v34  ;;  %v1937_v13 = vmul.f32 %v6316_v40, %v1793_v32 }
 0x2da   : > { %2516 = vmatmul.mubr.bf16.gmra.mrb[8].mxu0 %v2006_v57  ;;  %v2021_v41 = vpack.c.bf16 %v1925_v2, %v1919_v33  ;;  %v1787_v57 = vunpack.c.h.bf16 %v1700_v19  ;;  %v1805_v60 = vunpack.c.h.bf16 %v1709_v42  ;;  %v1936_v36 = vmul.f32 %v6329_v5, %v1792_v46  ;;  %v1730_v33 = vld [vmem:[%s7269_s6 + $0x1c0] sm:$0xff]  ;;  %v1733_v2 = vld [vmem:[%s7269_s6 + $0x1d8] sm:$0xff] }
 0x2db   : > { %v2014_v8 = vpack.c.bf16 %v1912_v51, %v1906_v14  ;;  %v2020_v30 = vpack.c.bf16 %v1924_v48, %v1918_v47  ;;  %v1811_v18 = vunpack.c.h.bf16 %v1712_v61  ;;  %v1942_v29 = vmul.f32 %v6329_v5, %v1798_v1  ;;  %v3240_v47 = vld [vmem:[%s7271_s8] sm:$0xff] }
 0x2dc   : > { %v1931_v54 = vmul.f32 %v6316_v40, %v1787_v57  ;;  %v1949_v49 = vmul.f32 %v6316_v40, %v1805_v60  ;;  %v1810_v58 = vunpack.c.l.bf16 %v1712_v61  ;;  %v1823_v11 = vunpack.c.h.bf16 %v1718_v62 }
 0x2dd   : > { %v1955_v43 = vmul.f32 %v6316_v40, %v1811_v18  ;;  %v1822_v23 = vunpack.c.l.bf16 %v1718_v62  ;;  %v1835_v27 = vunpack.c.h.bf16 %v1724_v22  ;;  %v1834_v28 = vunpack.c.l.bf16 %v1724_v22 }
 0x2de   : > { %2586 = vmatmul.mubr.bf16.gmra.mrb[36].mxu1 %v2048_v26  ;;  %v1786_v26 = vunpack.c.l.bf16 %v1700_v19  ;;  %v2027_v59 = vpack.c.bf16 %v1937_v13, %v1931_v54  ;;  %v1954_v15 = vmul.f32 %v6329_v5, %v1810_v58  ;;  %v1967_v56 = vmul.f32 %v6316_v40, %v1823_v11 }
 0x2df   : > { %2595 = vmatprep.mubr.bf16.mxu1 %v2055_v38  ;;  %v1799_v38 = vunpack.c.h.bf16 %v1706_v39  ;;  %v1966_v24 = vmul.f32 %v6329_v5, %v1822_v23  ;;  %v1979_v14 = vmul.f32 %v6316_v40, %v1835_v27  ;;  %v1847_v34 = vunpack.c.h.bf16 %v1730_v33 }
 0x2e0   : > { %v1930_v37 = vmul.f32 %v6329_v5, %v1786_v26  ;;  %v1978_v57 = vmul.f32 %v6329_v5, %v1834_v28  ;;  %v4755_v13 = vmov 0  }
 0x2e1   : > { %v1943_v12 = vmul.f32 %v6316_v40, %v1799_v38  ;;  %v1991_v48 = vmul.f32 %v6316_v40, %v1847_v34  ;;  %4406 = vset.pattern.permute.xlu1 %v4755_v13  ;;  %4407 = vset.pattern.permute.xlu0 %v4755_v13 }
 0x2e2   : > { %v2026_v4 = vpack.c.bf16 %v1936_v36, %v1930_v37  ;;  %3262 = vperm.xlu1 %4406, %v3240_v47  }
 0x2e3   : > { %v2033_v6 = vpack.c.bf16 %v1949_v49, %v1943_v12 }
 0x2e6   : > { %2596 = vmatmul.mubr.bf16.gmra.mrb[40].mxu1 %v2054_v53  ;;  %v1804_v53 = vunpack.c.l.bf16 %v1709_v42  ;;  %v1846_v42 = vunpack.c.l.bf16 %v1730_v33 }
 0x2e7   : > { %4164 = vmatprep.mubr.msk.bf16.mxu1 %vm963_vm0, %v2003_v45  ;;  %v1817_v45 = vunpack.c.h.bf16 %v1715_v44 }
 0x2e8   : > { %v1948_v52 = vmul.f32 %v6329_v5, %v1804_v53  ;;  %v1990_v46 = vmul.f32 %v6329_v5, %v1846_v42 }
 0x2e9   : > { %v1961_v16 = vmul.f32 %v6316_v40, %v1817_v45 }
 0x2ea   : > { %v2032_v35 = vpack.c.bf16 %v1948_v52, %v1942_v29 }
 0x2eb   : > { %v2039_v9 = vpack.c.bf16 %v1961_v16, %v1955_v43 }
 0x2ee   : > { %2639 = vmatmul.mubr.bf16.vlgmr.msra.gmra.mrb[44].mxu1 %v2002_v63  ;;  %v1816_v63 = vunpack.c.l.bf16 %v1715_v44 }
 0x2ef   : > { %4165 = vmatprep.mubr.msk.bf16.mxu1 %vm963_vm0, %v2009_v55  ;;  %v1829_v55 = vunpack.c.h.bf16 %v1721_v10 }
 0x2f0   : > { %v1960_v0 = vmul.f32 %v6329_v5, %v1816_v63 }
 0x2f1   : > { %v1973_v17 = vmul.f32 %v6316_v40, %v1829_v55 }
 0x2f2   : > { %v2038_v3 = vpack.c.bf16 %v1960_v0, %v1954_v15 }
 0x2f3   : > { %v2045_v31 = vpack.c.bf16 %v1973_v17, %v1967_v56 }
 0x2f6   : > { %2649 = vmatmul.mubr.bf16.gmra.mrb[48].mxu1 %v2008_v50  ;;  %v1828_v50 = vunpack.c.l.bf16 %v1721_v10 }
 0x2f7   : > { %4166 = vmatprep.mubr.msk.bf16.mxu1 %vm963_vm0, %v2015_v21  ;;  %v1841_v21 = vunpack.c.h.bf16 %v1727_v20 }
 0x2f8   : > { %v1972_v7 = vmul.f32 %v6329_v5, %v1828_v50 }
 0x2f9   : > { %v1985_v51 = vmul.f32 %v6316_v40, %v1841_v21 }
 0x2fa   : > { %v2044_v19 = vpack.c.bf16 %v1972_v7, %v1966_v24 }
 0x2fb   : > { %v2051_v25 = vpack.c.bf16 %v1985_v51, %v1979_v14 }
 0x2fe   : > { %2659 = vmatmul.mubr.bf16.gmra.mrb[12].mxu1 %v2014_v8  ;;  %v1840_v8 = vunpack.c.l.bf16 %v1727_v20 }
 0x2ff   : > { %4167 = vmatprep.mubr.msk.bf16.mxu1 %vm963_vm0, %v2021_v41  ;;  %v1853_v41 = vunpack.c.h.bf16 %v1733_v2 }
 0x300   : > { %v1984_v32 = vmul.f32 %v6329_v5, %v1840_v8 }
 0x301   : > { %v1997_v54 = vmul.f32 %v6316_v40, %v1853_v41 }
 0x302   : > { %v2050_v39 = vpack.c.bf16 %v1984_v32, %v1978_v57 }
 0x303   : > { %v2057_v26 = vpack.c.bf16 %v1997_v54, %v1991_v48 }
 0x306   : > { %2669 = vmatmul.mubr.bf16.gmra.mrb[16].mxu1 %v2020_v30  ;;  %v1852_v30 = vunpack.c.l.bf16 %v1733_v2 }
 0x307   : > { %4168 = vmatprep.mubr.msk.bf16.mxu1 %vm963_vm0, %v2027_v59 }
 0x308   : > { %v1996_v59 = vmul.f32 %v6329_v5, %v1852_v30 }
 0x30a   : > { %v2056_v38 = vpack.c.bf16 %v1996_v59, %v1990_v46 }
 0x30e   : > { %2679 = vmatmul.mubr.bf16.gmra.mrb[20].mxu1 %v2026_v4 }
 0x30f   : > { %4169 = vmatprep.mubr.msk.bf16.mxu1 %vm963_vm0, %v2033_v6 }
 0x316   : > { %2689 = vmatmul.mubr.bf16.gmra.mrb[24].mxu1 %v2032_v35 }
 0x317   : > { %4170 = vmatprep.mubr.msk.bf16.mxu1 %vm963_vm0, %v2039_v9 }
 0x31e   : > { %2699 = vmatmul.mubr.bf16.gmra.mrb[28].mxu1 %v2038_v3 }
 0x31f   : > { %4171 = vmatprep.mubr.msk.bf16.mxu1 %vm963_vm0, %v2045_v31 }
 0x326   : > { %2709 = vmatmul.mubr.bf16.gmra.mrb[32].mxu1 %v2044_v19 }
 0x327   : > { %4172 = vmatprep.mubr.msk.bf16.mxu1 %vm963_vm0, %v2051_v25 }
 0x32e   : > { %2719 = vmatmul.mubr.bf16.gmra.mrb[36].mxu1 %v2050_v39 }
 0x32f   : > { %4173 = vmatprep.mubr.msk.bf16.mxu1 %vm963_vm0, %v2057_v26 }
 0x336   : > { %2729 = vmatmul.mubr.bf16.gmra.mrb[40].mxu1 %v2056_v38 }
 0x365   : > { %v6430_v60 = vpop.f32.mrb[12].mxu0 }
 0x366   : > { %v6432_v40 = vpop.f32.mrb[13].mxu0 }
 0x367   : > { %v6434_v37 = vpop.f32.mrb[14].mxu0 }
 0x368   : > { %v6436_v36 = vpop.f32.mrb[15].mxu0 }
 0x36d   : > { %v6438_v12 = vpop.f32.mrb[16].mxu0 }
 0x36e   : > { %v6440_v49 = vpop.f32.mrb[17].mxu0 }
 0x36f   : > { %v6442_v61 = vpop.f32.mrb[18].mxu0 }
 0x370   : > { %v6444_v44 = vpop.f32.mrb[19].mxu0 }
 0x375   : > { %v6446_v4 = vpop.f32.mrb[20].mxu0 }
 0x376   : > { %v6448_v5 = vpop.f32.mrb[21].mxu0 }
 0x377   : > { %v6450_v1 = vpop.f32.mrb[22].mxu0 }
 0x378   : > { %v6452_v53 = vpop.f32.mrb[23].mxu0 }
 0x37d   : > { %v6454_v6 = vpop.f32.mrb[24].mxu0 }
 0x37e   : > { %v6456_v18 = vpop.f32.mrb[25].mxu0 }
 0x37f   : > { %v6458_v45 = vpop.f32.mrb[26].mxu0 }
 0x380   : > { %v6460_v29 = vpop.f32.mrb[27].mxu0 }
 0x385   : > { %v6462_v52 = vpop.f32.mrb[28].mxu0 }
 0x386   : > { %v6464_v43 = vpop.f32.mrb[29].mxu0 }
 0x387   : > { %v6466_v16 = vpop.f32.mrb[30].mxu0 }
 0x388   : > { %v6468_v62 = vpop.f32.mrb[31].mxu0 }
 0x38d   : > { %v6470_v10 = vpop.f32.mrb[32].mxu0 }
 0x38e   : > { %v6472_v35 = vpop.f32.mrb[33].mxu0 }
 0x38f   : > { %v6474_v58 = vpop.f32.mrb[34].mxu0 }
 0x390   : > { %v6476_v63 = vpop.f32.mrb[35].mxu0 }
 0x395   : > { %v6478_v9 = vpop.f32.mrb[36].mxu0 }
 0x396   : > { %v6480_v11 = vpop.f32.mrb[37].mxu0 }
 0x397   : > { %v6482_v55 = vpop.f32.mrb[38].mxu0 }
 0x398   : > { %v6484_v15 = vpop.f32.mrb[39].mxu0 }
 0x39d   : > { %v6486_v0 = vpop.f32.mrb[40].mxu0 }
 0x39e   : > { %v6488_v56 = vpop.f32.mrb[41].mxu0 }
 0x39f   : > { %v6490_v17 = vpop.f32.mrb[42].mxu0 }
 0x3a0   : > { %v6492_v22 = vpop.f32.mrb[43].mxu0 }
 0x3a5   : > { %v2507_v20 = vpop.f32.mrb[4].mxu0 }
 0x3a6   : > { %v2509_v3 = vpop.f32.mrb[5].mxu0 }
 0x3a7   : > { %v2511_v23 = vpop.f32.mrb[6].mxu0 }
 0x3a8   : > { %v2513_v50 = vpop.f32.mrb[7].mxu0 }
 0x3ad   : > { %v2517_v31 = vpop.f32.mrb[8].mxu0 }
 0x3ae   : > { %v2519_v27 = vpop.f32.mrb[9].mxu0 }
 0x3af   : > { %v2521_v21 = vpop.f32.mrb[10].mxu0 }
 0x3b0   : > { %v2523_v24 = vpop.f32.mrb[11].mxu0 }
 0x3c1   : > { %v2640_v7 = vpop.f32.mrb[44].mxu1 }
 0x3c2   : > { %v6494_v14 = vadd.f32 %v2640_v7, %v2507_v20  ;;  %v2642_v51 = vpop.f32.mrb[45].mxu1 }
 0x3c3   : > { %v6496_v33 = vadd.f32 %v2642_v51, %v2509_v3  ;;  %v2644_v2 = vpop.f32.mrb[46].mxu1 }
 0x3c4   : > { %v6498_v19 = vadd.f32 %v2644_v2, %v2511_v23  ;;  %v2646_v28 = vpop.f32.mrb[47].mxu1 }
 0x3c5   : > { %v6500_v8 = vadd.f32 %v2646_v28, %v2513_v50  ;;  %v2740_v25 = vsel %vm2739_vm3, %v6496_v33, 0.0 }
 0x3c6   : > { %v2741_v34 = vadd.f32 %v6494_v14, %v2740_v25 }
 0x3c7   : > { %v2744_v41 = vsel %vm2739_vm3, %v6500_v8, 0.0 }
 0x3c8   : > { %2742 = vadd.xlane.f32.xlu0 %v2741_v34  ;;  %v2745_v48 = vadd.f32 %v6498_v19, %v2744_v41 }
 0x3c9   : > { %v2650_v57 = vpop.f32.mrb[48].mxu1 }
 0x3ca   : > { %v6507_v32 = vadd.f32 %v2650_v57, %v2517_v31  ;;  %v2652_v47 = vpop.f32.mrb[49].mxu1 }
 0x3cb   : > { %v6510_v54 = vadd.f32 %v2652_v47, %v2519_v27  ;;  %v2654_v13 = vpop.f32.mrb[50].mxu1 }
 0x3cc   : > { %v6512_v39 = vadd.f32 %v2654_v13, %v2521_v21  ;;  %v2656_v42 = vpop.f32.mrb[51].mxu1  ;;  %2746 = vadd.xlane.f32.xlu0 %v2745_v48 }
 0x3cd   : > { %v6514_v30 = vadd.f32 %v2656_v42, %v2523_v24  ;;  %v2748_v26 = vsel %vm2739_vm3, %v6510_v54, 0.0 }
 0x3ce   : > { %v2749_v46 = vadd.f32 %v6507_v32, %v2748_v26 }
 0x3cf   : > { %v2752_v59 = vsel %vm2739_vm3, %v6514_v30, 0.0 }
 0x3d0   : > { %2750 = vadd.xlane.f32.xlu1 %v2749_v46  ;;  %v2753_v23 = vadd.f32 %v6512_v39, %v2752_v59 }
 0x3d1   : > { %v2660_v38 = vpop.f32.mrb[12].mxu1 }
 0x3d2   : > { %v6522_v20 = vadd.f32 %v2660_v38, %v6430_v60  ;;  %v2662_v3 = vpop.f32.mrb[13].mxu1 }
 0x3d3   : > { %v6526_v50 = vadd.f32 %v2662_v3, %v6432_v40  ;;  %v2664_v31 = vpop.f32.mrb[14].mxu1 }
 0x3d4   : > { %v6529_v27 = vadd.f32 %v2664_v31, %v6434_v37  ;;  %v2666_v21 = vpop.f32.mrb[15].mxu1  ;;  %2754 = vadd.xlane.f32.xlu1 %v2753_v23 }
 0x3d5   : > { %v6532_v24 = vadd.f32 %v2666_v21, %v6436_v36  ;;  %v2756_v7 = vsel %vm2739_vm3, %v6526_v50, 0.0 }
 0x3d6   : > { %v2757_v60 = vadd.f32 %v6522_v20, %v2756_v7 }
 0x3d7   : > { %v2760_v51 = vsel %vm2739_vm3, %v6532_v24, 0.0 }
 0x3d8   : > { %2758 = vadd.xlane.f32.xlu0 %v2757_v60  ;;  %v2761_v40 = vadd.f32 %v6529_v27, %v2760_v51 }
 0x3d9   : > { %v2670_v2 = vpop.f32.mrb[16].mxu1 }
 0x3da   : > { %v6541_v37 = vadd.f32 %v2670_v2, %v6438_v12  ;;  %v2672_v28 = vpop.f32.mrb[17].mxu1  ;;  %2762 = vadd.xlane.f32.xlu1 %v2761_v40 }
 0x3db   : > { %v6544_v36 = vadd.f32 %v2672_v28, %v6440_v49  ;;  %v2674_v25 = vpop.f32.mrb[18].mxu1 }
 0x3dc   : > { %v6547_v34 = vadd.f32 %v2674_v25, %v6442_v61  ;;  %v2676_v41 = vpop.f32.mrb[19].mxu1 }
 0x3dd   : > { %v6550_v57 = vadd.f32 %v2676_v41, %v6444_v44  ;;  %v2764_v47 = vsel %vm2739_vm3, %v6544_v36, 0.0 }
 0x3de   : > { %v2765_v48 = vadd.f32 %v6541_v37, %v2764_v47 }
 0x3df   : > { %v2768_v12 = vsel %vm2739_vm3, %v6550_v57, 0.0 }
 0x3e0   : > { %2766 = vadd.xlane.f32.xlu0 %v2765_v48  ;;  %v2769_v49 = vadd.f32 %v6547_v34, %v2768_v12 }
 0x3e1   : > { %v2680_v13 = vpop.f32.mrb[20].mxu1 }
 0x3e2   : > { %v6559_v42 = vadd.f32 %v2680_v13, %v6446_v4  ;;  %v2682_v61 = vpop.f32.mrb[21].mxu1  ;;  %2770 = vadd.xlane.f32.xlu1 %v2769_v49 }
 0x3e3   : > { %v6562_v44 = vadd.f32 %v2682_v61, %v6448_v5  ;;  %v2684_v26 = vpop.f32.mrb[22].mxu1 }
 0x3e4   : > { %v6565_v46 = vadd.f32 %v2684_v26, %v6450_v1  ;;  %v2686_v59 = vpop.f32.mrb[23].mxu1 }
 0x3e5   : > { %v6568_v38 = vadd.f32 %v2686_v59, %v6452_v53  ;;  %v2772_v3 = vsel %vm2739_vm3, %v6562_v44, 0.0 }
 0x3e6   : > { %v2773_v23 = vadd.f32 %v6559_v42, %v2772_v3 }
 0x3e7   : > { %v2776_v4 = vsel %vm2739_vm3, %v6568_v38, 0.0 }
 0x3e8   : > { %2774 = vadd.xlane.f32.xlu0 %v2773_v23  ;;  %v2777_v5 = vadd.f32 %v6565_v46, %v2776_v4 }
 0x3e9   : > { %v2690_v31 = vpop.f32.mrb[24].mxu1 }
 0x3ea   : > { %v6577_v21 = vadd.f32 %v2690_v31, %v6454_v6  ;;  %v2692_v1 = vpop.f32.mrb[25].mxu1  ;;  %2778 = vadd.xlane.f32.xlu1 %v2777_v5 }
 0x3eb   : > { %v6580_v53 = vadd.f32 %v2692_v1, %v6456_v18  ;;  %v2694_v7 = vpop.f32.mrb[26].mxu1 }
 0x3ec   : > { %v6583_v60 = vadd.f32 %v2694_v7, %v6458_v45  ;;  %v2696_v51 = vpop.f32.mrb[27].mxu1 }
 0x3ed   : > { %v6586_v40 = vadd.f32 %v2696_v51, %v6460_v29  ;;  %v2780_v2 = vsel %vm2739_vm3, %v6580_v53, 0.0 }
 0x3ee   : > { %v2781_v28 = vadd.f32 %v6577_v21, %v2780_v2 }
 0x3ef   : > { %v2784_v6 = vsel %vm2739_vm3, %v6586_v40, 0.0 }
 0x3f0   : > { %2782 = vadd.xlane.f32.xlu0 %v2781_v28  ;;  %v2785_v18 = vadd.f32 %v6583_v60, %v2784_v6 }
 0x3f1   : > { %v2700_v25 = vpop.f32.mrb[28].mxu1 }
 0x3f2   : > { %v6595_v41 = vadd.f32 %v2700_v25, %v6462_v52  ;;  %v2702_v45 = vpop.f32.mrb[29].mxu1  ;;  %2786 = vadd.xlane.f32.xlu1 %v2785_v18 }
 0x3f3   : > { %v6598_v29 = vadd.f32 %v2702_v45, %v6464_v43  ;;  %v2704_v47 = vpop.f32.mrb[30].mxu1 }
 0x3f4   : > { %v6601_v48 = vadd.f32 %v2704_v47, %v6466_v16  ;;  %v2706_v12 = vpop.f32.mrb[31].mxu1 }
 0x3f5   : > { %v6604_v49 = vadd.f32 %v2706_v12, %v6468_v62  ;;  %v2788_v13 = vsel %vm2739_vm3, %v6598_v29, 0.0 }
 0x3f6   : > { %v2789_v61 = vadd.f32 %v6595_v41, %v2788_v13 }
 0x3f7   : > { %v2792_v52 = vsel %vm2739_vm3, %v6604_v49, 0.0 }
 0x3f8   : > { %2790 = vadd.xlane.f32.xlu0 %v2789_v61  ;;  %v2793_v43 = vadd.f32 %v6601_v48, %v2792_v52 }
 0x3f9   : > { %v2710_v26 = vpop.f32.mrb[32].mxu1 }
 0x3fa   : > { %v6613_v59 = vadd.f32 %v2710_v26, %v6470_v10  ;;  %v2712_v16 = vpop.f32.mrb[33].mxu1  ;;  %2794 = vadd.xlane.f32.xlu1 %v2793_v43 }
 0x3fb   : > { %v6616_v62 = vadd.f32 %v2712_v16, %v6472_v35  ;;  %v2714_v3 = vpop.f32.mrb[34].mxu1 }
 0x3fc   : > { %v6619_v23 = vadd.f32 %v2714_v3, %v6474_v58  ;;  %v2716_v4 = vpop.f32.mrb[35].mxu1 }
 0x3fd   : > { %v6622_v5 = vadd.f32 %v2716_v4, %v6476_v63  ;;  %v2796_v31 = vsel %vm2739_vm3, %v6616_v62, 0.0 }
 0x3fe   : > { %v2797_v1 = vadd.f32 %v6613_v59, %v2796_v31 }
 0x3ff   : > { %v2800_v10 = vsel %vm2739_vm3, %v6622_v5, 0.0 }
 0x400   : > { %2798 = vadd.xlane.f32.xlu0 %v2797_v1  ;;  %v2801_v35 = vadd.f32 %v6619_v23, %v2800_v10  ;;  %v6678_v10 = vpop.permute.xlu1 %3262 }
 0x401   : > { %v2720_v7 = vpop.f32.mrb[36].mxu1 }
 0x402   : > { %v6631_v51 = vadd.f32 %v2720_v7, %v6478_v9  ;;  %v2722_v58 = vpop.f32.mrb[37].mxu1  ;;  %2802 = vadd.xlane.f32.xlu1 %v2801_v35 }
 0x403   : > { %v6634_v63 = vadd.f32 %v2722_v58, %v6480_v11  ;;  %v2724_v2 = vpop.f32.mrb[38].mxu1 }
 0x404   : > { %v6637_v28 = vadd.f32 %v2724_v2, %v6482_v55  ;;  %v2726_v6 = vpop.f32.mrb[39].mxu1 }
 0x405   : > { %v6640_v18 = vadd.f32 %v2726_v6, %v6484_v15  ;;  %v2804_v25 = vsel %vm2739_vm3, %v6634_v63, 0.0 }
 0x406   : > { %v2805_v45 = vadd.f32 %v6631_v51, %v2804_v25 }
 0x407   : > { %v2808_v9 = vsel %vm2739_vm3, %v6640_v18, 0.0 }
 0x408   : > { %2806 = vadd.xlane.f32.xlu0 %v2805_v45  ;;  %v2809_v11 = vadd.f32 %v6637_v28, %v2808_v9 }
 0x409   : > { %v2730_v47 = vpop.f32.mrb[40].mxu1 }
 0x40a   : > { %v6649_v12 = vadd.f32 %v2730_v47, %v6486_v0  ;;  %v2732_v55 = vpop.f32.mrb[41].mxu1  ;;  %2810 = vadd.xlane.f32.xlu1 %v2809_v11  ;;  %v3242_v0 = vld [vmem:[%s7271_s8 + $0x10] sm:$0xff] }
 0x40b   : > { %v6652_v15 = vadd.f32 %v2732_v55, %v6488_v56  ;;  %v2734_v13 = vpop.f32.mrb[42].mxu1  ;;  %v3241_v56 = vld [vmem:[%s7271_s8 + $0x8] sm:$0xff] }
 0x40c   : > { %v6655_v61 = vadd.f32 %v2734_v13, %v6490_v17  ;;  %v2736_v52 = vpop.f32.mrb[43].mxu1 }
 0x40d   : > { %v6658_v43 = vadd.f32 %v2736_v52, %v6492_v22  ;;  %v2812_v26 = vsel %vm2739_vm3, %v6652_v15, 0.0 }
 0x40e   : > { %v2813_v16 = vadd.f32 %v6649_v12, %v2812_v26 }
 0x40f   : > { %v2816_v17 = vsel %vm2739_vm3, %v6658_v43, 0.0 }
 0x410   : > { %2814 = vadd.xlane.f32.xlu0 %v2813_v16  ;;  %v2817_v22 = vadd.f32 %v6655_v61, %v2816_v17 }
 0x41b   : > { %3272 = vperm.xlu1 %4406, %v3242_v0  }
 0x426   : > { %3267 = vperm.xlu0 %4407, %v3241_v56  }
 0x43f   : > { %2818 = vadd.xlane.f32.xlu1 %v2817_v22 }
 0x455   : > { %v2743_v3 = vpop.xlane.xlu0 %2742 }
 0x456   : > { %v2820_v4 = vmul.f32 0.0051020407, %v2743_v3 }
 0x458   : > { %v6673_v31 = vsub.f32 %v6494_v14, %v2820_v4  ;;  %v6676_v1 = vsub.f32 %v6496_v33, %v2820_v4 }
 0x459   : > { %v2747_v35 = vpop.xlane.xlu0 %2746 }
 0x45a   : > { %v2821_v7 = vmul.f32 0.0051020407, %v2747_v35  ;;  %v2880_v58 = vmul.f32 %v6673_v31, %v6673_v31  ;;  %v2881_v2 = vmul.f32 %v6676_v1, %v6676_v1 }
 0x45c   : > { %v6685_v6 = vsub.f32 %v6498_v19, %v2821_v7  ;;  %v6688_v25 = vsub.f32 %v6500_v8, %v2821_v7  ;;  %v2920_v14 = vsel %vm2739_vm3, %v2881_v2, 0.0 }
 0x45d   : > { %v2751_v33 = vpop.xlane.xlu1 %2750  ;;  %v2921_v45 = vadd.f32 %v2920_v14, %v2880_v58 }
 0x45e   : > { %v2822_v9 = vmul.f32 0.0051020407, %v2751_v33  ;;  %v2882_v11 = vmul.f32 %v6685_v6, %v6685_v6  ;;  %v2883_v47 = vmul.f32 %v6688_v25, %v6688_v25 }
 0x45f   : > { %2922 = vadd.xlane.f32.xlu0 %v2921_v45 }
 0x460   : > { %v6696_v55 = vsub.f32 %v6507_v32, %v2822_v9  ;;  %v6699_v19 = vsub.f32 %v6510_v54, %v2822_v9  ;;  %v2924_v8 = vsel %vm2739_vm3, %v2883_v47, 0.0 }
 0x461   : > { %v2755_v13 = vpop.xlane.xlu1 %2754  ;;  %v2925_v52 = vadd.f32 %v2924_v8, %v2882_v11 }
 0x462   : > { %v2823_v26 = vmul.f32 0.0051020407, %v2755_v13  ;;  %v2884_v16 = vmul.f32 %v6696_v55, %v6696_v55  ;;  %v2885_v0 = vmul.f32 %v6699_v19, %v6699_v19 }
 0x463   : > { %2926 = vadd.xlane.f32.xlu1 %v2925_v52 }
 0x464   : > { %v6707_v56 = vsub.f32 %v6512_v39, %v2823_v26  ;;  %v6710_v32 = vsub.f32 %v6514_v30, %v2823_v26  ;;  %v2928_v54 = vsel %vm2739_vm3, %v2885_v0, 0.0 }
 0x465   : > { %v2759_v17 = vpop.xlane.xlu0 %2758  ;;  %v2929_v22 = vadd.f32 %v2928_v54, %v2884_v16 }
 0x466   : > { %v2824_v3 = vmul.f32 0.0051020407, %v2759_v17  ;;  %v2886_v4 = vmul.f32 %v6707_v56, %v6707_v56  ;;  %v2887_v35 = vmul.f32 %v6710_v32, %v6710_v32 }
 0x467   : > { %2930 = vadd.xlane.f32.xlu0 %v2929_v22  ;;  %v2763_v7 = vpop.xlane.xlu1 %2762 }
 0x468   : > { %v6718_v58 = vsub.f32 %v6522_v20, %v2824_v3  ;;  %v6721_v39 = vsub.f32 %v6526_v50, %v2824_v3  ;;  %v2825_v30 = vmul.f32 0.0051020407, %v2763_v7  ;;  %v2932_v2 = vsel %vm2739_vm3, %v2887_v35, 0.0 }
 0x469   : > { %v2933_v14 = vadd.f32 %v2932_v2, %v2886_v4 }
 0x46a   : > { %v6725_v33 = vsub.f32 %v6529_v27, %v2825_v30  ;;  %v6728_v45 = vsub.f32 %v6532_v24, %v2825_v30  ;;  %v2888_v9 = vmul.f32 %v6718_v58, %v6718_v58  ;;  %v2889_v20 = vmul.f32 %v6721_v39, %v6721_v39 }
 0x46b   : > { %2934 = vadd.xlane.f32.xlu1 %v2933_v14 }
 0x46c   : > { %v2936_v50 = vsel %vm2739_vm3, %v2889_v20, 0.0  ;;  %v2890_v11 = vmul.f32 %v6725_v33, %v6725_v33  ;;  %v2891_v47 = vmul.f32 %v6728_v45, %v6728_v45 }
 0x46d   : > { %v2767_v27 = vpop.xlane.xlu0 %2766  ;;  %v2937_v8 = vadd.f32 %v2936_v50, %v2888_v9 }
 0x46e   : > { %v2826_v13 = vmul.f32 0.0051020407, %v2767_v27  ;;  %v2940_v24 = vsel %vm2739_vm3, %v2891_v47, 0.0 }
 0x46f   : > { %2938 = vadd.xlane.f32.xlu0 %v2937_v8  ;;  %v2771_v52 = vpop.xlane.xlu1 %2770  ;;  %v2941_v26 = vadd.f32 %v2940_v24, %v2890_v11 }
 0x470   : > { %v6741_v16 = vsub.f32 %v6541_v37, %v2826_v13  ;;  %v6744_v0 = vsub.f32 %v6544_v36, %v2826_v13  ;;  %v2827_v54 = vmul.f32 0.0051020407, %v2771_v52 }
 0x471   : > { %2942 = vadd.xlane.f32.xlu1 %v2941_v26 }
 0x472   : > { %v6747_v17 = vsub.f32 %v6547_v34, %v2827_v54  ;;  %v6750_v22 = vsub.f32 %v6550_v57, %v2827_v54  ;;  %v2892_v3 = vmul.f32 %v6741_v16, %v6741_v16  ;;  %v2893_v4 = vmul.f32 %v6744_v0, %v6744_v0 }
 0x474   : > { %v2944_v37 = vsel %vm2739_vm3, %v2893_v4, 0.0  ;;  %v2894_v36 = vmul.f32 %v6747_v17, %v6747_v17  ;;  %v2895_v35 = vmul.f32 %v6750_v22, %v6750_v22 }
 0x475   : > { %v2775_v7 = vpop.xlane.xlu0 %2774  ;;  %v2945_v34 = vadd.f32 %v2944_v37, %v2892_v3 }
 0x476   : > { %v2828_v30 = vmul.f32 0.0051020407, %v2775_v7  ;;  %v2948_v57 = vsel %vm2739_vm3, %v2895_v35, 0.0 }
 0x477   : > { %2946 = vadd.xlane.f32.xlu0 %v2945_v34  ;;  %v2779_v2 = vpop.xlane.xlu1 %2778  ;;  %v2949_v14 = vadd.f32 %v2948_v57, %v2894_v36 }
 0x478   : > { %v6763_v9 = vsub.f32 %v6559_v42, %v2828_v30  ;;  %v6766_v20 = vsub.f32 %v6562_v44, %v2828_v30  ;;  %v2829_v50 = vmul.f32 0.0051020407, %v2779_v2 }
 0x479   : > { %2950 = vadd.xlane.f32.xlu1 %v2949_v14 }
 0x47a   : > { %v6769_v11 = vsub.f32 %v6565_v46, %v2829_v50  ;;  %v6772_v47 = vsub.f32 %v6568_v38, %v2829_v50  ;;  %v2896_v27 = vmul.f32 %v6763_v9, %v6763_v9  ;;  %v2897_v8 = vmul.f32 %v6766_v20, %v6766_v20 }
 0x47c   : > { %v2952_v42 = vsel %vm2739_vm3, %v2897_v8, 0.0  ;;  %v2898_v44 = vmul.f32 %v6769_v11, %v6769_v11  ;;  %v2899_v13 = vmul.f32 %v6772_v47, %v6772_v47 }
 0x47d   : > { %v2783_v24 = vpop.xlane.xlu0 %2782  ;;  %v2953_v46 = vadd.f32 %v2952_v42, %v2896_v27 }
 0x47e   : > { %v2830_v52 = vmul.f32 0.0051020407, %v2783_v24  ;;  %v2956_v38 = vsel %vm2739_vm3, %v2899_v13, 0.0 }
 0x47f   : > { %2954 = vadd.xlane.f32.xlu0 %v2953_v46  ;;  %v2787_v26 = vpop.xlane.xlu1 %2786  ;;  %v2957_v54 = vadd.f32 %v2956_v38, %v2898_v44 }
 0x480   : > { %v6785_v3 = vsub.f32 %v6577_v21, %v2830_v52  ;;  %v6788_v4 = vsub.f32 %v6580_v53, %v2830_v52  ;;  %v2831_v37 = vmul.f32 0.0051020407, %v2787_v26 }
 0x481   : > { %2958 = vadd.xlane.f32.xlu1 %v2957_v54 }
 0x482   : > { %v6791_v36 = vsub.f32 %v6583_v60, %v2831_v37  ;;  %v6794_v35 = vsub.f32 %v6586_v40, %v2831_v37  ;;  %v2900_v7 = vmul.f32 %v6785_v3, %v6785_v3  ;;  %v2901_v34 = vmul.f32 %v6788_v4, %v6788_v4 }
 0x484   : > { %v2960_v21 = vsel %vm2739_vm3, %v2901_v34, 0.0  ;;  %v2902_v53 = vmul.f32 %v6791_v36, %v6791_v36  ;;  %v2903_v30 = vmul.f32 %v6794_v35, %v6794_v35 }
 0x485   : > { %v2791_v57 = vpop.xlane.xlu0 %2790  ;;  %v2961_v60 = vadd.f32 %v2960_v21, %v2900_v7 }
 0x486   : > { %v2832_v2 = vmul.f32 0.0051020407, %v2791_v57  ;;  %v2964_v40 = vsel %vm2739_vm3, %v2903_v30, 0.0 }
 0x487   : > { %2962 = vadd.xlane.f32.xlu0 %v2961_v60  ;;  %v2795_v14 = vpop.xlane.xlu1 %2794  ;;  %v2965_v50 = vadd.f32 %v2964_v40, %v2902_v53 }
 0x488   : > { %v6807_v27 = vsub.f32 %v6595_v41, %v2832_v2  ;;  %v6810_v8 = vsub.f32 %v6598_v29, %v2832_v2  ;;  %v2833_v42 = vmul.f32 0.0051020407, %v2795_v14 }
 0x489   : > { %2966 = vadd.xlane.f32.xlu1 %v2965_v50 }
 0x48a   : > { %v6813_v44 = vsub.f32 %v6601_v48, %v2833_v42  ;;  %v6816_v13 = vsub.f32 %v6604_v49, %v2833_v42  ;;  %v2904_v24 = vmul.f32 %v6807_v27, %v6807_v27  ;;  %v2905_v46 = vmul.f32 %v6810_v8, %v6810_v8 }
 0x48c   : > { %v2968_v41 = vsel %vm2739_vm3, %v2905_v46, 0.0  ;;  %v2906_v29 = vmul.f32 %v6813_v44, %v6813_v44  ;;  %v2907_v52 = vmul.f32 %v6816_v13, %v6816_v13 }
 0x48d   : > { %v2799_v38 = vpop.xlane.xlu0 %2798  ;;  %v2969_v48 = vadd.f32 %v2968_v41, %v2904_v24 }
 0x48e   : > { %v2834_v26 = vmul.f32 0.0051020407, %v2799_v38  ;;  %v2972_v49 = vsel %vm2739_vm3, %v2907_v52, 0.0 }
 0x48f   : > { %2970 = vadd.xlane.f32.xlu0 %v2969_v48  ;;  %v2803_v54 = vpop.xlane.xlu1 %2802  ;;  %v2973_v37 = vadd.f32 %v2972_v49, %v2906_v29 }
 0x490   : > { %v6829_v7 = vsub.f32 %v6613_v59, %v2834_v26  ;;  %v6832_v34 = vsub.f32 %v6616_v62, %v2834_v26  ;;  %v2835_v21 = vmul.f32 0.0051020407, %v2803_v54 }
 0x491   : > { %2974 = vadd.xlane.f32.xlu1 %v2973_v37 }
 0x492   : > { %v6835_v53 = vsub.f32 %v6619_v23, %v2835_v21  ;;  %v6838_v30 = vsub.f32 %v6622_v5, %v2835_v21  ;;  %v2908_v57 = vmul.f32 %v6829_v7, %v6829_v7  ;;  %v2909_v60 = vmul.f32 %v6832_v34, %v6832_v34 }
 0x494   : > { %v2976_v59 = vsel %vm2739_vm3, %v2909_v60, 0.0  ;;  %v2910_v62 = vmul.f32 %v6835_v53, %v6835_v53  ;;  %v2911_v2 = vmul.f32 %v6838_v30, %v6838_v30 }
 0x495   : > { %v2807_v40 = vpop.xlane.xlu0 %2806  ;;  %v2977_v23 = vadd.f32 %v2976_v59, %v2908_v57 }
 0x496   : > { %v2836_v14 = vmul.f32 0.0051020407, %v2807_v40  ;;  %v2980_v5 = vsel %vm2739_vm3, %v2911_v2, 0.0  ;;  %v3244_v40 = vld [vmem:[%s7271_s8 + $0x20] sm:$0xff] }
 0x497   : > { %2978 = vadd.xlane.f32.xlu0 %v2977_v23  ;;  %v2811_v50 = vpop.xlane.xlu1 %2810  ;;  %v2981_v42 = vadd.f32 %v2980_v5, %v2910_v62  ;;  %v3243_v23 = vld [vmem:[%s7271_s8 + $0x18] sm:$0xff]  ;;  %v3245_v5 = vld [vmem:[%s7271_s8 + $0x28] sm:$0xff] }
 0x498   : > { %v6851_v24 = vsub.f32 %v6631_v51, %v2836_v14  ;;  %v6854_v46 = vsub.f32 %v6634_v63, %v2836_v14  ;;  %v2837_v41 = vmul.f32 0.0051020407, %v2811_v50  ;;  %v3250_v14 = vld [vmem:[%s7271_s8 + $0x50] sm:$0xff]  ;;  %v3252_v50 = vld [vmem:[%s7271_s8 + $0x60] sm:$0xff] }
 0x499   : > { %2982 = vadd.xlane.f32.xlu1 %v2981_v42  ;;  %v3247_v42 = vld [vmem:[%s7271_s8 + $0x38] sm:$0xff] }
 0x49a   : > { %v6857_v29 = vsub.f32 %v6637_v28, %v2837_v41  ;;  %v6860_v52 = vsub.f32 %v6640_v18, %v2837_v41  ;;  %v2912_v38 = vmul.f32 %v6851_v24, %v6851_v24  ;;  %v2913_v48 = vmul.f32 %v6854_v46, %v6854_v46  ;;  %v3254_v41 = vld [vmem:[%s7271_s8 + $0x70] sm:$0xff] }
 0x49c   : > { %7281 = vst [vmem:[#allocation3_spill] sm:$0xff] %v6860_v52  ;;  %v2984_v51 = vsel %vm2739_vm3, %v2913_v48, 0.0  ;;  %v2914_v63 = vmul.f32 %v6857_v29, %v6857_v29  ;;  %v2915_v26 = vmul.f32 %v6860_v52, %v6860_v52  ;;  %v3251_v48 = vld [vmem:[%s7271_s8 + $0x58] sm:$0xff] }
 0x49d   : > { %v2815_v49 = vpop.xlane.xlu0 %2814  ;;  %v2985_v28 = vadd.f32 %v2984_v51, %v2912_v38  ;;  %v3249_v38 = vld [vmem:[%s7271_s8 + $0x48] sm:$0xff] }
 0x49e   : > { %v2838_v54 = vmul.f32 0.0051020407, %v2815_v49  ;;  %v2988_v18 = vsel %vm2739_vm3, %v2915_v26, 0.0  ;;  %v3253_v51 = vld [vmem:[%s7271_s8 + $0x68] sm:$0xff]  ;;  %v3255_v26 = vld [vmem:[%s7271_s8 + $0x78] sm:$0xff] }
 0x49f   : > { %2986 = vadd.xlane.f32.xlu0 %v2985_v28  ;;  %v2989_v37 = vadd.f32 %v2988_v18, %v2914_v63  ;;  %v6919_v63 = vpop.permute.xlu1 %3272  ;;  %v3257_v28 = vld [vmem:[%s7271_s8 + $0x88] sm:$0xff] }
 0x4a0   : > { %v6873_v21 = vsub.f32 %v6649_v12, %v2838_v54  ;;  %v6876_v57 = vsub.f32 %v6652_v15, %v2838_v54  ;;  %v3246_v12 = vld [vmem:[%s7271_s8 + $0x30] sm:$0xff]  ;;  %v3248_v15 = vld [vmem:[%s7271_s8 + $0x40] sm:$0xff] }
 0x4a1   : > { %2990 = vadd.xlane.f32.xlu1 %v2989_v37 }
 0x4a2   : > { %7282 = vst [vmem:[#allocation4_spill] sm:$0xff] %v6873_v21  ;;  %7283 = vst [vmem:[#allocation5_spill] sm:$0xff] %v6876_v57  ;;  %v2916_v60 = vmul.f32 %v6873_v21, %v6873_v21  ;;  %v2917_v59 = vmul.f32 %v6876_v57, %v6876_v57 }
 0x4a4   : > { %v2992_v62 = vsel %vm2739_vm3, %v2917_v59, 0.0 }
 0x4a5   : > { %v2993_v2 = vadd.f32 %v2992_v62, %v2916_v60 }
 0x4a7   : > { %2994 = vadd.xlane.f32.xlu0 %v2993_v2  ;;  %v6938_v2 = vpop.permute.xlu0 %3267 }
 0x4b2   : > { %3282 = vperm.xlu1 %4406, %v3244_v40  }
 0x4b6   : > { %3292 = vperm.xlu1 %4406, %v3246_v12  }
 0x4ba   : > { %3302 = vperm.xlu1 %4406, %v3248_v15  }
 0x4bd   : > { %3277 = vperm.xlu0 %4407, %v3243_v23  }
 0x4be   : > { %3312 = vperm.xlu1 %4406, %v3250_v14  }
 0x4c1   : > { %3287 = vperm.xlu0 %4407, %v3245_v5  }
 0x4c2   : > { %3322 = vperm.xlu1 %4406, %v3252_v50  }
 0x4c5   : > { %3297 = vperm.xlu0 %4407, %v3247_v42  }
 0x4c6   : > { %3332 = vperm.xlu1 %4406, %v3254_v41  }
 0x4c9   : > { %3307 = vperm.xlu0 %4407, %v3249_v38   ;;  %v3256_v38 = vld [vmem:[%s7271_s8 + $0x80] sm:$0xff] }
 0x4cc   : > { %v2819_v49 = vpop.xlane.xlu1 %2818 }
 0x4cd   : > { %3317 = vperm.xlu0 %4407, %v3251_v48   ;;  %v2839_v54 = vmul.f32 0.0051020407, %v2819_v49 }
 0x4cf   : > { %v6928_v18 = vsub.f32 %v6658_v43, %v2839_v54  ;;  %v6931_v37 = vsub.f32 %v6655_v61, %v2839_v54 }
 0x4d1   : > { %3327 = vperm.xlu0 %4407, %v3253_v51   ;;  %7284 = vst [vmem:[#allocation6_spill] sm:$0xff] %v6928_v18  ;;  %7285 = vst [vmem:[#allocation7_spill] sm:$0xff] %v6931_v37  ;;  %v2919_v60 = vmul.f32 %v6928_v18, %v6928_v18  ;;  %v2918_v59 = vmul.f32 %v6931_v37, %v6931_v37  ;;  %v3060_v51 = vld [vmem:[%s7270_s7] sm:$0xff] }
 0x4d3   : > { %v2996_v62 = vsel %vm2739_vm3, %v2919_v60, 0.0 }
 0x4d4   : > { %v2997_v40 = vadd.f32 %v2996_v62, %v2918_v59  ;;  %v3061_v59 = vld [vmem:[%s7270_s7 + $0x8] sm:$0xff] }
 0x4d5   : > { %3337 = vperm.xlu0 %4407, %v3255_v26  }
 0x4d9   : > { %3347 = vperm.xlu0 %4407, %v3257_v28  }
 0x4ea   : > { %2998 = vadd.xlane.f32.xlu1 %v2997_v40 }
 0x4ec   : > { %v2923_v12 = vpop.xlane.xlu0 %2922 }
 0x4ed   : > { %v3000_v15 = vmul.f32 0.0051020407, %v2923_v12 }
 0x4ef   : > { %v3020_v23 = vadd.f32 0.001, %v3000_v15 }
 0x4f0   : > { %v2927_v43 = vpop.xlane.xlu1 %2926 }
 0x4f1   : > { %4630 = vrsqrt.f32 %v3020_v23  ;;  %v3001_v14 = vmul.f32 0.0051020407, %v2927_v43 }
 0x4f3   : > { %v3021_v61 = vadd.f32 0.001, %v3001_v14  ;;  %v3062_v14 = vld [vmem:[%s7270_s7 + $0x10] sm:$0xff] }
 0x4f4   : > { %v2931_v5 = vpop.xlane.xlu0 %2930 }
 0x4f5   : > { %4632 = vrsqrt.f32 %v3021_v61  ;;  %v3002_v50 = vmul.f32 0.0051020407, %v2931_v5 }
 0x4f7   : > { %v3022_v42 = vadd.f32 0.001, %v3002_v50 }
 0x4f8   : > { %v2935_v41 = vpop.xlane.xlu1 %2934 }
 0x4f9   : > { %4634 = vrsqrt.f32 %v3022_v42  ;;  %v3003_v48 = vmul.f32 0.0051020407, %v2935_v41  ;;  %v3063_v41 = vld [vmem:[%s7270_s7 + $0x18] sm:$0xff] }
 0x4fb   : > { %v4631_v26 = vpop.eup %4630  ;;  %v3023_v49 = vadd.f32 0.001, %v3003_v48  ;;  %3342 = vperm.xlu1 %4406, %v3256_v38  }
 0x4fc   : > { %v2939_v28 = vpop.xlane.xlu0 %2938  ;;  %v3080_v54 = vmul.f32 %v4631_v26, %v3060_v51 }
 0x4fd   : > { %4636 = vrsqrt.f32 %v3023_v49  ;;  %v3004_v60 = vmul.f32 0.0051020407, %v2939_v28 }
 0x4fe   : > { %3102 = vperm.xlu0 %4407, %v3080_v54   ;;  %v2943_v62 = vpop.xlane.xlu1 %2942  ;;  %v3064_v54 = vld [vmem:[%s7270_s7 + $0x20] sm:$0xff] }
 0x4ff   : > { %v4633_v40 = vpop.eup %4632  ;;  %v3024_v12 = vadd.f32 0.001, %v3004_v60  ;;  %v3005_v15 = vmul.f32 0.0051020407, %v2943_v62 }
 0x500   : > { %v3081_v23 = vmul.f32 %v4633_v40, %v3061_v59 }
 0x501   : > { %4638 = vrsqrt.f32 %v3024_v12  ;;  %v3025_v43 = vadd.f32 0.001, %v3005_v15  ;;  %v3065_v15 = vld [vmem:[%s7270_s7 + $0x28] sm:$0xff] }
 0x502   : > { %3107 = vperm.xlu1 %4406, %v3081_v23  }
 0x503   : > { %v4635_v61 = vpop.eup %4634  ;;  %4640 = vrsqrt.f32 %v3025_v43 }
 0x504   : > { %v2947_v5 = vpop.xlane.xlu0 %2946  ;;  %v3082_v50 = vmul.f32 %v4635_v61, %v3062_v14 }
 0x505   : > { %v3006_v42 = vmul.f32 0.0051020407, %v2947_v5 }
 0x506   : > { %3112 = vperm.xlu1 %4406, %v3082_v50   ;;  %v2951_v38 = vpop.xlane.xlu1 %2950  ;;  %v3066_v50 = vld [vmem:[%s7270_s7 + $0x30] sm:$0xff] }
 0x507   : > { %v4637_v48 = vpop.eup %4636  ;;  %v3026_v51 = vadd.f32 0.001, %v3006_v42  ;;  %v3007_v26 = vmul.f32 0.0051020407, %v2951_v38 }
 0x508   : > { %v3083_v49 = vmul.f32 %v4637_v48, %v3063_v41 }
 0x509   : > { %4642 = vrsqrt.f32 %v3026_v51  ;;  %v3027_v28 = vadd.f32 0.001, %v3007_v26  ;;  %v3067_v26 = vld [vmem:[%s7270_s7 + $0x38] sm:$0xff] }
 0x50a   : > { %3117 = vperm.xlu1 %4406, %v3083_v49  }
 0x50b   : > { %v4639_v60 = vpop.eup %4638  ;;  %4644 = vrsqrt.f32 %v3027_v28 }
 0x50c   : > { %v2955_v59 = vpop.xlane.xlu0 %2954  ;;  %v3084_v62 = vmul.f32 %v4639_v60, %v3064_v54 }
 0x50d   : > { %v4641_v40 = vpop.eup %4640  ;;  %v3008_v12 = vmul.f32 0.0051020407, %v2955_v59 }
 0x50e   : > { %3122 = vperm.xlu1 %4406, %v3084_v62   ;;  %v2959_v23 = vpop.xlane.xlu1 %2958  ;;  %v3085_v61 = vmul.f32 %v4641_v40, %v3065_v15  ;;  %v3068_v62 = vld [vmem:[%s7270_s7 + $0x40] sm:$0xff] }
 0x50f   : > { %v3028_v43 = vadd.f32 0.001, %v3008_v12  ;;  %v3009_v14 = vmul.f32 0.0051020407, %v2959_v23  ;;  %v3069_v12 = vld [vmem:[%s7270_s7 + $0x48] sm:$0xff] }
 0x511   : > { %4646 = vrsqrt.f32 %v3028_v43  ;;  %v3029_v5 = vadd.f32 0.001, %v3009_v14 }
 0x512   : > { %3127 = vperm.xlu1 %4406, %v3085_v61  }
 0x513   : > { %v4643_v42 = vpop.eup %4642  ;;  %4648 = vrsqrt.f32 %v3029_v5 }
 0x514   : > { %v2963_v41 = vpop.xlane.xlu0 %2962  ;;  %v3086_v38 = vmul.f32 %v4643_v42, %v3066_v50 }
 0x515   : > { %v4645_v48 = vpop.eup %4644  ;;  %v3010_v51 = vmul.f32 0.0051020407, %v2963_v41 }
 0x516   : > { %3132 = vperm.xlu1 %4406, %v3086_v38   ;;  %v2967_v49 = vpop.xlane.xlu1 %2966  ;;  %v3087_v60 = vmul.f32 %v4645_v48, %v3067_v26  ;;  %v3070_v38 = vld [vmem:[%s7270_s7 + $0x50] sm:$0xff] }
 0x517   : > { %v3030_v28 = vadd.f32 0.001, %v3010_v51  ;;  %v3011_v54 = vmul.f32 0.0051020407, %v2967_v49  ;;  %v3071_v51 = vld [vmem:[%s7270_s7 + $0x58] sm:$0xff] }
 0x519   : > { %4650 = vrsqrt.f32 %v3030_v28  ;;  %v3031_v59 = vadd.f32 0.001, %v3011_v54 }
 0x51a   : > { %3137 = vperm.xlu1 %4406, %v3087_v60  }
 0x51b   : > { %v4647_v40 = vpop.eup %4646  ;;  %4652 = vrsqrt.f32 %v3031_v59 }
 0x51c   : > { %v2971_v15 = vpop.xlane.xlu0 %2970  ;;  %v3088_v23 = vmul.f32 %v4647_v40, %v3068_v62 }
 0x51d   : > { %v4649_v43 = vpop.eup %4648  ;;  %v3012_v14 = vmul.f32 0.0051020407, %v2971_v15  ;;  %v3072_v15 = vld [vmem:[%s7270_s7 + $0x60] sm:$0xff] }
 0x51e   : > { %3142 = vperm.xlu1 %4406, %v3088_v23   ;;  %v2975_v61 = vpop.xlane.xlu1 %2974  ;;  %v3089_v5 = vmul.f32 %v4649_v43, %v3069_v12  ;;  %v3073_v43 = vld [vmem:[%s7270_s7 + $0x68] sm:$0xff] }
 0x51f   : > { %v3032_v50 = vadd.f32 0.001, %v3012_v14  ;;  %v3013_v42 = vmul.f32 0.0051020407, %v2975_v61 }
 0x520   : > { %3147 = vperm.xlu0 %4407, %v3089_v5  }
 0x521   : > { %4654 = vrsqrt.f32 %v3032_v50  ;;  %v3033_v41 = vadd.f32 0.001, %v3013_v42 }
 0x523   : > { %v4651_v48 = vpop.eup %4650  ;;  %4656 = vrsqrt.f32 %v3033_v41 }
 0x524   : > { %v2979_v26 = vpop.xlane.xlu0 %2978  ;;  %v3090_v49 = vmul.f32 %v4651_v48, %v3070_v38 }
 0x525   : > { %v4653_v28 = vpop.eup %4652  ;;  %v3014_v54 = vmul.f32 0.0051020407, %v2979_v26  ;;  %v3074_v26 = vld [vmem:[%s7270_s7 + $0x70] sm:$0xff] }
 0x526   : > { %3152 = vperm.xlu1 %4406, %v3090_v49   ;;  %v2983_v60 = vpop.xlane.xlu1 %2982  ;;  %v3091_v59 = vmul.f32 %v4653_v28, %v3071_v51  ;;  %v3075_v28 = vld [vmem:[%s7270_s7 + $0x78] sm:$0xff] }
 0x527   : > { %v3034_v62 = vadd.f32 0.001, %v3014_v54  ;;  %v3015_v40 = vmul.f32 0.0051020407, %v2983_v60 }
 0x528   : > { %3157 = vperm.xlu0 %4407, %v3091_v59  }
 0x529   : > { %4658 = vrsqrt.f32 %v3034_v62  ;;  %v3035_v12 = vadd.f32 0.001, %v3015_v40 }
 0x52b   : > { %v4655_v23 = vpop.eup %4654  ;;  %4660 = vrsqrt.f32 %v3035_v12 }
 0x52c   : > { %v2987_v14 = vpop.xlane.xlu0 %2986  ;;  %v3092_v61 = vmul.f32 %v4655_v23, %v3072_v15  ;;  %v3076_v15 = vld [vmem:[%s7270_s7 + $0x80] sm:$0xff] }
 0x52d   : > { %v4657_v5 = vpop.eup %4656  ;;  %v3016_v50 = vmul.f32 0.0051020407, %v2987_v14 }
 0x52e   : > { %3162 = vperm.xlu1 %4406, %v3092_v61   ;;  %v2991_v42 = vpop.xlane.xlu1 %2990  ;;  %v3093_v41 = vmul.f32 %v4657_v5, %v3073_v43  ;;  %v3077_v43 = vld [vmem:[%s7270_s7 + $0x88] sm:$0xff] }
 0x52f   : > { %v3036_v38 = vadd.f32 0.001, %v3016_v50  ;;  %v3017_v48 = vmul.f32 0.0051020407, %v2991_v42  ;;  %v3078_v50 = vld [vmem:[%s7270_s7 + $0x90] sm:$0xff] }
 0x530   : > { %3167 = vperm.xlu0 %4407, %v3093_v41  }
 0x531   : > { %4662 = vrsqrt.f32 %v3036_v38  ;;  %v3037_v51 = vadd.f32 0.001, %v3017_v48  ;;  %v3258_v38 = vld [vmem:[%s7271_s8 + $0x90] sm:$0xff] }
 0x533   : > { %v4659_v49 = vpop.eup %4658  ;;  %4664 = vrsqrt.f32 %v3037_v51  ;;  %v3283_v51 = vpop.permute.xlu1 %3282 }
 0x534   : > { %v2995_v54 = vpop.xlane.xlu0 %2994  ;;  %v3094_v60 = vmul.f32 %v4659_v49, %v3074_v26 }
 0x535   : > { %v4661_v59 = vpop.eup %4660  ;;  %v3018_v62 = vmul.f32 0.0051020407, %v2995_v54 }
 0x536   : > { %3172 = vperm.xlu1 %4406, %v3094_v60   ;;  %v3095_v40 = vmul.f32 %v4661_v59, %v3075_v28 }
 0x537   : > { %v3038_v12 = vadd.f32 0.001, %v3018_v62  ;;  %v7003_v49 = vpop.permute.xlu1 %3292 }
 0x538   : > { %3177 = vperm.xlu0 %4407, %v3095_v40  }
 0x539   : > { %4666 = vrsqrt.f32 %v3038_v12 }
 0x53b   : > { %v4663_v23 = vpop.eup %4662  ;;  %v7007_v54 = vpop.permute.xlu1 %3302 }
 0x53c   : > { %v3096_v14 = vmul.f32 %v4663_v23, %v3076_v15  ;;  %v3278_v48 = vpop.permute.xlu0 %3277 }
 0x53d   : > { %v4665_v61 = vpop.eup %4664 }
 0x53e   : > { %3182 = vperm.xlu1 %4406, %v3096_v14   ;;  %v3097_v5 = vmul.f32 %v4665_v61, %v3077_v43 }
 0x53f   : > { %v7011_v59 = vpop.permute.xlu1 %3312 }
 0x540   : > { %3187 = vperm.xlu0 %4407, %v3097_v5   ;;  %v3288_v26 = vpop.permute.xlu0 %3287 }
 0x543   : > { %v4667_v42 = vpop.eup %4666  ;;  %v7015_v40 = vpop.permute.xlu1 %3322 }
 0x544   : > { %v3098_v41 = vmul.f32 %v4667_v42, %v3078_v50  ;;  %v7005_v28 = vpop.permute.xlu0 %3297 }
 0x546   : > { %3192 = vperm.xlu1 %4406, %v3098_v41  }
 0x547   : > { %v7019_v15 = vpop.permute.xlu1 %3332 }
 0x548   : > { %v7009_v60 = vpop.permute.xlu0 %3307 }
 0x54a   : > { %3352 = vperm.xlu1 %4406, %v3258_v38  }
 0x54c   : > { %v7013_v62 = vpop.permute.xlu0 %3317 }
 0x550   : > { %v7017_v12 = vpop.permute.xlu0 %3327 }
 0x554   : > { %v7021_v23 = vpop.permute.xlu0 %3337 }
 0x558   : > { %v7023_v61 = vpop.permute.xlu0 %3347 }
 0x559   : > { %7286 = vst [vmem:[#allocation8_spill] sm:$0xff] %v7023_v61 }
 0x577   : > { %v2999_v43 = vpop.xlane.xlu1 %2998 }
 0x578   : > { %v3019_v14 = vmul.f32 0.0051020407, %v2999_v43 }
 0x57a   : > { %v3039_v5 = vadd.f32 0.001, %v3019_v14 }
 0x57b   : > { %v7025_v50 = vpop.permute.xlu1 %3342 }
 0x57c   : > { %4668 = vrsqrt.f32 %v3039_v5  ;;  %7287 = vst [vmem:[#allocation9_spill] sm:$0xff] %v7025_v50  ;;  %v3079_v5 = vld [vmem:[%s7270_s7 + $0x98] sm:$0xff] }
 0x57d   : > { %v3103_v42 = vpop.permute.xlu0 %3102 }
 0x57e   : > { %v3200_v41 = vmul.f32 %v3103_v42, %v6673_v31  ;;  %v3201_v38 = vmul.f32 %v3103_v42, %v6676_v1 }
 0x580   : > { %v3360_v21 = vadd.f32 %v6678_v10, %v3200_v41  ;;  %v3361_v43 = vadd.f32 %v6678_v10, %v3201_v38 }
 0x581   : > { %v3108_v18 = vpop.permute.xlu1 %3107 }
 0x582   : > { %v3202_v37 = vmul.f32 %v3108_v18, %v6685_v6  ;;  %v3203_v57 = vmul.f32 %v3108_v18, %v6688_v25 }
 0x584   : > { %v3362_v61 = vadd.f32 %v6938_v2, %v3202_v37  ;;  %v3363_v14 = vadd.f32 %v6938_v2, %v3203_v57  ;;  %v3259_v37 = vld [vmem:[%s7271_s8 + $0x98] sm:$0xff] }
 0x585   : > { %v3113_v31 = vpop.permute.xlu1 %3112 }
 0x586   : > { %v4669_v50 = vpop.eup %4668  ;;  %v3400_v1 = vpack.c.bf16 %v3362_v61, %v3360_v21  ;;  %v3401_v42 = vpack.c.bf16 %v3363_v14, %v3361_v43  ;;  %v3204_v6 = vmul.f32 %v3113_v31, %v6696_v55  ;;  %v3205_v10 = vmul.f32 %v3113_v31, %v6699_v19 }
 0x587   : > { %v3099_v52 = vmul.f32 %v4669_v50, %v3079_v5 }
 0x588   : > { %3420 = vst [vmem:[#allocation2] sm:$0xff] %v3400_v1  ;;  %3421 = vst.msk [vmem:[#allocation2 + $0x8] sm:$0xff] %vm2739_vm3, %v3401_v42  ;;  %v3364_v21 = vadd.f32 %v6919_v63, %v3204_v6  ;;  %v3365_v2 = vadd.f32 %v6919_v63, %v3205_v10 }
 0x589   : > { %3197 = vperm.xlu0 %4407, %v3099_v52   ;;  %v3118_v25 = vpop.permute.xlu1 %3117 }
 0x58a   : > { %v3206_v57 = vmul.f32 %v3118_v25, %v6707_v56  ;;  %v3207_v18 = vmul.f32 %v3118_v25, %v6710_v32 }
 0x58c   : > { %v3366_v61 = vadd.f32 %v3278_v48, %v3206_v57  ;;  %v3367_v50 = vadd.f32 %v3278_v48, %v3207_v18 }
 0x58d   : > { %3357 = vperm.xlu0 %4407, %v3259_v37   ;;  %v3123_v55 = vpop.permute.xlu1 %3122 }
 0x58e   : > { %v3402_v41 = vpack.c.bf16 %v3366_v61, %v3364_v21  ;;  %v3403_v19 = vpack.c.bf16 %v3367_v50, %v3365_v2  ;;  %v3208_v56 = vmul.f32 %v3123_v55, %v6718_v58  ;;  %v3209_v32 = vmul.f32 %v3123_v55, %v6721_v39 }
 0x590   : > { %3422 = vst [vmem:[#allocation2 + $0x10] sm:$0xff] %v3402_v41  ;;  %3423 = vst.msk [vmem:[#allocation2 + $0x18] sm:$0xff] %vm2739_vm3, %v3403_v19  ;;  %v3368_v14 = vadd.f32 %v3283_v51, %v3208_v56  ;;  %v3369_v63 = vadd.f32 %v3283_v51, %v3209_v32 }
 0x591   : > { %v3128_v52 = vpop.permute.xlu1 %3127 }
 0x592   : > { %v3210_v38 = vmul.f32 %v3128_v52, %v6725_v33  ;;  %v3211_v43 = vmul.f32 %v3128_v52, %v6728_v45 }
 0x594   : > { %v3370_v5 = vadd.f32 %v3288_v26, %v3210_v38  ;;  %v3371_v48 = vadd.f32 %v3288_v26, %v3211_v43 }
 0x595   : > { %v3133_v31 = vpop.permute.xlu1 %3132 }
 0x596   : > { %v3404_v1 = vpack.c.bf16 %v3370_v5, %v3368_v14  ;;  %v3405_v42 = vpack.c.bf16 %v3371_v48, %v3369_v63  ;;  %v3212_v6 = vmul.f32 %v3133_v31, %v6741_v16  ;;  %v3213_v58 = vmul.f32 %v3133_v31, %v6744_v0 }
 0x598   : > { %3424 = vst [vmem:[#allocation2 + $0x20] sm:$0xff] %v3404_v1  ;;  %3425 = vst.msk [vmem:[#allocation2 + $0x28] sm:$0xff] %vm2739_vm3, %v3405_v42  ;;  %v3372_v45 = vadd.f32 %v7003_v49, %v3212_v6  ;;  %v3373_v51 = vadd.f32 %v7003_v49, %v3213_v58 }
 0x599   : > { %v3138_v39 = vpop.permute.xlu1 %3137 }
 0x59a   : > { %v3214_v10 = vmul.f32 %v3138_v39, %v6747_v17  ;;  %v3215_v33 = vmul.f32 %v3138_v39, %v6750_v22 }
 0x59c   : > { %v3374_v26 = vadd.f32 %v7005_v28, %v3214_v10  ;;  %v3375_v25 = vadd.f32 %v7005_v28, %v3215_v33 }
 0x59d   : > { %v3143_v57 = vpop.permute.xlu1 %3142 }
 0x59e   : > { %v3406_v18 = vpack.c.bf16 %v3374_v26, %v3372_v45  ;;  %v3407_v37 = vpack.c.bf16 %v3375_v25, %v3373_v51  ;;  %v3216_v16 = vmul.f32 %v3143_v57, %v6763_v9  ;;  %v3217_v0 = vmul.f32 %v3143_v57, %v6766_v20  ;;  %v7288_v45 = vld [vmem:[#allocation3_spill] sm:$0xff] }
 0x59f   : > { %v3148_v21 = vpop.permute.xlu0 %3147 }
 0x5a0   : > { %3426 = vst [vmem:[#allocation2 + $0x30] sm:$0xff] %v3406_v18  ;;  %3427 = vst.msk [vmem:[#allocation2 + $0x38] sm:$0xff] %vm2739_vm3, %v3407_v37  ;;  %v3218_v17 = vmul.f32 %v3148_v21, %v6769_v11  ;;  %v3219_v22 = vmul.f32 %v3148_v21, %v6772_v47  ;;  %v3376_v49 = vadd.f32 %v7007_v54, %v3216_v16  ;;  %v7291_v21 = vld [vmem:[#allocation4_spill] sm:$0xff] }
 0x5a1   : > { %v3377_v2 = vadd.f32 %v7007_v54, %v3217_v0 }
 0x5a2   : > { %v3378_v28 = vadd.f32 %v7009_v60, %v3218_v17  ;;  %v3379_v61 = vadd.f32 %v7009_v60, %v3219_v22  ;;  %v7292_v17 = vld [vmem:[#allocation5_spill] sm:$0xff] }
 0x5a4   : > { %v3408_v50 = vpack.c.bf16 %v3378_v28, %v3376_v49  ;;  %v3409_v9 = vpack.c.bf16 %v3379_v61, %v3377_v2  ;;  %v7293_v49 = vld [vmem:[#allocation7_spill] sm:$0xff]  ;;  %v7294_v28 = vld [vmem:[#allocation6_spill] sm:$0xff] }
 0x5a5   : > { %v3153_v55 = vpop.permute.xlu1 %3152 }
 0x5a6   : > { %3428 = vst [vmem:[#allocation2 + $0x40] sm:$0xff] %v3408_v50  ;;  %3429 = vst.msk [vmem:[#allocation2 + $0x48] sm:$0xff] %vm2739_vm3, %v3409_v9  ;;  %v3220_v20 = vmul.f32 %v3153_v55, %v6785_v3  ;;  %v3221_v11 = vmul.f32 %v3153_v55, %v6788_v4 }
 0x5a7   : > { %v3158_v41 = vpop.permute.xlu0 %3157 }
 0x5a8   : > { %v3222_v47 = vmul.f32 %v3158_v41, %v6791_v36  ;;  %v3223_v19 = vmul.f32 %v3158_v41, %v6794_v35  ;;  %v3380_v54 = vadd.f32 %v7011_v59, %v3220_v20  ;;  %v3381_v56 = vadd.f32 %v7011_v59, %v3221_v11 }
 0x5aa   : > { %v3382_v60 = vadd.f32 %v7013_v62, %v3222_v47  ;;  %v3383_v32 = vadd.f32 %v7013_v62, %v3223_v19 }
 0x5ac   : > { %v3410_v52 = vpack.c.bf16 %v3382_v60, %v3380_v54  ;;  %v3411_v38 = vpack.c.bf16 %v3383_v32, %v3381_v56 }
 0x5ad   : > { %v3163_v43 = vpop.permute.xlu1 %3162 }
 0x5ae   : > { %3430 = vst [vmem:[#allocation2 + $0x50] sm:$0xff] %v3410_v52  ;;  %3431 = vst.msk [vmem:[#allocation2 + $0x58] sm:$0xff] %vm2739_vm3, %v3411_v38  ;;  %v3224_v3 = vmul.f32 %v3163_v43, %v6807_v27  ;;  %v3225_v4 = vmul.f32 %v3163_v43, %v6810_v8 }
 0x5af   : > { %v3168_v36 = vpop.permute.xlu0 %3167 }
 0x5b0   : > { %v3226_v35 = vmul.f32 %v3168_v36, %v6813_v44  ;;  %v3227_v14 = vmul.f32 %v3168_v36, %v6816_v13  ;;  %v3384_v59 = vadd.f32 %v7015_v40, %v3224_v3  ;;  %v3385_v63 = vadd.f32 %v7015_v40, %v3225_v4 }
 0x5b2   : > { %v3386_v62 = vadd.f32 %v7017_v12, %v3226_v35  ;;  %v3387_v5 = vadd.f32 %v7017_v12, %v3227_v14 }
 0x5b4   : > { %v3412_v48 = vpack.c.bf16 %v3386_v62, %v3384_v59  ;;  %v3413_v31 = vpack.c.bf16 %v3387_v5, %v3385_v63 }
 0x5b5   : > { %v3173_v1 = vpop.permute.xlu1 %3172 }
 0x5b6   : > { %3432 = vst [vmem:[#allocation2 + $0x60] sm:$0xff] %v3412_v48  ;;  %3433 = vst.msk [vmem:[#allocation2 + $0x68] sm:$0xff] %vm2739_vm3, %v3413_v31  ;;  %v3228_v27 = vmul.f32 %v3173_v1, %v6829_v7  ;;  %v3229_v8 = vmul.f32 %v3173_v1, %v6832_v34 }
 0x5b7   : > { %v3178_v44 = vpop.permute.xlu0 %3177 }
 0x5b8   : > { %v3230_v13 = vmul.f32 %v3178_v44, %v6835_v53  ;;  %v3231_v42 = vmul.f32 %v3178_v44, %v6838_v30  ;;  %v3388_v40 = vadd.f32 %v7019_v15, %v3228_v27  ;;  %v3389_v6 = vadd.f32 %v7019_v15, %v3229_v8  ;;  %v7289_v15 = vld [vmem:[#allocation9_spill] sm:$0xff] }
 0x5ba   : > { %v3390_v12 = vadd.f32 %v7021_v23, %v3230_v13  ;;  %v3391_v58 = vadd.f32 %v7021_v23, %v3231_v42  ;;  %v7290_v23 = vld [vmem:[#allocation8_spill] sm:$0xff] }
 0x5bc   : > { %v3414_v39 = vpack.c.bf16 %v3390_v12, %v3388_v40  ;;  %v3415_v10 = vpack.c.bf16 %v3391_v58, %v3389_v6 }
 0x5bd   : > { %v3183_v33 = vpop.permute.xlu1 %3182 }
 0x5be   : > { %3434 = vst [vmem:[#allocation2 + $0x70] sm:$0xff] %v3414_v39  ;;  %3435 = vst.msk [vmem:[#allocation2 + $0x78] sm:$0xff] %vm2739_vm3, %v3415_v10  ;;  %v3232_v7 = vmul.f32 %v3183_v33, %v6851_v24  ;;  %v3233_v34 = vmul.f32 %v3183_v33, %v6854_v46 }
 0x5bf   : > { %v3188_v53 = vpop.permute.xlu0 %3187 }
 0x5c0   : > { %v3234_v30 = vmul.f32 %v3188_v53, %v6857_v29  ;;  %v3235_v51 = vmul.f32 %v3188_v53, %v7288_v45  ;;  %v3392_v26 = vadd.f32 %v7289_v15, %v3232_v7  ;;  %v3393_v25 = vadd.f32 %v7289_v15, %v3233_v34 }
 0x5c2   : > { %v3394_v57 = vadd.f32 %v7290_v23, %v3234_v30  ;;  %v3395_v18 = vadd.f32 %v7290_v23, %v3235_v51 }
 0x5c4   : > { %v3416_v37 = vpack.c.bf16 %v3394_v57, %v3392_v26  ;;  %v3417_v16 = vpack.c.bf16 %v3395_v18, %v3393_v25 }
 0x5c5   : > { %v3193_v24 = vpop.permute.xlu1 %3192 }
 0x5c6   : > { %3436 = vst [vmem:[#allocation2 + $0x80] sm:$0xff] %v3416_v37  ;;  %3437 = vst.msk [vmem:[#allocation2 + $0x88] sm:$0xff] %vm2739_vm3, %v3417_v16  ;;  %v3236_v29 = vmul.f32 %v3193_v24, %v7291_v21  ;;  %v3237_v22 = vmul.f32 %v3193_v24, %v7292_v17 }
 0x5c9   : > { %v3353_v0 = vpop.permute.xlu1 %3352 }
 0x5ca   : > { %v3396_v9 = vadd.f32 %v3353_v0, %v3236_v29  ;;  %v3397_v55 = vadd.f32 %v3353_v0, %v3237_v22 }
 0x608   : > { %v3198_v46 = vpop.permute.xlu0 %3197 }
 0x609   : > { %v3238_v2 = vmul.f32 %v3198_v46, %v7293_v49  ;;  %v3239_v61 = vmul.f32 %v3198_v46, %v7294_v28 }
 0x60c   : > { %v3358_v50 = vpop.permute.xlu0 %3357 }
 0x60d   : > { %v3398_v20 = vadd.f32 %v3358_v50, %v3238_v2  ;;  %v3399_v11 = vadd.f32 %v3358_v50, %v3239_v61 }
 0x60f   : > { %v3418_v41 = vpack.c.bf16 %v3398_v20, %v3396_v9  ;;  %v3419_v47 = vpack.c.bf16 %v3399_v11, %v3397_v55 }
 0x611   : > { %3438 = vst [vmem:[#allocation2 + $0x90] sm:$0xff] %v3418_v41  ;;  %3439 = vst.msk [vmem:[#allocation2 + $0x98] sm:$0xff] %vm2739_vm3, %v3419_v47 }
 0x612 PF: > { %v3471_v19 = vld [vmem:[#allocation2 + $0x8] sm:$0xff]  ;;  %v3470_v54 = vld [vmem:[#allocation2] sm:$0xff]  ;;  %v3473_v56 = vld [vmem:[#allocation2 + $0x18] sm:$0xff]  ;;  %vm3625_vm4 = vcmask 261120   ;;  %vm3855_vm5 = vcmask 556032  }
 0x613   : > { %3671 = vmatprep.subr.bf16.mxu0 %v3471_v19  ;;  %4345 = vmatprep.subr.bf16.mxu1 %v3471_v19  ;;  %v3472_v60 = vld [vmem:[#allocation2 + $0x10] sm:$0xff]  ;;  %v3475_v32 = vld [vmem:[#allocation2 + $0x28] sm:$0xff]  ;;  %v3474_v52 = vld [vmem:[#allocation2 + $0x20] sm:$0xff] }
 0x614   : > { %3672 = vmatpush1.bf16.msra.mxu0 %v3470_v54  ;;  %4355 = vmatpush1.bf16.msra.mxu1 %v3470_v54  ;;  %v4672_v38 = vld [vmem:[%s4844_s27 + $0x4] ss:$8 sps:$4 sm:$0xff]   ;;  %v3477_v43 = vld [vmem:[#allocation2 + $0x38] sm:$0xff]  ;;  %v3476_v4 = vld [vmem:[#allocation2 + $0x30] sm:$0xff] }
 0x615   : > { %3673 = vmatprep.subr.bf16.mxu0 %v3473_v56  ;;  %4346 = vmatprep.subr.bf16.mxu1 %v3473_v56  ;;  %v4675_v3 = vld [vmem:[%s4844_s27 + $0x84] ss:$8 sps:$4 sm:$0xff]   ;;  %v3481_v14 = vld [vmem:[#allocation2 + $0x58] sm:$0xff]  ;;  %v3480_v59 = vld [vmem:[#allocation2 + $0x50] sm:$0xff] }
 0x616   : > { %4204 = vmatprep.mubr.msk.bf16.mxu0 %vm3625_vm4, %v4672_v38  ;;  %v3479_v36 = vld [vmem:[#allocation2 + $0x48] sm:$0xff]  ;;  %4212 = vmatprep.mubr.msk.bf16.mxu1 %vm3625_vm4, %v4675_v3  ;;  %v3478_v35 = vld [vmem:[#allocation2 + $0x40] sm:$0xff]  ;;  %v3485_v5 = vld [vmem:[#allocation2 + $0x78] sm:$0xff] }
 0x617   : > { %v3483_v63 = vld [vmem:[#allocation2 + $0x68] sm:$0xff]  ;;  %v3482_v62 = vld [vmem:[#allocation2 + $0x60] sm:$0xff]  ;;  %v3484_v48 = vld [vmem:[#allocation2 + $0x70] sm:$0xff] }
 0x618   : > { %3674 = vmatpush1.bf16.msra.mxu0 %v3472_v60  ;;  %4356 = vmatpush1.bf16.msra.mxu1 %v3472_v60  ;;  %v3487_v31 = vld [vmem:[#allocation2 + $0x88] sm:$0xff]  ;;  %v3486_v1 = vld [vmem:[#allocation2 + $0x80] sm:$0xff]  ;;  %v3489_v27 = vld [vmem:[#allocation2 + $0x98] sm:$0xff] }
 0x619   : > { %3675 = vmatprep.subr.bf16.mxu0 %v3475_v32  ;;  %4347 = vmatprep.subr.bf16.mxu1 %v3475_v32  ;;  %v3488_v8 = vld [vmem:[#allocation2 + $0x90] sm:$0xff]  ;;  %v4670_v44 = vld [vmem:[%s4844_s27] ss:$8 sps:$4 sm:$0xff]   ;;  %v4682_v58 = vld [vmem:[%s4844_s27 + $0x24] ss:$8 sps:$4 sm:$0xff]  }
 0x61a   : > { %v4673_v13 = vld [vmem:[%s4844_s27 + $0x80] ss:$8 sps:$4 sm:$0xff]   ;;  %v4676_v42 = vld [vmem:[%s4844_s27 + $0x14] ss:$8 sps:$4 sm:$0xff]   ;;  %v4678_v6 = vld [vmem:[%s4844_s27 + $0x10] ss:$8 sps:$4 sm:$0xff]  }
 0x61b   : > { %v4679_v40 = vld [vmem:[%s4844_s27 + $0x94] ss:$8 sps:$4 sm:$0xff]   ;;  %v4681_v12 = vld [vmem:[%s4844_s27 + $0x90] ss:$8 sps:$4 sm:$0xff]   ;;  %v4685_v39 = vld [vmem:[%s4844_s27 + $0xa4] ss:$8 sps:$4 sm:$0xff]  }
 0x61c   : > { %3676 = vmatpush1.bf16.msra.mxu0 %v3474_v52  ;;  %4357 = vmatpush1.bf16.msra.mxu1 %v3474_v52  ;;  %v4684_v10 = vld [vmem:[%s4844_s27 + $0x20] ss:$8 sps:$4 sm:$0xff]   ;;  %v4688_v7 = vld [vmem:[%s4844_s27 + $0x34] ss:$8 sps:$4 sm:$0xff]   ;;  %v4690_v53 = vld [vmem:[%s4844_s27 + $0x30] ss:$8 sps:$4 sm:$0xff]  }
 0x61d   : > { %3677 = vmatprep.subr.bf16.mxu0 %v3477_v43  ;;  %4348 = vmatprep.subr.bf16.mxu1 %v3477_v43  ;;  %v4687_v33 = vld [vmem:[%s4844_s27 + $0xa0] ss:$8 sps:$4 sm:$0xff]   ;;  %v4691_v34 = vld [vmem:[%s4844_s27 + $0xb4] ss:$8 sps:$4 sm:$0xff]   ;;  %v4693_v30 = vld [vmem:[%s4844_s27 + $0xb0] ss:$8 sps:$4 sm:$0xff]  }
 0x61e   : > { %v4694_v45 = vld [vmem:[%s4844_s27 + $0x44] ss:$8 sps:$4 sm:$0xff]   ;;  %v4696_v15 = vld [vmem:[%s4844_s27 + $0x40] ss:$8 sps:$4 sm:$0xff]   ;;  %v4700_v25 = vld [vmem:[%s4844_s27 + $0x54] ss:$8 sps:$4 sm:$0xff]  }
 0x61f   : > { %v4697_v51 = vld [vmem:[%s4844_s27 + $0xc4] ss:$8 sps:$4 sm:$0xff]   ;;  %v4699_v26 = vld [vmem:[%s4844_s27 + $0xc0] ss:$8 sps:$4 sm:$0xff]   ;;  %v4703_v23 = vld [vmem:[%s4844_s27 + $0xd4] ss:$8 sps:$4 sm:$0xff]  }
 0x620   : > { %3678 = vmatpush1.bf16.msra.mxu0 %v3476_v4  ;;  %4358 = vmatpush1.bf16.msra.mxu1 %v3476_v4  ;;  %v4702_v57 = vld [vmem:[%s4844_s27 + $0x50] ss:$8 sps:$4 sm:$0xff]   ;;  %v4706_v37 = vld [vmem:[%s4844_s27 + $0x64] ss:$8 sps:$4 sm:$0xff]   ;;  %v4708_v24 = vld [vmem:[%s4844_s27 + $0x60] ss:$8 sps:$4 sm:$0xff]  }
 0x621   : > { %3679 = vmatprep.subr.bf16.mxu0 %v3479_v36  ;;  %4349 = vmatprep.subr.bf16.mxu1 %v3479_v36  ;;  %v4705_v18 = vld [vmem:[%s4844_s27 + $0xd0] ss:$8 sps:$4 sm:$0xff]   ;;  %v4709_v16 = vld [vmem:[%s4844_s27 + $0xe4] ss:$8 sps:$4 sm:$0xff]   ;;  %v4711_v46 = vld [vmem:[%s4844_s27 + $0xe0] ss:$8 sps:$4 sm:$0xff]  }
 0x622   : > { %v4712_v0 = vld [vmem:[%s4844_s27 + $0x74] ss:$8 sps:$4 sm:$0xff]   ;;  %v4714_v21 = vld [vmem:[%s4844_s27 + $0x70] ss:$8 sps:$4 sm:$0xff]  }
 0x624   : > { %3680 = vmatpush1.bf16.msra.mxu0 %v3478_v35  ;;  %4359 = vmatpush1.bf16.msra.mxu1 %v3478_v35 }
 0x625   : > { %3681 = vmatprep.subr.bf16.mxu0 %v3481_v14  ;;  %4350 = vmatprep.subr.bf16.mxu1 %v3481_v14 }
 0x628   : > { %3682 = vmatpush1.bf16.msra.mxu0 %v3480_v59  ;;  %4360 = vmatpush1.bf16.msra.mxu1 %v3480_v59 }
 0x629   : > { %3683 = vmatprep.subr.bf16.mxu0 %v3483_v63  ;;  %4351 = vmatprep.subr.bf16.mxu1 %v3483_v63 }
 0x62c   : > { %3684 = vmatpush1.bf16.msra.mxu0 %v3482_v62  ;;  %4361 = vmatpush1.bf16.msra.mxu1 %v3482_v62 }
 0x62d   : > { %3685 = vmatprep.subr.bf16.mxu0 %v3485_v5  ;;  %4352 = vmatprep.subr.bf16.mxu1 %v3485_v5 }
 0x630   : > { %3686 = vmatpush1.bf16.msra.mxu0 %v3484_v48  ;;  %4362 = vmatpush1.bf16.msra.mxu1 %v3484_v48 }
 0x631   : > { %3687 = vmatprep.subr.bf16.mxu0 %v3487_v31  ;;  %4353 = vmatprep.subr.bf16.mxu1 %v3487_v31 }
 0x634   : > { %3688 = vmatpush1.bf16.msra.mxu0 %v3486_v1  ;;  %4363 = vmatpush1.bf16.msra.mxu1 %v3486_v1 }
 0x635   : > { %3689 = vmatprep.subr.bf16.mxu0 %v3489_v27  ;;  %4354 = vmatprep.subr.bf16.mxu1 %v3489_v27 }
 0x638   : > { %3690 = vmatpush1.bf16.msra.mxu0 %v3488_v8  ;;  %4364 = vmatpush1.bf16.msra.mxu1 %v3488_v8 }
 0x63b   : > { %3704 = vmatmul.mubr.bf16.vlgmr.msra.gmra.mrb[0].mxu0 %v4670_v44  ;;  %3784 = vmatmul.mubr.bf16.vlgmr.msra.gmra.mrb[0].mxu1 %v4673_v13 }
 0x63c   : > { %4205 = vmatprep.mubr.msk.bf16.mxu0 %vm3625_vm4, %v4676_v42  ;;  %4213 = vmatprep.mubr.msk.bf16.mxu1 %vm3625_vm4, %v4679_v40 }
 0x643   : > { %3714 = vmatmul.mubr.bf16.gmra.mrb[4].mxu0 %v4678_v6  ;;  %3794 = vmatmul.mubr.bf16.gmra.mrb[4].mxu1 %v4681_v12 }
 0x644   : > { %4206 = vmatprep.mubr.msk.bf16.mxu0 %vm3625_vm4, %v4682_v58  ;;  %4214 = vmatprep.mubr.msk.bf16.mxu1 %vm3625_vm4, %v4685_v39 }
 0x64b   : > { %3724 = vmatmul.mubr.bf16.gmra.mrb[8].mxu0 %v4684_v10  ;;  %3804 = vmatmul.mubr.bf16.gmra.mrb[8].mxu1 %v4687_v33 }
 0x64c   : > { %4207 = vmatprep.mubr.msk.bf16.mxu0 %vm3625_vm4, %v4688_v7  ;;  %4215 = vmatprep.mubr.msk.bf16.mxu1 %vm3625_vm4, %v4691_v34 }
 0x653   : > { %3734 = vmatmul.mubr.bf16.gmra.mrb[12].mxu0 %v4690_v53  ;;  %3814 = vmatmul.mubr.bf16.gmra.mrb[12].mxu1 %v4693_v30 }
 0x654   : > { %4208 = vmatprep.mubr.msk.bf16.mxu0 %vm3625_vm4, %v4694_v45  ;;  %4216 = vmatprep.mubr.msk.bf16.mxu1 %vm3625_vm4, %v4697_v51 }
 0x65b   : > { %3744 = vmatmul.mubr.bf16.gmra.mrb[16].mxu0 %v4696_v15  ;;  %3824 = vmatmul.mubr.bf16.gmra.mrb[16].mxu1 %v4699_v26 }
 0x65c   : > { %4209 = vmatprep.mubr.msk.bf16.mxu0 %vm3625_vm4, %v4700_v25  ;;  %4217 = vmatprep.mubr.msk.bf16.mxu1 %vm3625_vm4, %v4703_v23 }
 0x663   : > { %3754 = vmatmul.mubr.bf16.gmra.mrb[20].mxu0 %v4702_v57  ;;  %3834 = vmatmul.mubr.bf16.gmra.mrb[20].mxu1 %v4705_v18 }
 0x664   : > { %4210 = vmatprep.mubr.msk.bf16.mxu0 %vm3625_vm4, %v4706_v37  ;;  %4218 = vmatprep.mubr.msk.bf16.mxu1 %vm3625_vm4, %v4709_v16 }
 0x66b   : > { %3764 = vmatmul.mubr.bf16.gmra.mrb[24].mxu0 %v4708_v24  ;;  %3844 = vmatmul.mubr.bf16.gmra.mrb[24].mxu1 %v4711_v46 }
 0x66c   : > { %4211 = vmatprep.mubr.msk.bf16.mxu0 %vm3625_vm4, %v4712_v0 }
 0x673   : > { %3774 = vmatmul.mubr.bf16.gmra.mrb[28].mxu0 %v4714_v21 }
 0x70e   : > { %v3705_v29 = vpop.f32.mrb[0].mxu0  ;;  %v3785_v17 = vpop.f32.mrb[0].mxu1 }
 0x70f   : > { %3854 = vst [vmem:[%s4849_s30] sm:$0xff] %v3705_v29  ;;  %v3707_v22 = vpop.f32.mrb[1].mxu0  ;;  %3887 = vst [vmem:[%s4849_s30 + $0x100] sm:$0xff] %v3785_v17  ;;  %v3787_v49 = vpop.f32.mrb[1].mxu1 }
 0x710   : > { %3856 = vst.msk [vmem:[%s4849_s30 + $0x8] sm:$0xff] %vm3855_vm5, %v3707_v22  ;;  %v3709_v2 = vpop.f32.mrb[2].mxu0  ;;  %3888 = vst.msk [vmem:[%s4849_s30 + $0x108] sm:$0xff] %vm3855_vm5, %v3787_v49  ;;  %v3789_v28 = vpop.f32.mrb[2].mxu1 }
 0x711   : > { %3857 = vst [vmem:[%s4849_s30 + $0x10] sm:$0xff] %v3709_v2  ;;  %v3711_v61 = vpop.f32.mrb[3].mxu0  ;;  %3889 = vst [vmem:[%s4849_s30 + $0x110] sm:$0xff] %v3789_v28  ;;  %v3791_v50 = vpop.f32.mrb[3].mxu1 }
 0x712   : > { %3858 = vst.msk [vmem:[%s4849_s30 + $0x18] sm:$0xff] %vm3855_vm5, %v3711_v61  ;;  %3890 = vst.msk [vmem:[%s4849_s30 + $0x118] sm:$0xff] %vm3855_vm5, %v3791_v50 }
 0x716   : > { %v3715_v9 = vpop.f32.mrb[4].mxu0  ;;  %v3795_v55 = vpop.f32.mrb[4].mxu1 }
 0x717   : > { %3859 = vst [vmem:[%s4849_s30 + $0x20] sm:$0xff] %v3715_v9  ;;  %v3717_v20 = vpop.f32.mrb[5].mxu0  ;;  %3891 = vst [vmem:[%s4849_s30 + $0x120] sm:$0xff] %v3795_v55  ;;  %v3797_v11 = vpop.f32.mrb[5].mxu1 }
 0x718   : > { %3860 = vst.msk [vmem:[%s4849_s30 + $0x28] sm:$0xff] %vm3855_vm5, %v3717_v20  ;;  %v3719_v41 = vpop.f32.mrb[6].mxu0  ;;  %3892 = vst.msk [vmem:[%s4849_s30 + $0x128] sm:$0xff] %vm3855_vm5, %v3797_v11  ;;  %v3799_v47 = vpop.f32.mrb[6].mxu1 }
 0x719   : > { %3861 = vst [vmem:[%s4849_s30 + $0x30] sm:$0xff] %v3719_v41  ;;  %v3721_v19 = vpop.f32.mrb[7].mxu0  ;;  %3893 = vst [vmem:[%s4849_s30 + $0x130] sm:$0xff] %v3799_v47  ;;  %v3801_v54 = vpop.f32.mrb[7].mxu1 }
 0x71a   : > { %3862 = vst.msk [vmem:[%s4849_s30 + $0x38] sm:$0xff] %vm3855_vm5, %v3721_v19  ;;  %3894 = vst.msk [vmem:[%s4849_s30 + $0x138] sm:$0xff] %vm3855_vm5, %v3801_v54 }
 0x71e   : > { %v3725_v56 = vpop.f32.mrb[8].mxu0  ;;  %v3805_v60 = vpop.f32.mrb[8].mxu1 }
 0x71f   : > { %3863 = vst [vmem:[%s4849_s30 + $0x40] sm:$0xff] %v3725_v56  ;;  %v3727_v32 = vpop.f32.mrb[9].mxu0  ;;  %3895 = vst [vmem:[%s4849_s30 + $0x140] sm:$0xff] %v3805_v60  ;;  %v3807_v52 = vpop.f32.mrb[9].mxu1 }
 0x720   : > { %3864 = vst.msk [vmem:[%s4849_s30 + $0x48] sm:$0xff] %vm3855_vm5, %v3727_v32  ;;  %v3729_v38 = vpop.f32.mrb[10].mxu0  ;;  %3896 = vst.msk [vmem:[%s4849_s30 + $0x148] sm:$0xff] %vm3855_vm5, %v3807_v52  ;;  %v3809_v43 = vpop.f32.mrb[10].mxu1 }
 0x721   : > { %3865 = vst [vmem:[%s4849_s30 + $0x50] sm:$0xff] %v3729_v38  ;;  %v3731_v3 = vpop.f32.mrb[11].mxu0  ;;  %3897 = vst [vmem:[%s4849_s30 + $0x150] sm:$0xff] %v3809_v43  ;;  %v3811_v4 = vpop.f32.mrb[11].mxu1 }
 0x722   : > { %3866 = vst.msk [vmem:[%s4849_s30 + $0x58] sm:$0xff] %vm3855_vm5, %v3731_v3  ;;  %3898 = vst.msk [vmem:[%s4849_s30 + $0x158] sm:$0xff] %vm3855_vm5, %v3811_v4 }
 0x726   : > { %v3735_v36 = vpop.f32.mrb[12].mxu0  ;;  %v3815_v35 = vpop.f32.mrb[12].mxu1 }
 0x727   : > { %3867 = vst [vmem:[%s4849_s30 + $0x60] sm:$0xff] %v3735_v36  ;;  %v3737_v14 = vpop.f32.mrb[13].mxu0  ;;  %3899 = vst [vmem:[%s4849_s30 + $0x160] sm:$0xff] %v3815_v35  ;;  %v3817_v59 = vpop.f32.mrb[13].mxu1 }
 0x728   : > { %3868 = vst.msk [vmem:[%s4849_s30 + $0x68] sm:$0xff] %vm3855_vm5, %v3737_v14  ;;  %v3739_v63 = vpop.f32.mrb[14].mxu0  ;;  %3900 = vst.msk [vmem:[%s4849_s30 + $0x168] sm:$0xff] %vm3855_vm5, %v3817_v59  ;;  %v3819_v62 = vpop.f32.mrb[14].mxu1 }
 0x729   : > { %3869 = vst [vmem:[%s4849_s30 + $0x70] sm:$0xff] %v3739_v63  ;;  %v3741_v5 = vpop.f32.mrb[15].mxu0  ;;  %3901 = vst [vmem:[%s4849_s30 + $0x170] sm:$0xff] %v3819_v62  ;;  %v3821_v48 = vpop.f32.mrb[15].mxu1 }
 0x72a   : > { %3870 = vst.msk [vmem:[%s4849_s30 + $0x78] sm:$0xff] %vm3855_vm5, %v3741_v5  ;;  %3902 = vst.msk [vmem:[%s4849_s30 + $0x178] sm:$0xff] %vm3855_vm5, %v3821_v48 }
 0x72e   : > { %v3745_v31 = vpop.f32.mrb[16].mxu0  ;;  %v3825_v1 = vpop.f32.mrb[16].mxu1 }
 0x72f   : > { %3871 = vst [vmem:[%s4849_s30 + $0x80] sm:$0xff] %v3745_v31  ;;  %v3747_v27 = vpop.f32.mrb[17].mxu0  ;;  %3903 = vst [vmem:[%s4849_s30 + $0x180] sm:$0xff] %v3825_v1  ;;  %v3827_v8 = vpop.f32.mrb[17].mxu1 }
 0x730   : > { %3872 = vst.msk [vmem:[%s4849_s30 + $0x88] sm:$0xff] %vm3855_vm5, %v3747_v27  ;;  %v3749_v44 = vpop.f32.mrb[18].mxu0  ;;  %3904 = vst.msk [vmem:[%s4849_s30 + $0x188] sm:$0xff] %vm3855_vm5, %v3827_v8  ;;  %v3829_v13 = vpop.f32.mrb[18].mxu1 }
 0x731   : > { %3873 = vst [vmem:[%s4849_s30 + $0x90] sm:$0xff] %v3749_v44  ;;  %v3751_v42 = vpop.f32.mrb[19].mxu0  ;;  %3905 = vst [vmem:[%s4849_s30 + $0x190] sm:$0xff] %v3829_v13  ;;  %v3831_v40 = vpop.f32.mrb[19].mxu1 }
 0x732   : > { %3874 = vst.msk [vmem:[%s4849_s30 + $0x98] sm:$0xff] %vm3855_vm5, %v3751_v42  ;;  %3906 = vst.msk [vmem:[%s4849_s30 + $0x198] sm:$0xff] %vm3855_vm5, %v3831_v40 }
 0x736   : > { %v3755_v6 = vpop.f32.mrb[20].mxu0  ;;  %v3835_v12 = vpop.f32.mrb[20].mxu1 }
 0x737   : > { %3875 = vst [vmem:[%s4849_s30 + $0xa0] sm:$0xff] %v3755_v6  ;;  %v3757_v58 = vpop.f32.mrb[21].mxu0  ;;  %3907 = vst [vmem:[%s4849_s30 + $0x1a0] sm:$0xff] %v3835_v12  ;;  %v3837_v39 = vpop.f32.mrb[21].mxu1 }
 0x738   : > { %3876 = vst.msk [vmem:[%s4849_s30 + $0xa8] sm:$0xff] %vm3855_vm5, %v3757_v58  ;;  %v3759_v10 = vpop.f32.mrb[22].mxu0  ;;  %3908 = vst.msk [vmem:[%s4849_s30 + $0x1a8] sm:$0xff] %vm3855_vm5, %v3837_v39  ;;  %v3839_v33 = vpop.f32.mrb[22].mxu1 }
 0x739   : > { %3877 = vst [vmem:[%s4849_s30 + $0xb0] sm:$0xff] %v3759_v10  ;;  %v3761_v7 = vpop.f32.mrb[23].mxu0  ;;  %3909 = vst [vmem:[%s4849_s30 + $0x1b0] sm:$0xff] %v3839_v33  ;;  %v3841_v34 = vpop.f32.mrb[23].mxu1 }
 0x73a   : > { %3878 = vst.msk [vmem:[%s4849_s30 + $0xb8] sm:$0xff] %vm3855_vm5, %v3761_v7  ;;  %3910 = vst.msk [vmem:[%s4849_s30 + $0x1b8] sm:$0xff] %vm3855_vm5, %v3841_v34 }
 0x73e   : > { %v3765_v53 = vpop.f32.mrb[24].mxu0  ;;  %v3845_v30 = vpop.f32.mrb[24].mxu1 }
 0x73f   : > { %3879 = vst [vmem:[%s4849_s30 + $0xc0] sm:$0xff] %v3765_v53  ;;  %v3767_v45 = vpop.f32.mrb[25].mxu0  ;;  %3911 = vst [vmem:[%s4849_s30 + $0x1c0] sm:$0xff] %v3845_v30  ;;  %v3847_v51 = vpop.f32.mrb[25].mxu1 }
 0x740   : > { %3880 = vst.msk [vmem:[%s4849_s30 + $0xc8] sm:$0xff] %vm3855_vm5, %v3767_v45  ;;  %v3769_v15 = vpop.f32.mrb[26].mxu0  ;;  %3912 = vst.msk [vmem:[%s4849_s30 + $0x1c8] sm:$0xff] %vm3855_vm5, %v3847_v51  ;;  %v3849_v26 = vpop.f32.mrb[26].mxu1 }
 0x741   : > { %3881 = vst [vmem:[%s4849_s30 + $0xd0] sm:$0xff] %v3769_v15  ;;  %v3771_v25 = vpop.f32.mrb[27].mxu0  ;;  %3913 = vst [vmem:[%s4849_s30 + $0x1d0] sm:$0xff] %v3849_v26  ;;  %v3851_v23 = vpop.f32.mrb[27].mxu1 }
 0x742   : > { %3882 = vst.msk [vmem:[%s4849_s30 + $0xd8] sm:$0xff] %vm3855_vm5, %v3771_v25  ;;  %3914 = vst.msk [vmem:[%s4849_s30 + $0x1d8] sm:$0xff] %vm3855_vm5, %v3851_v23 }
 0x746   : > { %v3775_v57 = vpop.f32.mrb[28].mxu0 }
 0x747   : > { %3883 = vst [vmem:[%s4849_s30 + $0xe0] sm:$0xff] %v3775_v57  ;;  %v3777_v18 = vpop.f32.mrb[29].mxu0 }
 0x748   : > { %3884 = vst.msk [vmem:[%s4849_s30 + $0xe8] sm:$0xff] %vm3855_vm5, %v3777_v18  ;;  %v3779_v37 = vpop.f32.mrb[30].mxu0 }
 0x749   : > { %3885 = vst [vmem:[%s4849_s30 + $0xf0] sm:$0xff] %v3779_v37  ;;  %v3781_v16 = vpop.f32.mrb[31].mxu0 }
 0x74a   : > { %3886 = vst.msk [vmem:[%s4849_s30 + $0xf8] sm:$0xff] %vm3855_vm5, %v3781_v16 }
 0x74b PF: > { %s20_s17 = sadd.s32 1, %s4753_s17   ;;  %s7295_s13 = smov %s4745_s15 }
 0x74c   : > { %p17_p7 = scmp.ge.s32.totalorder %s20_s17, 6   ;;  %s7296_s14 = smov %s4749_s16 }
 0x74d   : > { %s7297_s15 = smov %s7300_s18  ;;  %s7298_s16 = smov %s7304_s19 }
 0x74e   :  { %19 = sbr.rel (!%p17_p7) target bundleno = 3 (0x3), region = 94 }

</bundles_post_ra>
